<compile_context>
chip_gen: v7x
topology: tpu7x:2x2x1
jax: 0.10.0
libtpu: 0.0.40
codegen_flags: <defaults>
</compile_context>

<pallas_src>
import functools

import jax
import jax.numpy as jnp
from jax import lax
from jax.experimental import pallas as pl
from jax.experimental.pallas import tpu as pltpu


# ---------------------------------------------------------------------------
# Hardware / tiling helpers
# ---------------------------------------------------------------------------

def _vmem_capacity_bytes():
    """Physical VMEM of the current chip; 64 MiB fallback keeps v7x safe."""
    try:
        info = pltpu.get_tpu_info()
        cap = int(getattr(info, "vmem_capacity_bytes", 0) or 0)
        if cap > 0:
            return cap
    except Exception:
        pass
    return 64 << 20


def _pick_d_tile(D, H, Hp, L_in, L_out, K, budget_bytes):
    """Largest divisor of D whose per-step VMEM footprint fits the budget."""
    halo = K - 1
    best = 1
    for t in range(1, D + 1):
        if D % t:
            continue
        xh_b = 2 * (t + halo) * Hp * L_in * 2      # double-buffered bf16 input window
        y_b = 2 * t * H * L_out * 2                # double-buffered bf16 conv-out tile
        w_b = 2 * (K * K) * L_in * L_out * 2       # resident bf16 weight band
        acc_b = 3 * t * H * L_out * 4              # f32 accumulator + temporaries
        if xh_b + y_b + w_b + acc_b + (1 << 20) <= budget_bytes:
            best = t
    return best
    # TODO(synk): relax the exact-divisor requirement (pl.cdiv grid + masked
    # tail) for D values with few divisors.


# ---------------------------------------------------------------------------
# Weight packing: banded matmul weights over the folded (W, C) lane axis
# ---------------------------------------------------------------------------

def _pack_band(w_taps, W, cin, cout, K):
    """Tap-major (K^3, cin, cout) conv weights -> banded (K*K, W*cin, W*cout) bf16.

    band[kd*K+kh, w_in*cin+ci, w*cout+co] = w[(kd*K+kh)*K+kw, ci, co] with
    kw = w_in - w + K//2, and zero whenever kw falls outside [0, K).  The zero
    band entries implement the conv's 'SAME' zero padding along W for free, so
    the activations never need W padding or channel padding.
    """
    pad = K // 2
    w5 = w_taps.reshape(K, K, K, cin, cout).astype(jnp.float32)
    w_in = jnp.arange(W)[:, None]
    w_out = jnp.arange(W)[None, :]
    kw = w_in - w_out + pad                                   # (W, W)
    valid = ((kw >= 0) & (kw < K)).astype(jnp.float32)
    g = jnp.take(w5, jnp.clip(kw, 0, K - 1), axis=2)          # (K, K, W, W, ci, co)
    g = g * valid[None, None, :, :, None, None]
    band = jnp.transpose(g, (0, 1, 2, 4, 3, 5)).reshape(K * K, W * cin, W * cout)
    return band.astype(jnp.bfloat16)


# ---------------------------------------------------------------------------
# Pass 1 kernel: [optional fused prev-stage norm+lrelu] -> conv -> partial stats
# ---------------------------------------------------------------------------

def _conv_stats_kernel(*refs, K, td, H, W, cin, cout, prenorm, slope, dpad_last):
    """One (batch, D-tile) grid step.

    refs (prenorm=False): xh, w_band, y, ssum, ssq
    refs (prenorm=True) : xh, w_band, scale, shift, y, ssum, ssq

    xh   : (1, 1, td+K-1, Hp, W*cin) bf16 halo'd window (overlapping windows,
           auto-pipelined by BlockSpec)
    w    : (K*K, W*cin, W*cout) bf16 banded weights
    y    : (1, td, H, W*cout) bf16 un-normalized conv output tile
    ssum / ssq : (1, 1, 1, W*cout) f32 per-tile partial sums for InstanceNorm
    """
    if prenorm:
        xh_ref, w_ref, sc_ref, sh_ref, y_ref, ssum_ref, ssq_ref = refs
    else:
        xh_ref, w_ref, y_ref, ssum_ref, ssq_ref = refs

    L_in = W * cin
    L_out = W * cout
    Hp = H + K - 1
    rows = td * H
    dt = pl.program_id(1)

    if prenorm:
        # Fused InstanceNorm of the PREVIOUS stage (scale/shift precomputed per
        # (n, c), tiled over W) + LeakyReLU, applied right after the fetch.
        xt = xh_ref[0, 0].astype(jnp.float32)                 # (td+K-1, Hp, L_in)
        z = xt * sc_ref[...] + sh_ref[...]
        z = jnp.where(z >= 0, z, slope * z)
        # 'SAME' padding must stay exactly zero *after* normalization.
        d_idx = dt * td + lax.broadcasted_iota(jnp.int32, z.shape, 0)
        h_idx = lax.broadcasted_iota(jnp.int32, z.shape, 1)
        is_pad = ((d_idx == 0) | (d_idx == dpad_last) |
                  (h_idx == 0) | (h_idx == Hp - 1))
        xn = jnp.where(is_pad, 0.0, z).astype(jnp.bfloat16)

        def slab(kd, kh):
            return xn[kd:kd + td, kh:kh + H, :].reshape(rows, L_in)
    else:
        def slab(kd, kh):
            return xh_ref[0, 0, kd:kd + td, kh:kh + H, :].reshape(rows, L_in)

    # 3x3x3 conv = 9 accumulating dense MXU matmuls over the folded lane axis
    # (kw taps + W 'SAME' padding live inside the banded weights).
    acc = None
    for kd in range(K):
        for kh in range(K):
            part = jnp.dot(slab(kd, kh), w_ref[kd * K + kh],
                           preferred_element_type=jnp.float32)
            acc = part if acc is None else acc + part

    y_ref[...] = acc.reshape(1, td, H, L_out).astype(y_ref.dtype)

    # Per-tile partial stats (combined in the host glue) -> no revisited
    # accumulator block, so both grid axes stay 'parallel' (v7x megacore).
    ssum_ref[...] = jnp.sum(acc, axis=0).reshape(1, 1, 1, L_out)
    ssq_ref[...] = jnp.sum(acc * acc, axis=0).reshape(1, 1, 1, L_out)


def _instance_scale_shift(ssum, ssq, W, cout, count, eps):
    """Per-(n, c) InstanceNorm stats from per-D-tile partial sums, returned as a
    fused (scale, shift) pair tiled over W for the folded (w, c) lane layout."""
    N = ssum.shape[0]
    s_c = ssum.reshape(N, -1, W, cout).sum(axis=(1, 2))       # (N, cout)
    q_c = ssq.reshape(N, -1, W, cout).sum(axis=(1, 2))
    mean = s_c / count
    # Biased variance, exactly as nn.InstanceNorm3d(affine=False).
    # TODO(synk): use per-tile centered (Welford-style) partial stats for very
    # large volumes; one-pass E[x^2]-E[x]^2 in f32 is fine at <=10^6 voxels.
    var = jnp.maximum(q_c / count - mean * mean, 0.0)
    rstd = lax.rsqrt(var + eps)
    scale_c = rstd
    shift_c = -mean * rstd
    scale = jnp.broadcast_to(scale_c[:, None, :], (N, W, cout)).reshape(N, 1, W * cout)
    shift = jnp.broadcast_to(shift_c[:, None, :], (N, W, cout)).reshape(N, 1, W * cout)
    return scale, shift


def conv_stage(x, w_taps, cin, cout, *, prenorm, pre_scale=None, pre_shift=None,
               slope=0.01, eps=1e-5, K=3):
    """Conv3d(KxKxK, 'SAME', bias folded away) over a (W, C)-folded tensor.

    x : (N, D, H, W*cin) bf16.  If `prenorm`, x is the *un-normalized* previous
        conv output and the previous stage's InstanceNorm+LeakyReLU
        (pre_scale / pre_shift) is fused into this kernel.
    Returns y (N, D, H, W*cout) bf16 un-normalized conv output plus this
    stage's (scale, shift), each (N, 1, W*cout) f32 (y_norm = y*scale + shift).
    """
    N, D, H, L_in = x.shape
    assert L_in == W_fold(cin, L_in) * cin
    W = L_in // cin
    L_out = W * cout
    pad = K // 2
    halo = K - 1
    Hp = H + halo
    Dp = D + halo

    w_band = _pack_band(w_taps, W, cin, cout, K)              # (K*K, L_in, L_out)

    vmem = _vmem_capacity_bytes()
    td = _pick_d_tile(D, H, Hp, L_in, L_out, K, budget_bytes=vmem // 4)
    n_dt = D // td

    # One bf16 pad along D/H (W padding is inside the banded weights, channel
    # padding does not exist in this layout).
    x_pad = jnp.pad(x.astype(jnp.bfloat16),
                    ((0, 0), (pad, pad), (pad, pad), (0, 0)))

    # Overlapping halo windows so plain BlockSpec pipelining overlaps the halo
    # fetch with compute while keeping both grid axes 'parallel'.
    if n_dt == 1:
        xh = x_pad[:, None]
    else:
        xh = jnp.stack([x_pad[:, i * td:i * td + td + halo] for i in range(n_dt)],
                       axis=1)
    # TODO(synk): for large D the (td+halo)/td window duplication should be
    # replaced by a manually double-buffered halo DMA (pl.ANY + make_async_copy).

    kernel = functools.partial(
        _conv_stats_kernel, K=K, td=td, H=H, W=W, cin=cin, cout=cout,
        prenorm=prenorm, slope=slope, dpad_last=Dp - 1)

    in_specs = [
        pl.BlockSpec((1, 1, td + halo, Hp, L_in), lambda n, d: (n, d, 0, 0, 0)),
        pl.BlockSpec((K * K, L_in, L_out), lambda n, d: (0, 0, 0)),
    ]
    args = [xh, w_band]
    if prenorm:
        in_specs += [pl.BlockSpec((1, 1, L_in), lambda n, d: (n, 0, 0)),
                     pl.BlockSpec((1, 1, L_in), lambda n, d: (n, 0, 0))]
        args += [pre_scale, pre_shift]

    y, ssum, ssq = pl.pallas_call(
        kernel,
        out_shape=(
            jax.ShapeDtypeStruct((N, D, H, L_out), jnp.bfloat16),
            jax.ShapeDtypeStruct((N, n_dt, 1, L_out), jnp.float32),
            jax.ShapeDtypeStruct((N, n_dt, 1, L_out), jnp.float32),
        ),
        grid_spec=pltpu.PrefetchScalarGridSpec(
            num_scalar_prefetch=0,
            grid=(N, n_dt),
            in_specs=in_specs,
            out_specs=(
                pl.BlockSpec((1, td, H, L_out), lambda n, d: (n, d, 0, 0)),
                pl.BlockSpec((1, 1, 1, L_out), lambda n, d: (n, d, 0, 0)),
                pl.BlockSpec((1, 1, 1, L_out), lambda n, d: (n, d, 0, 0)),
            ),
        ),
        compiler_params=pltpu.CompilerParams(
            dimension_semantics=("parallel", "parallel"),
            vmem_limit_bytes=int(min(vmem * 3 // 4, 112 << 20))),
    )(*args)

    scale, shift = _instance_scale_shift(ssum, ssq, W, cout, D * H * W, eps)
    return y, scale, shift


def W_fold(cin, L_in):
    assert L_in % cin == 0
    return L_in // cin


# ---------------------------------------------------------------------------
# Final standalone InstanceNorm-apply + LeakyReLU (only for the last stage)
# ---------------------------------------------------------------------------

def _norm_lrelu_kernel(y_ref, sc_ref, sh_ref, o_ref, *, slope):
    z = y_ref[...].astype(jnp.float32) * sc_ref[...] + sh_ref[...]
    o_ref[...] = jnp.where(z >= 0, z, slope * z).astype(o_ref.dtype)


def norm_lrelu(y, scale, shift, *, slope=0.01, out_dtype=jnp.float32):
    """Normalize + LeakyReLU over large lane-dense (rows, W*C) row tiles,
    decoupled from the conv's D-tile size (mem-bound pass wants big tiles)."""
    N, D, H, L = y.shape
    R = D * H
    max_rows = max(8, (4 << 20) // (L * 8))
    rt = R
    if R > max_rows:
        best = None
        t = 8
        while t <= max_rows:
            if R % t == 0:
                best = t
            t += 8
        rt = best if best is not None else R

    out = pl.pallas_call(
        functools.partial(_norm_lrelu_kernel, slope=slope),
        out_shape=jax.ShapeDtypeStruct((N, R, L), out_dtype),
        grid_spec=pltpu.PrefetchScalarGridSpec(
            num_scalar_prefetch=0,
            grid=(N, R // rt),
            in_specs=[pl.BlockSpec((1, rt, L), lambda n, r: (n, r, 0)),
                      pl.BlockSpec((1, 1, L), lambda n, r: (n, 0, 0)),
                      pl.BlockSpec((1, 1, L), lambda n, r: (n, 0, 0))],
            out_specs=pl.BlockSpec((1, rt, L), lambda n, r: (n, r, 0)),
        ),
        compiler_params=pltpu.CompilerParams(
            dimension_semantics=("parallel", "parallel")),
    )(y.reshape(N, R, L), scale, shift)
    return out.reshape(N, D, H, L)


# ---------------------------------------------------------------------------
# Module wrapper + synthetic params
# ---------------------------------------------------------------------------

def init_conv_params(key, cin, cout, K=3, dtype=jnp.float32):
    """Synthetic Conv3d params, tap-major (K^3, cin, cout) layout with
    tap = kd*K*K + kh*K + kw  (PyTorch: w_taps[tap, ci, co] = weight[co, ci, kd, kh, kw])."""
    k_w, k_b = jax.random.split(key)
    fan_in = cin * K ** 3
    bound = 1.0 / (fan_in ** 0.5)
    w = jax.random.uniform(k_w, (K ** 3, cin, cout), dtype, -bound, bound)
    b = jax.random.uniform(k_b, (cout,), dtype, -bound, bound)
    return w, b


def unet_conv_block_3d(x_ncdhw, params, *, K=3, eps=1e-5, slope=0.01):
    """UNetConvBlock3D (flag='encoder') forward.  Input/output in NCDHW."""
    (w1, _b1), (w2, _b2) = params
    # Conv biases are intentionally unused: InstanceNorm3d(affine=False)
    # subtracts the per-(n, c) mean right after each conv, so the bias is an
    # exact mathematical no-op (true of the PyTorch module as well).
    cin, cmid = w1.shape[1], w1.shape[2]
    cout = w2.shape[2]
    N, Cx, D, H, W = x_ncdhw.shape
    assert Cx == cin

    # NCDHW -> NDH(W*C): fold width and channels into the lane axis, bf16.
    # bf16 activations/weights here give ~1e-2 relative divergence vs. f32
    # PyTorch Conv3d; the InstanceNorm statistics and all normalization math
    # stay in f32.
    x = jnp.transpose(x_ncdhw, (0, 2, 3, 4, 1)).reshape(N, D, H, W * cin)
    x = x.astype(jnp.bfloat16)

    # Stage 1: conv only (its InstanceNorm + LeakyReLU is fused into stage 2).
    y1, sc1, sh1 = conv_stage(x, w1, cin, cmid, prenorm=False,
                              slope=slope, eps=eps, K=K)
    # Stage 2: fused [norm1 + lrelu] -> conv2 -> partial stats.
    y2, sc2, sh2 = conv_stage(y1, w2, cmid, cout, prenorm=True,
                              pre_scale=sc1, pre_shift=sh1,
                              slope=slope, eps=eps, K=K)
    # Final standalone InstanceNorm-apply + LeakyReLU.
    out = norm_lrelu(y2, sc2, sh2, slope=slope, out_dtype=x_ncdhw.dtype)

    out = out.reshape(N, D, H, W, cout)
    return jnp.transpose(out, (0, 4, 1, 2, 3))                # -> NCDHW


if __name__ == "__main__":
    key = jax.random.PRNGKey(0)
    k_x, k_p1, k_p2 = jax.random.split(key, 3)

    # Encoder block: in_channels=4, out_channels=8, spatial 16^3, batch 2.
    N, Cin, Cout, D, H, W = 2, 4, 8, 16, 16, 16
    Cmid = Cout // 2

    x = jax.random.normal(k_x, (N, Cin, D, H, W), dtype=jnp.float32)
    params = (init_conv_params(k_p1, Cin, Cmid),
              init_conv_params(k_p2, Cmid, Cout))

    out = jax.jit(unet_conv_block_3d)(x, params)
    jax.block_until_ready(out)
    assert out.shape == (N, Cout, D, H, W)
    assert bool(jnp.all(jnp.isfinite(out)))
    print("KERNEL_OK")
</pallas_src>

<mosaic_0001>
module attributes {stable_mosaic.version = 11 : i64} {
  func.func @_conv_stats_kernel(%arg0: i32, %arg1: i32, %arg2: memref<1x1x18x18x64xbf16, #tpu.memory_space<vmem>>, %arg3: memref<9x64x64xbf16, #tpu.memory_space<vmem>>, %arg4: memref<1x16x16x64xbf16, #tpu.memory_space<vmem>>, %arg5: memref<1x1x1x64xf32, #tpu.memory_space<vmem>>, %arg6: memref<1x1x1x64xf32, #tpu.memory_space<vmem>>) attributes {dimension_semantics = [#tpu.dimension_semantics<parallel>, #tpu.dimension_semantics<parallel>], iteration_bounds = array<i64: 2, 1>, scalar_prefetch = 0 : i64, scratch_operands = 0 : i64, tpu.core_type = #tpu.core_type<tc>, window_params = [{transform_indices = @transform_0, window_bounds = array<i64: 1, 1, 18, 18, 64>}, {pipeline_mode = #tpu.pipeline_mode<synchronous>, transform_indices = @transform_1, window_bounds = array<i64: 9, 64, 64>}, {transform_indices = @transform_2, window_bounds = array<i64: 1, 16, 16, 64>}, {transform_indices = @transform_3, window_bounds = array<i64: 1, 1, 1, 64>}, {transform_indices = @transform_4, window_bounds = array<i64: 1, 1, 1, 64>}]} {
    %c0 = arith.constant 0 : index
    %c0_0 = arith.constant 0 : index
    %c0_1 = arith.constant 0 : index
    %c0_2 = arith.constant 0 : index
    %c0_3 = arith.constant 0 : index
    %0 = vector.load %arg2[%c0, %c0_0, %c0_1, %c0_2, %c0_3] : memref<1x1x18x18x64xbf16, #tpu.memory_space<vmem>>, vector<1x1x16x16x64xbf16>
    %1 = vector.shape_cast %0 : vector<1x1x16x16x64xbf16> to vector<16x16x64xbf16>
    %2 = vector.shape_cast %1 : vector<16x16x64xbf16> to vector<256x64xbf16>
    %c0_4 = arith.constant 0 : index
    %c0_5 = arith.constant 0 : index
    %c0_6 = arith.constant 0 : index
    %3 = vector.load %arg3[%c0_4, %c0_5, %c0_6] : memref<9x64x64xbf16, #tpu.memory_space<vmem>>, vector<1x64x64xbf16>
    %4 = vector.shape_cast %3 : vector<1x64x64xbf16> to vector<64x64xbf16>
    %cst = arith.constant dense<0.000000e+00> : vector<256x64xf32>
    %5 = tpu.matmul %2, %4, %cst {dimension_numbers = #tpu.dot_dimension_numbers<[1], [0], [0], [1], [0, 0, 1, 1], [], []>} : vector<256x64xbf16>, vector<64x64xbf16>, vector<256x64xf32> -> vector<256x64xf32>
    %c0_7 = arith.constant 0 : index
    %c0_8 = arith.constant 0 : index
    %c0_9 = arith.constant 0 : index
    %c1 = arith.constant 1 : index
    %c0_10 = arith.constant 0 : index
    %6 = vector.load %arg2[%c0_7, %c0_8, %c0_9, %c1, %c0_10] : memref<1x1x18x18x64xbf16, #tpu.memory_space<vmem>>, vector<1x1x16x16x64xbf16>
    %7 = vector.shape_cast %6 : vector<1x1x16x16x64xbf16> to vector<16x16x64xbf16>
    %8 = vector.shape_cast %7 : vector<16x16x64xbf16> to vector<256x64xbf16>
    %c1_11 = arith.constant 1 : index
    %c0_12 = arith.constant 0 : index
    %c0_13 = arith.constant 0 : index
    %9 = vector.load %arg3[%c1_11, %c0_12, %c0_13] : memref<9x64x64xbf16, #tpu.memory_space<vmem>>, vector<1x64x64xbf16>
    %10 = vector.shape_cast %9 : vector<1x64x64xbf16> to vector<64x64xbf16>
    %cst_14 = arith.constant dense<0.000000e+00> : vector<256x64xf32>
    %11 = tpu.matmul %8, %10, %cst_14 {dimension_numbers = #tpu.dot_dimension_numbers<[1], [0], [0], [1], [0, 0, 1, 1], [], []>} : vector<256x64xbf16>, vector<64x64xbf16>, vector<256x64xf32> -> vector<256x64xf32>
    %12 = arith.addf %5, %11 : vector<256x64xf32>
    %c0_15 = arith.constant 0 : index
    %c0_16 = arith.constant 0 : index
    %c0_17 = arith.constant 0 : index
    %c2 = arith.constant 2 : index
    %c0_18 = arith.constant 0 : index
    %13 = vector.load %arg2[%c0_15, %c0_16, %c0_17, %c2, %c0_18] : memref<1x1x18x18x64xbf16, #tpu.memory_space<vmem>>, vector<1x1x16x16x64xbf16>
    %14 = vector.shape_cast %13 : vector<1x1x16x16x64xbf16> to vector<16x16x64xbf16>
    %15 = vector.shape_cast %14 : vector<16x16x64xbf16> to vector<256x64xbf16>
    %c2_19 = arith.constant 2 : index
    %c0_20 = arith.constant 0 : index
    %c0_21 = arith.constant 0 : index
    %16 = vector.load %arg3[%c2_19, %c0_20, %c0_21] : memref<9x64x64xbf16, #tpu.memory_space<vmem>>, vector<1x64x64xbf16>
    %17 = vector.shape_cast %16 : vector<1x64x64xbf16> to vector<64x64xbf16>
    %cst_22 = arith.constant dense<0.000000e+00> : vector<256x64xf32>
    %18 = tpu.matmul %15, %17, %cst_22 {dimension_numbers = #tpu.dot_dimension_numbers<[1], [0], [0], [1], [0, 0, 1, 1], [], []>} : vector<256x64xbf16>, vector<64x64xbf16>, vector<256x64xf32> -> vector<256x64xf32>
    %19 = arith.addf %12, %18 : vector<256x64xf32>
    %c0_23 = arith.constant 0 : index
    %c0_24 = arith.constant 0 : index
    %c1_25 = arith.constant 1 : index
    %c0_26 = arith.constant 0 : index
    %c0_27 = arith.constant 0 : index
    %20 = vector.load %arg2[%c0_23, %c0_24, %c1_25, %c0_26, %c0_27] : memref<1x1x18x18x64xbf16, #tpu.memory_space<vmem>>, vector<1x1x16x16x64xbf16>
    %21 = vector.shape_cast %20 : vector<1x1x16x16x64xbf16> to vector<16x16x64xbf16>
    %22 = vector.shape_cast %21 : vector<16x16x64xbf16> to vector<256x64xbf16>
    %c3 = arith.constant 3 : index
    %c0_28 = arith.constant 0 : index
    %c0_29 = arith.constant 0 : index
    %23 = vector.load %arg3[%c3, %c0_28, %c0_29] : memref<9x64x64xbf16, #tpu.memory_space<vmem>>, vector<1x64x64xbf16>
    %24 = vector.shape_cast %23 : vector<1x64x64xbf16> to vector<64x64xbf16>
    %cst_30 = arith.constant dense<0.000000e+00> : vector<256x64xf32>
    %25 = tpu.matmul %22, %24, %cst_30 {dimension_numbers = #tpu.dot_dimension_numbers<[1], [0], [0], [1], [0, 0, 1, 1], [], []>} : vector<256x64xbf16>, vector<64x64xbf16>, vector<256x64xf32> -> vector<256x64xf32>
    %26 = arith.addf %19, %25 : vector<256x64xf32>
    %c0_31 = arith.constant 0 : index
    %c0_32 = arith.constant 0 : index
    %c1_33 = arith.constant 1 : index
    %c1_34 = arith.constant 1 : index
    %c0_35 = arith.constant 0 : index
    %27 = vector.load %arg2[%c0_31, %c0_32, %c1_33, %c1_34, %c0_35] : memref<1x1x18x18x64xbf16, #tpu.memory_space<vmem>>, vector<1x1x16x16x64xbf16>
    %28 = vector.shape_cast %27 : vector<1x1x16x16x64xbf16> to vector<16x16x64xbf16>
    %29 = vector.shape_cast %28 : vector<16x16x64xbf16> to vector<256x64xbf16>
    %c4 = arith.constant 4 : index
    %c0_36 = arith.constant 0 : index
    %c0_37 = arith.constant 0 : index
    %30 = vector.load %arg3[%c4, %c0_36, %c0_37] : memref<9x64x64xbf16, #tpu.memory_space<vmem>>, vector<1x64x64xbf16>
    %31 = vector.shape_cast %30 : vector<1x64x64xbf16> to vector<64x64xbf16>
    %cst_38 = arith.constant dense<0.000000e+00> : vector<256x64xf32>
    %32 = tpu.matmul %29, %31, %cst_38 {dimension_numbers = #tpu.dot_dimension_numbers<[1], [0], [0], [1], [0, 0, 1, 1], [], []>} : vector<256x64xbf16>, vector<64x64xbf16>, vector<256x64xf32> -> vector<256x64xf32>
    %33 = arith.addf %26, %32 : vector<256x64xf32>
    %c0_39 = arith.constant 0 : index
    %c0_40 = arith.constant 0 : index
    %c1_41 = arith.constant 1 : index
    %c2_42 = arith.constant 2 : index
    %c0_43 = arith.constant 0 : index
    %34 = vector.load %arg2[%c0_39, %c0_40, %c1_41, %c2_42, %c0_43] : memref<1x1x18x18x64xbf16, #tpu.memory_space<vmem>>, vector<1x1x16x16x64xbf16>
    %35 = vector.shape_cast %34 : vector<1x1x16x16x64xbf16> to vector<16x16x64xbf16>
    %36 = vector.shape_cast %35 : vector<16x16x64xbf16> to vector<256x64xbf16>
    %c5 = arith.constant 5 : index
    %c0_44 = arith.constant 0 : index
    %c0_45 = arith.constant 0 : index
    %37 = vector.load %arg3[%c5, %c0_44, %c0_45] : memref<9x64x64xbf16, #tpu.memory_space<vmem>>, vector<1x64x64xbf16>
    %38 = vector.shape_cast %37 : vector<1x64x64xbf16> to vector<64x64xbf16>
    %cst_46 = arith.constant dense<0.000000e+00> : vector<256x64xf32>
    %39 = tpu.matmul %36, %38, %cst_46 {dimension_numbers = #tpu.dot_dimension_numbers<[1], [0], [0], [1], [0, 0, 1, 1], [], []>} : vector<256x64xbf16>, vector<64x64xbf16>, vector<256x64xf32> -> vector<256x64xf32>
    %40 = arith.addf %33, %39 : vector<256x64xf32>
    %c0_47 = arith.constant 0 : index
    %c0_48 = arith.constant 0 : index
    %c2_49 = arith.constant 2 : index
    %c0_50 = arith.constant 0 : index
    %c0_51 = arith.constant 0 : index
    %41 = vector.load %arg2[%c0_47, %c0_48, %c2_49, %c0_50, %c0_51] : memref<1x1x18x18x64xbf16, #tpu.memory_space<vmem>>, vector<1x1x16x16x64xbf16>
    %42 = vector.shape_cast %41 : vector<1x1x16x16x64xbf16> to vector<16x16x64xbf16>
    %43 = vector.shape_cast %42 : vector<16x16x64xbf16> to vector<256x64xbf16>
    %c6 = arith.constant 6 : index
    %c0_52 = arith.constant 0 : index
    %c0_53 = arith.constant 0 : index
    %44 = vector.load %arg3[%c6, %c0_52, %c0_53] : memref<9x64x64xbf16, #tpu.memory_space<vmem>>, vector<1x64x64xbf16>
    %45 = vector.shape_cast %44 : vector<1x64x64xbf16> to vector<64x64xbf16>
    %cst_54 = arith.constant dense<0.000000e+00> : vector<256x64xf32>
    %46 = tpu.matmul %43, %45, %cst_54 {dimension_numbers = #tpu.dot_dimension_numbers<[1], [0], [0], [1], [0, 0, 1, 1], [], []>} : vector<256x64xbf16>, vector<64x64xbf16>, vector<256x64xf32> -> vector<256x64xf32>
    %47 = arith.addf %40, %46 : vector<256x64xf32>
    %c0_55 = arith.constant 0 : index
    %c0_56 = arith.constant 0 : index
    %c2_57 = arith.constant 2 : index
    %c1_58 = arith.constant 1 : index
    %c0_59 = arith.constant 0 : index
    %48 = vector.load %arg2[%c0_55, %c0_56, %c2_57, %c1_58, %c0_59] : memref<1x1x18x18x64xbf16, #tpu.memory_space<vmem>>, vector<1x1x16x16x64xbf16>
    %49 = vector.shape_cast %48 : vector<1x1x16x16x64xbf16> to vector<16x16x64xbf16>
    %50 = vector.shape_cast %49 : vector<16x16x64xbf16> to vector<256x64xbf16>
    %c7 = arith.constant 7 : index
    %c0_60 = arith.constant 0 : index
    %c0_61 = arith.constant 0 : index
    %51 = vector.load %arg3[%c7, %c0_60, %c0_61] : memref<9x64x64xbf16, #tpu.memory_space<vmem>>, vector<1x64x64xbf16>
    %52 = vector.shape_cast %51 : vector<1x64x64xbf16> to vector<64x64xbf16>
    %cst_62 = arith.constant dense<0.000000e+00> : vector<256x64xf32>
    %53 = tpu.matmul %50, %52, %cst_62 {dimension_numbers = #tpu.dot_dimension_numbers<[1], [0], [0], [1], [0, 0, 1, 1], [], []>} : vector<256x64xbf16>, vector<64x64xbf16>, vector<256x64xf32> -> vector<256x64xf32>
    %54 = arith.addf %47, %53 : vector<256x64xf32>
    %c0_63 = arith.constant 0 : index
    %c0_64 = arith.constant 0 : index
    %c2_65 = arith.constant 2 : index
    %c2_66 = arith.constant 2 : index
    %c0_67 = arith.constant 0 : index
    %55 = vector.load %arg2[%c0_63, %c0_64, %c2_65, %c2_66, %c0_67] : memref<1x1x18x18x64xbf16, #tpu.memory_space<vmem>>, vector<1x1x16x16x64xbf16>
    %56 = vector.shape_cast %55 : vector<1x1x16x16x64xbf16> to vector<16x16x64xbf16>
    %57 = vector.shape_cast %56 : vector<16x16x64xbf16> to vector<256x64xbf16>
    %c8 = arith.constant 8 : index
    %c0_68 = arith.constant 0 : index
    %c0_69 = arith.constant 0 : index
    %58 = vector.load %arg3[%c8, %c0_68, %c0_69] : memref<9x64x64xbf16, #tpu.memory_space<vmem>>, vector<1x64x64xbf16>
    %59 = vector.shape_cast %58 : vector<1x64x64xbf16> to vector<64x64xbf16>
    %cst_70 = arith.constant dense<0.000000e+00> : vector<256x64xf32>
    %60 = tpu.matmul %57, %59, %cst_70 {dimension_numbers = #tpu.dot_dimension_numbers<[1], [0], [0], [1], [0, 0, 1, 1], [], []>} : vector<256x64xbf16>, vector<64x64xbf16>, vector<256x64xf32> -> vector<256x64xf32>
    %61 = arith.addf %54, %60 : vector<256x64xf32>
    %62 = vector.shape_cast %61 : vector<256x64xf32> to vector<1x16x16x64xf32>
    %63 = arith.truncf %62 : vector<1x16x16x64xf32> to vector<1x16x16x64xbf16>
    %c0_71 = arith.constant 0 : index
    %c0_72 = arith.constant 0 : index
    %c0_73 = arith.constant 0 : index
    %c0_74 = arith.constant 0 : index
    %64 = vector.load %arg4[%c0_71, %c0_72, %c0_73, %c0_74] : memref<1x16x16x64xbf16, #tpu.memory_space<vmem>>, vector<1x16x16x64xbf16>
    tpu.vector_store %arg4[%c0_71, %c0_72, %c0_73, %c0_74], %63 {strides = array<i32>} : memref<1x16x16x64xbf16, #tpu.memory_space<vmem>>, vector<1x16x16x64xbf16>,
    %cst_75 = arith.constant dense<0.000000e+00> : vector<64xf32>
    %65 = vector.multi_reduction <add>, %61, %cst_75 [0] : vector<256x64xf32> to vector<64xf32>
    %66 = vector.shape_cast %65 : vector<64xf32> to vector<1x1x1x64xf32>
    %c0_76 = arith.constant 0 : index
    %c0_77 = arith.constant 0 : index
    %c0_78 = arith.constant 0 : index
    %c0_79 = arith.constant 0 : index
    %67 = vector.load %arg5[%c0_76, %c0_77, %c0_78, %c0_79] : memref<1x1x1x64xf32, #tpu.memory_space<vmem>>, vector<1x1x1x64xf32>
    tpu.vector_store %arg5[%c0_76, %c0_77, %c0_78, %c0_79], %66 {strides = array<i32>} : memref<1x1x1x64xf32, #tpu.memory_space<vmem>>, vector<1x1x1x64xf32>,
    %68 = arith.mulf %61, %61 : vector<256x64xf32>
    %cst_80 = arith.constant dense<0.000000e+00> : vector<64xf32>
    %69 = vector.multi_reduction <add>, %68, %cst_80 [0] : vector<256x64xf32> to vector<64xf32>
    %70 = vector.shape_cast %69 : vector<64xf32> to vector<1x1x1x64xf32>
    %c0_81 = arith.constant 0 : index
    %c0_82 = arith.constant 0 : index
    %c0_83 = arith.constant 0 : index
    %c0_84 = arith.constant 0 : index
    %71 = vector.load %arg6[%c0_81, %c0_82, %c0_83, %c0_84] : memref<1x1x1x64xf32, #tpu.memory_space<vmem>>, vector<1x1x1x64xf32>
    tpu.vector_store %arg6[%c0_81, %c0_82, %c0_83, %c0_84], %70 {strides = array<i32>} : memref<1x1x1x64xf32, #tpu.memory_space<vmem>>, vector<1x1x1x64xf32>,
    return
  }
  func.func @transform_0(%arg0: i32, %arg1: i32) -> (i32, i32, i32, i32, i32) {
    %c0_i32 = arith.constant 0 : i32
    %c0_i32_0 = arith.constant 0 : i32
    %c0_i32_1 = arith.constant 0 : i32
    %c0_i32_2 = arith.constant 0 : i32
    return %arg0, %arg1, %c0_i32, %c0_i32_0, %c0_i32_1 : i32, i32, i32, i32, i32
  }
  func.func @transform_1(%arg0: i32, %arg1: i32) -> (i32, i32, i32) {
    %c0_i32 = arith.constant 0 : i32
    %c0_i32_0 = arith.constant 0 : i32
    %c0_i32_1 = arith.constant 0 : i32
    %c0_i32_2 = arith.constant 0 : i32
    return %c0_i32, %c0_i32_0, %c0_i32_1 : i32, i32, i32
  }
  func.func @transform_2(%arg0: i32, %arg1: i32) -> (i32, i32, i32, i32) {
    %c0_i32 = arith.constant 0 : i32
    %c0_i32_0 = arith.constant 0 : i32
    %c0_i32_1 = arith.constant 0 : i32
    return %arg0, %arg1, %c0_i32, %c0_i32_0 : i32, i32, i32, i32
  }
  func.func @transform_3(%arg0: i32, %arg1: i32) -> (i32, i32, i32, i32) {
    %c0_i32 = arith.constant 0 : i32
    %c0_i32_0 = arith.constant 0 : i32
    %c0_i32_1 = arith.constant 0 : i32
    return %arg0, %arg1, %c0_i32, %c0_i32_0 : i32, i32, i32, i32
  }
  func.func @transform_4(%arg0: i32, %arg1: i32) -> (i32, i32, i32, i32) {
    %c0_i32 = arith.constant 0 : i32
    %c0_i32_0 = arith.constant 0 : i32
    %c0_i32_1 = arith.constant 0 : i32
    return %arg0, %arg1, %c0_i32, %c0_i32_0 : i32, i32, i32, i32
  }
}

module attributes {stable_mosaic.version = 11 : i64} {
  func.func @_conv_stats_kernel(%arg0: i32, %arg1: i32, %arg2: memref<1x1x18x18x64xbf16, #tpu.memory_space<vmem>>, %arg3: memref<9x64x128xbf16, #tpu.memory_space<vmem>>, %arg4: memref<1x1x64xf32, #tpu.memory_space<vmem>>, %arg5: memref<1x1x64xf32, #tpu.memory_space<vmem>>, %arg6: memref<1x16x16x128xbf16, #tpu.memory_space<vmem>>, %arg7: memref<1x1x1x128xf32, #tpu.memory_space<vmem>>, %arg8: memref<1x1x1x128xf32, #tpu.memory_space<vmem>>) attributes {dimension_semantics = [#tpu.dimension_semantics<parallel>, #tpu.dimension_semantics<parallel>], iteration_bounds = array<i64: 2, 1>, scalar_prefetch = 0 : i64, scratch_operands = 0 : i64, tpu.core_type = #tpu.core_type<tc>, window_params = [{transform_indices = @transform_0, window_bounds = array<i64: 1, 1, 18, 18, 64>}, {pipeline_mode = #tpu.pipeline_mode<synchronous>, transform_indices = @transform_1, window_bounds = array<i64: 9, 64, 128>}, {transform_indices = @transform_2, window_bounds = array<i64: 1, 1, 64>}, {transform_indices = @transform_3, window_bounds = array<i64: 1, 1, 64>}, {transform_indices = @transform_4, window_bounds = array<i64: 1, 16, 16, 128>}, {transform_indices = @transform_5, window_bounds = array<i64: 1, 1, 1, 128>}, {transform_indices = @transform_6, window_bounds = array<i64: 1, 1, 1, 128>}]} {
    %c0 = arith.constant 0 : index
    %c0_0 = arith.constant 0 : index
    %c0_1 = arith.constant 0 : index
    %c0_2 = arith.constant 0 : index
    %c0_3 = arith.constant 0 : index
    %0 = vector.load %arg2[%c0, %c0_0, %c0_1, %c0_2, %c0_3] : memref<1x1x18x18x64xbf16, #tpu.memory_space<vmem>>, vector<1x1x18x18x64xbf16>
    %1 = vector.shape_cast %0 : vector<1x1x18x18x64xbf16> to vector<18x18x64xbf16>
    %2 = arith.extf %1 : vector<18x18x64xbf16> to vector<18x18x64xf32>
    %c0_4 = arith.constant 0 : index
    %c0_5 = arith.constant 0 : index
    %c0_6 = arith.constant 0 : index
    %3 = vector.load %arg4[%c0_4, %c0_5, %c0_6] : memref<1x1x64xf32, #tpu.memory_space<vmem>>, vector<1x1x64xf32>
    %4 = vector.broadcast %3 : vector<1x1x64xf32> to vector<18x18x64xf32>
    %5 = arith.mulf %2, %4 : vector<18x18x64xf32>
    %c0_7 = arith.constant 0 : index
    %c0_8 = arith.constant 0 : index
    %c0_9 = arith.constant 0 : index
    %6 = vector.load %arg5[%c0_7, %c0_8, %c0_9] : memref<1x1x64xf32, #tpu.memory_space<vmem>>, vector<1x1x64xf32>
    %7 = vector.broadcast %6 : vector<1x1x64xf32> to vector<18x18x64xf32>
    %8 = arith.addf %5, %7 : vector<18x18x64xf32>
    %cst = arith.constant 0.000000e+00 : f32
    %9 = vector.broadcast %cst : f32 to vector<18x18x64xf32>
    %10 = arith.cmpf oge, %8, %9 : vector<18x18x64xf32>
    %cst_10 = arith.constant 0.00999999977 : f32
    %11 = vector.broadcast %cst_10 : f32 to vector<18x18x64xf32>
    %12 = arith.mulf %11, %8 : vector<18x18x64xf32>
    %13 = arith.select %10, %8, %12 : vector<18x18x64xi1>, vector<18x18x64xf32>
    %c16_i32 = arith.constant 16 : i32
    %14 = arith.muli %arg1, %c16_i32 : i32
    %15 = tpu.iota {dimensions = array<i32: 0>} : vector<18x18x64xi32>
    %16 = vector.broadcast %14 : i32 to vector<18x18x64xi32>
    %17 = arith.addi %16, %15 : vector<18x18x64xi32>
    %18 = tpu.iota {dimensions = array<i32: 1>} : vector<18x18x64xi32>
    %c0_i32 = arith.constant 0 : i32
    %19 = vector.broadcast %c0_i32 : i32 to vector<18x18x64xi32>
    %20 = arith.cmpi eq, %17, %19 : vector<18x18x64xi32>
    %c17_i32 = arith.constant 17 : i32
    %21 = vector.broadcast %c17_i32 : i32 to vector<18x18x64xi32>
    %22 = arith.cmpi eq, %17, %21 : vector<18x18x64xi32>
    %23 = arith.ori %20, %22 : vector<18x18x64xi1>
    %c0_i32_11 = arith.constant 0 : i32
    %24 = vector.broadcast %c0_i32_11 : i32 to vector<18x18x64xi32>
    %25 = arith.cmpi eq, %18, %24 : vector<18x18x64xi32>
    %26 = arith.ori %23, %25 : vector<18x18x64xi1>
    %c17_i32_12 = arith.constant 17 : i32
    %27 = vector.broadcast %c17_i32_12 : i32 to vector<18x18x64xi32>
    %28 = arith.cmpi eq, %18, %27 : vector<18x18x64xi32>
    %29 = arith.ori %26, %28 : vector<18x18x64xi1>
    %cst_13 = arith.constant 0.000000e+00 : f32
    %30 = vector.broadcast %cst_13 : f32 to vector<18x18x64xf32>
    %31 = arith.select %29, %30, %13 : vector<18x18x64xi1>, vector<18x18x64xf32>
    %32 = arith.truncf %31 : vector<18x18x64xf32> to vector<18x18x64xbf16>
    %33 = vector.extract_strided_slice %32 {offsets = [0, 0, 0], sizes = [16, 16, 64], strides = [1, 1, 1]} : vector<18x18x64xbf16> to vector<16x16x64xbf16>
    %34 = vector.shape_cast %33 : vector<16x16x64xbf16> to vector<256x64xbf16>
    %c0_14 = arith.constant 0 : index
    %c0_15 = arith.constant 0 : index
    %c0_16 = arith.constant 0 : index
    %35 = vector.load %arg3[%c0_14, %c0_15, %c0_16] : memref<9x64x128xbf16, #tpu.memory_space<vmem>>, vector<1x64x128xbf16>
    %36 = vector.shape_cast %35 : vector<1x64x128xbf16> to vector<64x128xbf16>
    %cst_17 = arith.constant dense<0.000000e+00> : vector<256x128xf32>
    %37 = tpu.matmul %34, %36, %cst_17 {dimension_numbers = #tpu.dot_dimension_numbers<[1], [0], [0], [1], [0, 0, 1, 1], [], []>} : vector<256x64xbf16>, vector<64x128xbf16>, vector<256x128xf32> -> vector<256x128xf32>
    %38 = vector.extract_strided_slice %32 {offsets = [0, 1, 0], sizes = [16, 16, 64], strides = [1, 1, 1]} : vector<18x18x64xbf16> to vector<16x16x64xbf16>
    %39 = vector.shape_cast %38 : vector<16x16x64xbf16> to vector<256x64xbf16>
    %c1 = arith.constant 1 : index
    %c0_18 = arith.constant 0 : index
    %c0_19 = arith.constant 0 : index
    %40 = vector.load %arg3[%c1, %c0_18, %c0_19] : memref<9x64x128xbf16, #tpu.memory_space<vmem>>, vector<1x64x128xbf16>
    %41 = vector.shape_cast %40 : vector<1x64x128xbf16> to vector<64x128xbf16>
    %cst_20 = arith.constant dense<0.000000e+00> : vector<256x128xf32>
    %42 = tpu.matmul %39, %41, %cst_20 {dimension_numbers = #tpu.dot_dimension_numbers<[1], [0], [0], [1], [0, 0, 1, 1], [], []>} : vector<256x64xbf16>, vector<64x128xbf16>, vector<256x128xf32> -> vector<256x128xf32>
    %43 = arith.addf %37, %42 : vector<256x128xf32>
    %44 = vector.extract_strided_slice %32 {offsets = [0, 2, 0], sizes = [16, 16, 64], strides = [1, 1, 1]} : vector<18x18x64xbf16> to vector<16x16x64xbf16>
    %45 = vector.shape_cast %44 : vector<16x16x64xbf16> to vector<256x64xbf16>
    %c2 = arith.constant 2 : index
    %c0_21 = arith.constant 0 : index
    %c0_22 = arith.constant 0 : index
    %46 = vector.load %arg3[%c2, %c0_21, %c0_22] : memref<9x64x128xbf16, #tpu.memory_space<vmem>>, vector<1x64x128xbf16>
    %47 = vector.shape_cast %46 : vector<1x64x128xbf16> to vector<64x128xbf16>
    %cst_23 = arith.constant dense<0.000000e+00> : vector<256x128xf32>
    %48 = tpu.matmul %45, %47, %cst_23 {dimension_numbers = #tpu.dot_dimension_numbers<[1], [0], [0], [1], [0, 0, 1, 1], [], []>} : vector<256x64xbf16>, vector<64x128xbf16>, vector<256x128xf32> -> vector<256x128xf32>
    %49 = arith.addf %43, %48 : vector<256x128xf32>
    %50 = vector.extract_strided_slice %32 {offsets = [1, 0, 0], sizes = [16, 16, 64], strides = [1, 1, 1]} : vector<18x18x64xbf16> to vector<16x16x64xbf16>
    %51 = vector.shape_cast %50 : vector<16x16x64xbf16> to vector<256x64xbf16>
    %c3 = arith.constant 3 : index
    %c0_24 = arith.constant 0 : index
    %c0_25 = arith.constant 0 : index
    %52 = vector.load %arg3[%c3, %c0_24, %c0_25] : memref<9x64x128xbf16, #tpu.memory_space<vmem>>, vector<1x64x128xbf16>
    %53 = vector.shape_cast %52 : vector<1x64x128xbf16> to vector<64x128xbf16>
    %cst_26 = arith.constant dense<0.000000e+00> : vector<256x128xf32>
    %54 = tpu.matmul %51, %53, %cst_26 {dimension_numbers = #tpu.dot_dimension_numbers<[1], [0], [0], [1], [0, 0, 1, 1], [], []>} : vector<256x64xbf16>, vector<64x128xbf16>, vector<256x128xf32> -> vector<256x128xf32>
    %55 = arith.addf %49, %54 : vector<256x128xf32>
    %56 = vector.extract_strided_slice %32 {offsets = [1, 1, 0], sizes = [16, 16, 64], strides = [1, 1, 1]} : vector<18x18x64xbf16> to vector<16x16x64xbf16>
    %57 = vector.shape_cast %56 : vector<16x16x64xbf16> to vector<256x64xbf16>
    %c4 = arith.constant 4 : index
    %c0_27 = arith.constant 0 : index
    %c0_28 = arith.constant 0 : index
    %58 = vector.load %arg3[%c4, %c0_27, %c0_28] : memref<9x64x128xbf16, #tpu.memory_space<vmem>>, vector<1x64x128xbf16>
    %59 = vector.shape_cast %58 : vector<1x64x128xbf16> to vector<64x128xbf16>
    %cst_29 = arith.constant dense<0.000000e+00> : vector<256x128xf32>
    %60 = tpu.matmul %57, %59, %cst_29 {dimension_numbers = #tpu.dot_dimension_numbers<[1], [0], [0], [1], [0, 0, 1, 1], [], []>} : vector<256x64xbf16>, vector<64x128xbf16>, vector<256x128xf32> -> vector<256x128xf32>
    %61 = arith.addf %55, %60 : vector<256x128xf32>
    %62 = vector.extract_strided_slice %32 {offsets = [1, 2, 0], sizes = [16, 16, 64], strides = [1, 1, 1]} : vector<18x18x64xbf16> to vector<16x16x64xbf16>
    %63 = vector.shape_cast %62 : vector<16x16x64xbf16> to vector<256x64xbf16>
    %c5 = arith.constant 5 : index
    %c0_30 = arith.constant 0 : index
    %c0_31 = arith.constant 0 : index
    %64 = vector.load %arg3[%c5, %c0_30, %c0_31] : memref<9x64x128xbf16, #tpu.memory_space<vmem>>, vector<1x64x128xbf16>
    %65 = vector.shape_cast %64 : vector<1x64x128xbf16> to vector<64x128xbf16>
    %cst_32 = arith.constant dense<0.000000e+00> : vector<256x128xf32>
    %66 = tpu.matmul %63, %65, %cst_32 {dimension_numbers = #tpu.dot_dimension_numbers<[1], [0], [0], [1], [0, 0, 1, 1], [], []>} : vector<256x64xbf16>, vector<64x128xbf16>, vector<256x128xf32> -> vector<256x128xf32>
    %67 = arith.addf %61, %66 : vector<256x128xf32>
    %68 = vector.extract_strided_slice %32 {offsets = [2, 0, 0], sizes = [16, 16, 64], strides = [1, 1, 1]} : vector<18x18x64xbf16> to vector<16x16x64xbf16>
    %69 = vector.shape_cast %68 : vector<16x16x64xbf16> to vector<256x64xbf16>
    %c6 = arith.constant 6 : index
    %c0_33 = arith.constant 0 : index
    %c0_34 = arith.constant 0 : index
    %70 = vector.load %arg3[%c6, %c0_33, %c0_34] : memref<9x64x128xbf16, #tpu.memory_space<vmem>>, vector<1x64x128xbf16>
    %71 = vector.shape_cast %70 : vector<1x64x128xbf16> to vector<64x128xbf16>
    %cst_35 = arith.constant dense<0.000000e+00> : vector<256x128xf32>
    %72 = tpu.matmul %69, %71, %cst_35 {dimension_numbers = #tpu.dot_dimension_numbers<[1], [0], [0], [1], [0, 0, 1, 1], [], []>} : vector<256x64xbf16>, vector<64x128xbf16>, vector<256x128xf32> -> vector<256x128xf32>
    %73 = arith.addf %67, %72 : vector<256x128xf32>
    %74 = vector.extract_strided_slice %32 {offsets = [2, 1, 0], sizes = [16, 16, 64], strides = [1, 1, 1]} : vector<18x18x64xbf16> to vector<16x16x64xbf16>
    %75 = vector.shape_cast %74 : vector<16x16x64xbf16> to vector<256x64xbf16>
    %c7 = arith.constant 7 : index
    %c0_36 = arith.constant 0 : index
    %c0_37 = arith.constant 0 : index
    %76 = vector.load %arg3[%c7, %c0_36, %c0_37] : memref<9x64x128xbf16, #tpu.memory_space<vmem>>, vector<1x64x128xbf16>
    %77 = vector.shape_cast %76 : vector<1x64x128xbf16> to vector<64x128xbf16>
    %cst_38 = arith.constant dense<0.000000e+00> : vector<256x128xf32>
    %78 = tpu.matmul %75, %77, %cst_38 {dimension_numbers = #tpu.dot_dimension_numbers<[1], [0], [0], [1], [0, 0, 1, 1], [], []>} : vector<256x64xbf16>, vector<64x128xbf16>, vector<256x128xf32> -> vector<256x128xf32>
    %79 = arith.addf %73, %78 : vector<256x128xf32>
    %80 = vector.extract_strided_slice %32 {offsets = [2, 2, 0], sizes = [16, 16, 64], strides = [1, 1, 1]} : vector<18x18x64xbf16> to vector<16x16x64xbf16>
    %81 = vector.shape_cast %80 : vector<16x16x64xbf16> to vector<256x64xbf16>
    %c8 = arith.constant 8 : index
    %c0_39 = arith.constant 0 : index
    %c0_40 = arith.constant 0 : index
    %82 = vector.load %arg3[%c8, %c0_39, %c0_40] : memref<9x64x128xbf16, #tpu.memory_space<vmem>>, vector<1x64x128xbf16>
    %83 = vector.shape_cast %82 : vector<1x64x128xbf16> to vector<64x128xbf16>
    %cst_41 = arith.constant dense<0.000000e+00> : vector<256x128xf32>
    %84 = tpu.matmul %81, %83, %cst_41 {dimension_numbers = #tpu.dot_dimension_numbers<[1], [0], [0], [1], [0, 0, 1, 1], [], []>} : vector<256x64xbf16>, vector<64x128xbf16>, vector<256x128xf32> -> vector<256x128xf32>
    %85 = arith.addf %79, %84 : vector<256x128xf32>
    %86 = vector.shape_cast %85 : vector<256x128xf32> to vector<1x16x16x128xf32>
    %87 = arith.truncf %86 : vector<1x16x16x128xf32> to vector<1x16x16x128xbf16>
    %c0_42 = arith.constant 0 : index
    %c0_43 = arith.constant 0 : index
    %c0_44 = arith.constant 0 : index
    %c0_45 = arith.constant 0 : index
    %88 = vector.load %arg6[%c0_42, %c0_43, %c0_44, %c0_45] : memref<1x16x16x128xbf16, #tpu.memory_space<vmem>>, vector<1x16x16x128xbf16>
    tpu.vector_store %arg6[%c0_42, %c0_43, %c0_44, %c0_45], %87 {strides = array<i32>} : memref<1x16x16x128xbf16, #tpu.memory_space<vmem>>, vector<1x16x16x128xbf16>,
    %cst_46 = arith.constant dense<0.000000e+00> : vector<128xf32>
    %89 = vector.multi_reduction <add>, %85, %cst_46 [0] : vector<256x128xf32> to vector<128xf32>
    %90 = vector.shape_cast %89 : vector<128xf32> to vector<1x1x1x128xf32>
    %c0_47 = arith.constant 0 : index
    %c0_48 = arith.constant 0 : index
    %c0_49 = arith.constant 0 : index
    %c0_50 = arith.constant 0 : index
    %91 = vector.load %arg7[%c0_47, %c0_48, %c0_49, %c0_50] : memref<1x1x1x128xf32, #tpu.memory_space<vmem>>, vector<1x1x1x128xf32>
    tpu.vector_store %arg7[%c0_47, %c0_48, %c0_49, %c0_50], %90 {strides = array<i32>} : memref<1x1x1x128xf32, #tpu.memory_space<vmem>>, vector<1x1x1x128xf32>,
    %92 = arith.mulf %85, %85 : vector<256x128xf32>
    %cst_51 = arith.constant dense<0.000000e+00> : vector<128xf32>
    %93 = vector.multi_reduction <add>, %92, %cst_51 [0] : vector<256x128xf32> to vector<128xf32>
    %94 = vector.shape_cast %93 : vector<128xf32> to vector<1x1x1x128xf32>
    %c0_52 = arith.constant 0 : index
    %c0_53 = arith.constant 0 : index
    %c0_54 = arith.constant 0 : index
    %c0_55 = arith.constant 0 : index
    %95 = vector.load %arg8[%c0_52, %c0_53, %c0_54, %c0_55] : memref<1x1x1x128xf32, #tpu.memory_space<vmem>>, vector<1x1x1x128xf32>
    tpu.vector_store %arg8[%c0_52, %c0_53, %c0_54, %c0_55], %94 {strides = array<i32>} : memref<1x1x1x128xf32, #tpu.memory_space<vmem>>, vector<1x1x1x128xf32>,
    return
  }
  func.func @transform_0(%arg0: i32, %arg1: i32) -> (i32, i32, i32, i32, i32) {
    %c0_i32 = arith.constant 0 : i32
    %c0_i32_0 = arith.constant 0 : i32
    %c0_i32_1 = arith.constant 0 : i32
    %c0_i32_2 = arith.constant 0 : i32
    return %arg0, %arg1, %c0_i32, %c0_i32_0, %c0_i32_1 : i32, i32, i32, i32, i32
  }
  func.func @transform_1(%arg0: i32, %arg1: i32) -> (i32, i32, i32) {
    %c0_i32 = arith.constant 0 : i32
    %c0_i32_0 = arith.constant 0 : i32
    %c0_i32_1 = arith.constant 0 : i32
    %c0_i32_2 = arith.constant 0 : i32
    return %c0_i32, %c0_i32_0, %c0_i32_1 : i32, i32, i32
  }
  func.func @transform_2(%arg0: i32, %arg1: i32) -> (i32, i32, i32) {
    %c0_i32 = arith.constant 0 : i32
    %c0_i32_0 = arith.constant 0 : i32
    %c0_i32_1 = arith.constant 0 : i32
    return %arg0, %c0_i32, %c0_i32_0 : i32, i32, i32
  }
  func.func @transform_3(%arg0: i32, %arg1: i32) -> (i32, i32, i32) {
    %c0_i32 = arith.constant 0 : i32
    %c0_i32_0 = arith.constant 0 : i32
    %c0_i32_1 = arith.constant 0 : i32
    return %arg0, %c0_i32, %c0_i32_0 : i32, i32, i32
  }
  func.func @transform_4(%arg0: i32, %arg1: i32) -> (i32, i32, i32, i32) {
    %c0_i32 = arith.constant 0 : i32
    %c0_i32_0 = arith.constant 0 : i32
    %c0_i32_1 = arith.constant 0 : i32
    return %arg0, %arg1, %c0_i32, %c0_i32_0 : i32, i32, i32, i32
  }
  func.func @transform_5(%arg0: i32, %arg1: i32) -> (i32, i32, i32, i32) {
    %c0_i32 = arith.constant 0 : i32
    %c0_i32_0 = arith.constant 0 : i32
    %c0_i32_1 = arith.constant 0 : i32
    return %arg0, %arg1, %c0_i32, %c0_i32_0 : i32, i32, i32, i32
  }
  func.func @transform_6(%arg0: i32, %arg1: i32) -> (i32, i32, i32, i32) {
    %c0_i32 = arith.constant 0 : i32
    %c0_i32_0 = arith.constant 0 : i32
    %c0_i32_1 = arith.constant 0 : i32
    return %arg0, %arg1, %c0_i32, %c0_i32_0 : i32, i32, i32, i32
  }
}

module attributes {stable_mosaic.version = 11 : i64} {
  func.func @_norm_lrelu_kernel(%arg0: i32, %arg1: i32, %arg2: memref<1x256x128xbf16, #tpu.memory_space<vmem>>, %arg3: memref<1x1x128xf32, #tpu.memory_space<vmem>>, %arg4: memref<1x1x128xf32, #tpu.memory_space<vmem>>, %arg5: memref<1x256x128xf32, #tpu.memory_space<vmem>>) attributes {dimension_semantics = [#tpu.dimension_semantics<parallel>, #tpu.dimension_semantics<parallel>], iteration_bounds = array<i64: 2, 1>, scalar_prefetch = 0 : i64, scratch_operands = 0 : i64, tpu.core_type = #tpu.core_type<tc>, window_params = [{transform_indices = @transform_0, window_bounds = array<i64: 1, 256, 128>}, {transform_indices = @transform_1, window_bounds = array<i64: 1, 1, 128>}, {transform_indices = @transform_2, window_bounds = array<i64: 1, 1, 128>}, {transform_indices = @transform_3, window_bounds = array<i64: 1, 256, 128>}]} {
    %c0 = arith.constant 0 : index
    %c0_0 = arith.constant 0 : index
    %c0_1 = arith.constant 0 : index
    %0 = vector.load %arg2[%c0, %c0_0, %c0_1] : memref<1x256x128xbf16, #tpu.memory_space<vmem>>, vector<1x256x128xbf16>
    %1 = arith.extf %0 : vector<1x256x128xbf16> to vector<1x256x128xf32>
    %c0_2 = arith.constant 0 : index
    %c0_3 = arith.constant 0 : index
    %c0_4 = arith.constant 0 : index
    %2 = vector.load %arg3[%c0_2, %c0_3, %c0_4] : memref<1x1x128xf32, #tpu.memory_space<vmem>>, vector<1x1x128xf32>
    %3 = vector.broadcast %2 : vector<1x1x128xf32> to vector<1x256x128xf32>
    %4 = arith.mulf %1, %3 : vector<1x256x128xf32>
    %c0_5 = arith.constant 0 : index
    %c0_6 = arith.constant 0 : index
    %c0_7 = arith.constant 0 : index
    %5 = vector.load %arg4[%c0_5, %c0_6, %c0_7] : memref<1x1x128xf32, #tpu.memory_space<vmem>>, vector<1x1x128xf32>
    %6 = vector.broadcast %5 : vector<1x1x128xf32> to vector<1x256x128xf32>
    %7 = arith.addf %4, %6 : vector<1x256x128xf32>
    %cst = arith.constant 0.000000e+00 : f32
    %8 = vector.broadcast %cst : f32 to vector<1x256x128xf32>
    %9 = arith.cmpf oge, %7, %8 : vector<1x256x128xf32>
    %cst_8 = arith.constant 0.00999999977 : f32
    %10 = vector.broadcast %cst_8 : f32 to vector<1x256x128xf32>
    %11 = arith.mulf %10, %7 : vector<1x256x128xf32>
    %12 = arith.select %9, %7, %11 : vector<1x256x128xi1>, vector<1x256x128xf32>
    %c0_9 = arith.constant 0 : index
    %c0_10 = arith.constant 0 : index
    %c0_11 = arith.constant 0 : index
    %13 = vector.load %arg5[%c0_9, %c0_10, %c0_11] : memref<1x256x128xf32, #tpu.memory_space<vmem>>, vector<1x256x128xf32>
    tpu.vector_store %arg5[%c0_9, %c0_10, %c0_11], %12 {strides = array<i32>} : memref<1x256x128xf32, #tpu.memory_space<vmem>>, vector<1x256x128xf32>,
    return
  }
  func.func @transform_0(%arg0: i32, %arg1: i32) -> (i32, i32, i32) {
    %c0_i32 = arith.constant 0 : i32
    %c0_i32_0 = arith.constant 0 : i32
    return %arg0, %arg1, %c0_i32 : i32, i32, i32
  }
  func.func @transform_1(%arg0: i32, %arg1: i32) -> (i32, i32, i32) {
    %c0_i32 = arith.constant 0 : i32
    %c0_i32_0 = arith.constant 0 : i32
    %c0_i32_1 = arith.constant 0 : i32
    return %arg0, %c0_i32, %c0_i32_0 : i32, i32, i32
  }
  func.func @transform_2(%arg0: i32, %arg1: i32) -> (i32, i32, i32) {
    %c0_i32 = arith.constant 0 : i32
    %c0_i32_0 = arith.constant 0 : i32
    %c0_i32_1 = arith.constant 0 : i32
    return %arg0, %c0_i32, %c0_i32_0 : i32, i32, i32
  }
  func.func @transform_3(%arg0: i32, %arg1: i32) -> (i32, i32, i32) {
    %c0_i32 = arith.constant 0 : i32
    %c0_i32_0 = arith.constant 0 : i32
    return %arg0, %arg1, %c0_i32 : i32, i32, i32
  }
}

</mosaic_0001>

<bundles_post_ra>
// kernel: unet_conv_block_3d.3
= control target key start
LH: loop header
LB: loop body
LE: loop exit
PB: predicated region body
PF: predicated region fallthrough
CT: control target
= control target key end

     0   :  { %s7312_s15 = smov 0   ;;  %s7314_s16 = smov 0   ;;  %s9278_s0 = inlined_call_operand.vmem [shape: bf16[2,1,18,18,64], index: 0, kind: input, shape index: {}]   ;;  %s9279_s1 = inlined_call_operand.vmem [shape: bf16[9,64,64], index: 1, kind: input, shape index: {}]   ;;  %s9280_s2 = inlined_call_operand.vmem [shape: bf16[2,16,16,64], index: 2, kind: output, shape index: {0}]   ;;  %s9281_s3 = inlined_call_operand.vmem [shape: f32[2,1,1,64], index: 3, kind: output, shape index: {1}]   ;;  %s9282_s4 = inlined_call_operand.vmem [shape: f32[2,1,1,64], index: 4, kind: output, shape index: {2}]  }
   0x1   :  { %s7316_s17 = smov 0  }
   0x2 LB: > { %s27_s18 = sadd.s32 1, %s7281_s16  ;;  %p5585_p0 = scmp.ge.s32.totalorder %s7285_s17, 1  ;;  %s7285_s17 = sphi %s7316_s17, %s15_s17   ;;  %s7281_s16 = sphi %s7314_s16, %s9346_s16   ;;  %s7277_s15 = sphi %s7312_s15, %s9345_s15  }
   0x3   : > { %p29_p1 = scmp.ge.s32.totalorder %s27_s18, 2  ;;  %p191_p2 = scmp.lt.s32.totalorder %s7285_s17, 3 }
   0x5   : > { %s9348_s18 = smov (%p29_p1, %s27_s18), 0  ;;  %p192_p3 = pnand %p5585_p0, %p191_p2 }
   0x7   : > { %195 = sbr.rel (%p192_p3) target bundleno = 605 (0x25d), region = 28 }
   0xe   : > { %v7113_v0 = vld [vmem:[%s9279_s1 + $0x20] sm:$0xff]   ;;  %p238_p4 = scmp.lt.s32.totalorder %s7277_s15, 1  ;;  %v7115_v2 = vld [vmem:[%s9279_s1 + $0x28] sm:$0xff]   ;;  %v7117_v4 = vld [vmem:[%s9279_s1 + $0x30] sm:$0xff]   ;;  %vm327_vm0 = vsmask.f32 3328 }
   0xf   : > { %v7114_v1 = vld [vmem:[%s9279_s1 + $0x80] sm:$0xff]   ;;  %6464 = vmatprep.subr.bf16.mxu1 %v7113_v0  ;;  %v7116_v3 = vld [vmem:[%s9279_s1 + $0x88] sm:$0xff]   ;;  %v7118_v5 = vld [vmem:[%s9279_s1 + $0x90] sm:$0xff]   ;;  %vm328_vm1 = vsmask.f32 7440  ;;  %vm795_vm3 = vcmask 523264  }
  0x10   : > { %s9350_s15 = smov (!%p238_p4, %s7277_s15), 1  ;;  %6624 = vmatprep.subr.bf16.mxu0 %v7114_v1  ;;  %6465 = vmatpush3.bf16.msra.mxu1 %v7113_v0  ;;  %v7119_v6 = vld [vmem:[%s9279_s1 + $0x38] sm:$0xff]   ;;  %v7368_v18 = vld [vmem:[%s9279_s1] sm:$0xff]   ;;  %vm7384_vm2 = vmor %vm327_vm0, %vm328_vm1  ;;  %vm1366_vm4 = vcmask 1042432   ;;  %vm1367_vm5 = vcmask 1046532   ;;  %vm5209_vm7 = vcmask 519168  }
  0x11   : > { %6625 = vmatpush3.bf16.msra.mxu0 %v7114_v1  ;;  %6466 = vmatprep.subr.bf16.mxu1 %v7115_v2  ;;  %s7088_s29 = smul.u32 216, %s9350_s15  ;;  %v7120_v7 = vld [vmem:[%s9279_s1 + $0x98] sm:$0xff]   ;;  %v7374_v23 = vld [vmem:[%s9279_s1 + $0xa0] sm:$0xff]   ;;  %vm7617_vm6 = vmor %vm1366_vm4, %vm1367_vm5  ;;  %s263_s25 = scalar_lea.vmem %s9281_s3, %s9350_s15  ;;  %vm5311_vm8 = vcmask 516096  }
  0x12   : > { %6626 = vmatprep.subr.bf16.mxu0 %v7116_v3  ;;  %s269_s28 = scalar_lea.vmem %s9282_s4, %s9350_s15 }
  0x13   : > { %s7357_s10 = scalar_lea.vmem %s9278_s0, %s7088_s29 }
  0x14   : > { %6467 = vmatpush3.bf16.msra.mxu1 %v7115_v2  ;;  %v271_v8 = vld [vmem:[%s7357_s10] sm:$0xf]  ;;  %v272_v9 = vld [vmem:[%s7357_s10 + $0x4] sm:$0xf]  ;;  %v311_v10 = vld [vmem:[%s7357_s10 + $0x8] sm:$0x1] }
  0x15   : > { %6627 = vmatpush3.bf16.msra.mxu0 %v7116_v3  ;;  %6468 = vmatprep.subr.bf16.mxu1 %v7117_v4  ;;  %v331_v11 = vshrl.u32 %v271_v8, 16  ;;  %v334_v12 = vshll.u32 %v271_v8, 16  ;;  %v340_v13 = vshll.u32 %v272_v9, 16  ;;  %v344_v14 = vshrl.u32 %v272_v9, 16  ;;  %v5805_v22 = vld [vmem:[%s7357_s10 + $0xc] sm:$0xf] }
  0x16   : > { %6628 = vmatprep.subr.bf16.mxu0 %v7118_v5  ;;  %v350_v15 = vshll.u32 %v311_v10, 16  ;;  %v7377_v25 = vld [vmem:[%s7357_s10 + $0x10] sm:$0xf]  ;;  %v7380_v26 = vld [vmem:[%s7357_s10 + $0x14] sm:$0x1]  ;;  %v2239_v27 = vshrl.u32 %v5805_v22, 16 }
  0x17   : > { %v333_v16 = vrot.slane %v331_v11, 4  ;;  %v336_v17 = vrot.slane %v334_v12, 5  ;;  %v342_v19 = vrot.slane %v340_v13, 5  ;;  %v346_v20 = vrot.slane %v344_v14, 4  ;;  %v273_v40 = vld [vmem:[%s7357_s10 + $0xc] sm:$0xf] }
  0x18   : > { %6469 = vmatpush3.bf16.msra.mxu1 %v7117_v4  ;;  %v352_v21 = vrot.slane %v350_v15, 5  ;;  %v2242_v28 = vshll.u32 %v5805_v22, 16  ;;  %v2248_v31 = vshll.u32 %v7377_v25, 16  ;;  %v2252_v32 = vshrl.u32 %v7377_v25, 16  ;;  %v274_v44 = vld [vmem:[%s7357_s10 + $0x10] sm:$0xf] }
  0x19   : > { %6629 = vmatpush3.bf16.msra.mxu0 %v7118_v5  ;;  %6470 = vmatprep.subr.bf16.mxu1 %v7119_v6  ;;  %v337_v24 = vor.u32 %v336_v17, %v333_v16  ;;  %v347_v30 = vor.u32 %v346_v20, %v342_v19  ;;  %v2258_v33 = vshll.u32 %v7380_v26, 16  ;;  %v2241_v35 = vrot.slane %v2239_v27, 4  ;;  %v312_v45 = vld [vmem:[%s7357_s10 + $0x14] sm:$0x1]  ;;  %v5808_v55 = vld [vmem:[%s7357_s10 + $0x18] sm:$0xf] }
  0x1a   : > { %6630 = vmatprep.subr.bf16.mxu0 %v7120_v7  ;;  %v2244_v36 = vrot.slane %v2242_v28, 5  ;;  %v2250_v38 = vrot.slane %v2248_v31, 5  ;;  %v2254_v39 = vrot.slane %v2252_v32, 4  ;;  %v355_v46 = vshrl.u32 %v273_v40, 16  ;;  %v7402_v60 = vld [vmem:[%s7357_s10 + $0x1c] sm:$0xf] }
  0x1b   : > { %v338_v34 = vrot.slane %v337_v24, 4  ;;  %v348_v37 = vrot.slane %v347_v30, 4  ;;  %v2260_v43 = vrot.slane %v2258_v33, 5  ;;  %v358_v49 = vshll.u32 %v273_v40, 16  ;;  %v7410_v1 = vld [vmem:[%s7357_s10 + $0x20] sm:$0x1] }
  0x1c   : > { %6471 = vmatpush3.bf16.msra.mxu1 %v7119_v6  ;;  %v2245_v42 = vor.u32 %v2244_v36, %v2241_v35  ;;  %v2255_v48 = vor.u32 %v2254_v39, %v2250_v38  ;;  %v364_v50 = vshll.u32 %v274_v44, 16  ;;  %v357_v53 = vrot.slane %v355_v46, 4  ;;  %v275_v10 = vld [vmem:[%s7357_s10 + $0x18] sm:$0xf]  ;;  %v276_v11 = vld [vmem:[%s7357_s10 + $0x1c] sm:$0xf] }
  0x1d   : > { %6631 = vmatpush3.bf16.msra.mxu0 %v7120_v7  ;;  %6504 = vmatprep.subr.bf16.mxu1 %v7368_v18  ;;  %v343_v41 = vsel %vm7384_vm2, %v338_v34, %v342_v19  ;;  %v353_v47 = vsel %vm7384_vm2, %v348_v37, %v352_v21  ;;  %v368_v54 = vshrl.u32 %v274_v44, 16  ;;  %v360_v57 = vrot.slane %v358_v49, 5  ;;  %v313_v28 = vld [vmem:[%s7357_s10 + $0x20] sm:$0x1]  ;;  %v5811_v34 = vld [vmem:[%s7357_s10 + $0x24] sm:$0xf] }
  0x1e   : > { %6664 = vmatprep.subr.bf16.mxu0 %v7374_v23  ;;  %v5597_v51 = vcombine.low %v343_v41, %v353_v47  ;;  %v2246_v52 = vrot.slane %v2245_v42, 4  ;;  %v2256_v56 = vrot.slane %v2255_v48, 4  ;;  %v366_v58 = vrot.slane %v364_v50, 5  ;;  %v7124_v39 = vld [vmem:[%s9279_s1 + $0x8] sm:$0xff]  }
  0x1f   : > { %v374_v59 = vshll.u32 %v312_v45, 16  ;;  %v3010_v62 = vrot.slane %v7377_v25, 5  ;;  %v3013_v63 = vrot.slane %v7380_v26, 5  ;;  %v370_v0 = vrot.slane %v368_v54, 4  ;;  %v7436_v44 = vld [vmem:[%s7357_s10 + $0x28] sm:$0xf] }
  0x20   : > { %6472 = vmatprep.mubr.msk.bf16.mxu1 %vm795_vm3, %v5597_v51  ;;  %v2251_v61 = vsel %vm7384_vm2, %v2246_v52, %v2250_v38  ;;  %v2261_v2 = vsel %vm7384_vm2, %v2256_v56, %v2260_v43  ;;  %v361_v3 = vor.u32 %v360_v57, %v357_v53  ;;  %v2263_v5 = vshrl.u32 %v5808_v55, 16  ;;  %v7440_v48 = vld [vmem:[%s7357_s10 + $0x2c] sm:$0x1]  ;;  %v7127_v56 = vld [vmem:[%s9279_s1 + $0x10] sm:$0xff]  }
  0x21   : > { %v376_v4 = vrot.slane %v374_v59, 5  ;;  %v5861_v6 = vcombine.low %v2251_v61, %v2261_v2  ;;  %v371_v7 = vor.u32 %v370_v0, %v366_v58  ;;  %v2266_v8 = vshll.u32 %v5808_v55, 16  ;;  %v7123_v54 = vld [vmem:[%s9279_s1 + $0xa8] sm:$0xff]   ;;  %v277_v55 = vld [vmem:[%s7357_s10 + $0x24] sm:$0xf] }
  0x22   : > { %v2272_v9 = vshll.u32 %v7402_v60, 16  ;;  %v362_v12 = vrot.slane %v361_v3, 4  ;;  %v2265_v13 = vrot.slane %v2263_v5, 4  ;;  %v2276_v14 = vshrl.u32 %v7402_v60, 16  ;;  %v278_v61 = vld [vmem:[%s7357_s10 + $0x28] sm:$0xf] }
  0x23   : > { %v2282_v15 = vshll.u32 %v7410_v1, 16  ;;  %6632 = vmatprep.mubr.msk.bf16.mxu0 %vm795_vm3, %v5861_v6  ;;  %v372_v16 = vrot.slane %v371_v7, 4  ;;  %v2268_v17 = vrot.slane %v2266_v8, 5  ;;  %v3017_v20 = vrot.slane %v7402_v60, 5  ;;  %v314_v5 = vld [vmem:[%s7357_s10 + $0x2c] sm:$0x1] }
  0x24   : > { %v2274_v19 = vrot.slane %v2272_v9, 5  ;;  %v367_v21 = vsel %vm7384_vm2, %v362_v12, %v366_v58  ;;  %v2278_v22 = vrot.slane %v2276_v14, 4  ;;  %v3020_v27 = vrot.slane %v7410_v1, 5 }
  0x25   : > { %v2284_v24 = vrot.slane %v2282_v15, 5  ;;  %v377_v30 = vsel %vm7384_vm2, %v372_v16, %v376_v4  ;;  %v2269_v31 = vor.u32 %v2268_v17, %v2265_v13  ;;  %v7429_v32 = vrot.slane %v3017_v20, 4  ;;  %v7462_v15 = vld [vmem:[%s7357_s10 + $0x34] sm:$0xf] }
  0x26   : > { %v379_v33 = vshrl.u32 %v275_v10, 16  ;;  %v5598_v35 = vcombine.low %v367_v21, %v377_v30  ;;  %v2279_v36 = vor.u32 %v2278_v22, %v2274_v19  ;;  %v382_v37 = vshll.u32 %v275_v10, 16  ;;  %v5814_v10 = vld [vmem:[%s7357_s10 + $0x30] sm:$0xf] }
  0x27   : > { %v388_v38 = vshll.u32 %v276_v11, 16  ;;  %v2270_v40 = vrot.slane %v2269_v31, 4  ;;  %v392_v42 = vshrl.u32 %v276_v11, 16  ;;  %v398_v43 = vshll.u32 %v313_v28, 16  ;;  %v7125_v31 = vld [vmem:[%s9279_s1 + $0xb0] sm:$0xff]  }
  0x28   : > { %v381_v41 = vrot.slane %v379_v33, 4  ;;  %6473 = vmatmul.mubr.msk.bf16.vlgmr.msra.gmra.mrb[0].mxu1 %vm795_vm3, %v5598_v35  ;;  %v2280_v45 = vrot.slane %v2279_v36, 4  ;;  %v384_v46 = vrot.slane %v382_v37, 5  ;;  %v2287_v49 = vshrl.u32 %v5811_v34, 16 }
  0x29   : > { %v390_v47 = vrot.slane %v388_v38, 5  ;;  %6505 = vmatpush3.bf16.msra.mxu1 %v7368_v18  ;;  %v2275_v50 = vsel %vm7384_vm2, %v2270_v40, %v2274_v19  ;;  %v394_v51 = vrot.slane %v392_v42, 4  ;;  %v400_v52 = vrot.slane %v398_v43, 5  ;;  %v7478_v40 = vld [vmem:[%s7357_s10 + $0x38] sm:$0x1] }
  0x2a   : > { %v2290_v53 = vshll.u32 %v5811_v34, 16  ;;  %v2285_v18 = vsel %vm7384_vm2, %v2280_v45, %v2284_v24  ;;  %v385_v57 = vor.u32 %v384_v46, %v381_v41  ;;  %v2289_v58 = vrot.slane %v2287_v49, 4  ;;  %6506 = vmatprep.subr.bf16.mxu1 %v7124_v39  ;;  %v7126_v42 = vld [vmem:[%s9279_s1 + $0xb8] sm:$0xff]   ;;  %v279_v49 = vld [vmem:[%s7357_s10 + $0x30] sm:$0xf] }
  0x2b   : > { %v2296_v59 = vshll.u32 %v7436_v44, 16  ;;  %v5862_v0 = vcombine.low %v2275_v50, %v2285_v18  ;;  %v395_v2 = vor.u32 %v394_v51, %v390_v47  ;;  %v2300_v4 = vshrl.u32 %v7436_v44, 16 }
  0x2c   : > { %v2292_v3 = vrot.slane %v2290_v53, 5  ;;  %v386_v6 = vrot.slane %v385_v57, 4  ;;  %v2306_v8 = vshll.u32 %v7440_v48, 16  ;;  %v403_v9 = vshrl.u32 %v277_v55, 16 }
  0x2d   : > { %v2298_v7 = vrot.slane %v2296_v59, 5  ;;  %6633 = vmatmul.mubr.msk.bf16.vlgmr.msra.gmra.mrb[0].mxu0 %vm795_vm3, %v5862_v0  ;;  %v396_v11 = vrot.slane %v395_v2, 4  ;;  %v2302_v13 = vrot.slane %v2300_v4, 4  ;;  %v406_v14 = vshll.u32 %v277_v55, 16  ;;  %6507 = vmatpush3.bf16.msra.mxu1 %v7124_v39  ;;  %v280_v55 = vld [vmem:[%s7357_s10 + $0x34] sm:$0xf] }
  0x2e   : > { %v2293_v12 = vor.u32 %v2292_v3, %v2289_v58  ;;  %6665 = vmatpush3.bf16.msra.mxu0 %v7374_v23  ;;  %v391_v16 = vsel %vm7384_vm2, %v386_v6, %v390_v47  ;;  %v2308_v17 = vrot.slane %v2306_v8, 5  ;;  %v405_v19 = vrot.slane %v403_v9, 4  ;;  %6508 = vmatprep.subr.bf16.mxu1 %v7127_v56  ;;  %v7129_v23 = vld [vmem:[%s9279_s1 + $0x18] sm:$0xff]  }
  0x2f   : > { %v412_v21 = vshll.u32 %v278_v61, 16  ;;  %v401_v22 = vsel %vm7384_vm2, %v396_v11, %v400_v52  ;;  %v2303_v28 = vor.u32 %v2302_v13, %v2298_v7  ;;  %6666 = vmatprep.subr.bf16.mxu0 %v7123_v54  ;;  %v408_v30 = vrot.slane %v406_v14, 5  ;;  %v7502_v13 = vld [vmem:[%s9279_s1 + $0xc0] sm:$0xff]  }
  0x30   : > { %v2294_v24 = vrot.slane %v2293_v12, 4  ;;  %v5599_v33 = vcombine.low %v391_v16, %v401_v22  ;;  %v416_v35 = vshrl.u32 %v278_v61, 16  ;;  %v422_v36 = vshll.u32 %v314_v5, 16  ;;  %v315_v5 = vld [vmem:[%s7357_s10 + $0x38] sm:$0x1] }
  0x31   : > { %v414_v34 = vrot.slane %v412_v21, 5  ;;  %v2304_v38 = vrot.slane %v2303_v28, 4  ;;  %v409_v39 = vor.u32 %v408_v30, %v405_v19  ;;  %v2311_v41 = vshrl.u32 %v5814_v10, 16  ;;  %6509 = vmatpush3.bf16.msra.mxu1 %v7127_v56  ;;  %v7132_v56 = vld [vmem:[%s9279_s1 + $0x40] sm:$0xff]   ;;  %v5817_v12 = vld [vmem:[%s7357_s10 + $0x3c] sm:$0xf] }
  0x32   : > { %v2299_v37 = vsel %vm7384_vm2, %v2294_v24, %v2298_v7  ;;  %6476 = vmatprep.mubr.msk.bf16.mxu1 %vm795_vm3, %v5599_v33  ;;  %v418_v43 = vrot.slane %v416_v35, 4  ;;  %v424_v45 = vrot.slane %v422_v36, 5  ;;  %v2314_v46 = vshll.u32 %v5814_v10, 16  ;;  %6667 = vmatpush3.bf16.msra.mxu0 %v7123_v54  ;;  %v7507_v21 = vld [vmem:[%s7357_s10 + $0x40] sm:$0xf] }
  0x33   : > { %v2320_v47 = vshll.u32 %v7462_v15, 16  ;;  %v2309_v50 = vsel %vm7384_vm2, %v2304_v38, %v2308_v17  ;;  %v410_v51 = vrot.slane %v409_v39, 4  ;;  %v2313_v52 = vrot.slane %v2311_v41, 4  ;;  %6668 = vmatprep.subr.bf16.mxu0 %v7125_v31  ;;  %6510 = vmatprep.subr.bf16.mxu1 %v7129_v23  ;;  %v7512_v33 = vld [vmem:[%s7357_s10 + $0x44] sm:$0x1] }
  0x34   : > { %v2324_v53 = vshrl.u32 %v7462_v15, 16  ;;  %v5863_v18 = vcombine.low %v2299_v37, %v2309_v50  ;;  %v419_v57 = vor.u32 %v418_v43, %v414_v34  ;;  %v2316_v58 = vrot.slane %v2314_v46, 5  ;;  %v281_v41 = vld [vmem:[%s7357_s10 + $0x3c] sm:$0xf] }
  0x35   : > { %v2322_v54 = vrot.slane %v2320_v47, 5  ;;  %v415_v59 = vsel %vm7384_vm2, %v410_v51, %v414_v34  ;;  %v2330_v0 = vshll.u32 %v7478_v40, 16  ;;  %v427_v2 = vshrl.u32 %v279_v49, 16  ;;  %6511 = vmatpush3.bf16.msra.mxu1 %v7129_v23 }
  0x36   : > { %v2326_v61 = vrot.slane %v2324_v53, 4  ;;  %6636 = vmatprep.mubr.msk.bf16.mxu0 %vm795_vm3, %v5863_v18  ;;  %v420_v3 = vrot.slane %v419_v57, 4  ;;  %v2317_v4 = vor.u32 %v2316_v58, %v2313_v52  ;;  %v430_v6 = vshll.u32 %v279_v49, 16  ;;  %6669 = vmatpush3.bf16.msra.mxu0 %v7125_v31  ;;  %v282_v49 = vld [vmem:[%s7357_s10 + $0x40] sm:$0xf] }
  0x37   : > { %v436_v7 = vshll.u32 %v280_v55, 16  ;;  %v2332_v9 = vrot.slane %v2330_v0, 5  ;;  %v429_v10 = vrot.slane %v427_v2, 4  ;;  %v440_v11 = vshrl.u32 %v280_v55, 16  ;;  %6670 = vmatprep.subr.bf16.mxu0 %v7126_v42  ;;  %6544 = vmatprep.subr.bf16.mxu1 %v7132_v56  ;;  %v316_v56 = vld [vmem:[%s7357_s10 + $0x44] sm:$0x1] }
  0x38   : > { %v2327_v8 = vor.u32 %v2326_v61, %v2322_v54  ;;  %v425_v14 = vsel %vm7384_vm2, %v420_v3, %v424_v45  ;;  %v2318_v16 = vrot.slane %v2317_v4, 4  ;;  %v432_v17 = vrot.slane %v430_v6, 5  ;;  %v5820_v58 = vld [vmem:[%s7357_s10 + $0x48] sm:$0xf]  ;;  %v7531_v2 = vld [vmem:[%s7357_s10 + $0x4c] sm:$0xf] }
  0x39   : > { %v438_v19 = vrot.slane %v436_v7, 5  ;;  %v5600_v22 = vcombine.low %v415_v59, %v425_v14  ;;  %v442_v28 = vrot.slane %v440_v11, 4  ;;  %v446_v30 = vshll.u32 %v315_v5, 16  ;;  %v7534_v7 = vld [vmem:[%s7357_s10 + $0x50] sm:$0x1] }
  0x3a   : > { %v2328_v24 = vrot.slane %v2327_v8, 4  ;;  %v2323_v31 = vsel %vm7384_vm2, %v2318_v16, %v2322_v54  ;;  %v433_v23 = vor.u32 %v432_v17, %v429_v10  ;;  %v2335_v34 = vshrl.u32 %v5817_v12, 16  ;;  %6671 = vmatpush3.bf16.msra.mxu0 %v7126_v42 }
  0x3b   : > { %v2338_v35 = vshll.u32 %v5817_v12, 16  ;;  %6477 = vmatmul.mubr.msk.bf16.gmra.mrb[4].mxu1 %vm795_vm3, %v5600_v22  ;;  %v443_v37 = vor.u32 %v442_v28, %v438_v19  ;;  %v448_v38 = vrot.slane %v446_v30, 5  ;;  %v2344_v39 = vshll.u32 %v7507_v21, 16  ;;  %6704 = vmatprep.subr.bf16.mxu0 %v7502_v13 }
  0x3c   : > { %v2333_v36 = vsel %vm7384_vm2, %v2328_v24, %v2332_v9  ;;  %v434_v45 = vrot.slane %v433_v23, 4  ;;  %v2337_v46 = vrot.slane %v2335_v34, 4  ;;  %v2348_v51 = vshrl.u32 %v7507_v21, 16 }
  0x3d   : > { %v5864_v43 = vcombine.low %v2323_v31, %v2333_v36  ;;  %v2340_v47 = vrot.slane %v2338_v35, 5  ;;  %v444_v42 = vrot.slane %v443_v37, 4  ;;  %v2346_v50 = vrot.slane %v2344_v39, 5 }
  0x3e   : > { %v2354_v52 = vshll.u32 %v7512_v33, 16  ;;  %v439_v53 = vsel %vm7384_vm2, %v434_v45, %v438_v19  ;;  %v451_v18 = vshrl.u32 %v281_v41, 16  ;;  %v454_v57 = vshll.u32 %v281_v41, 16  ;;  %v283_v19 = vld [vmem:[%s7357_s10 + $0x48] sm:$0xf] }
  0x3f   : > { %6637 = vmatmul.mubr.msk.bf16.gmra.mrb[4].mxu0 %vm795_vm3, %v5864_v43  ;;  %v2341_v55 = vor.u32 %v2340_v47, %v2337_v46  ;;  %v449_v54 = vsel %vm7384_vm2, %v444_v42, %v448_v38  ;;  %v2350_v59 = vrot.slane %v2348_v51, 4  ;;  %v460_v0 = vshll.u32 %v282_v49, 16  ;;  %v284_v41 = vld [vmem:[%s7357_s10 + $0x4c] sm:$0xf] }
  0x40   : > { %v2356_v61 = vrot.slane %v2354_v52, 5  ;;  %v5601_v3 = vcombine.low %v439_v53, %v449_v54  ;;  %v453_v5 = vrot.slane %v451_v18, 4  ;;  %v456_v6 = vrot.slane %v454_v57, 5  ;;  %v5823_v57 = vld [vmem:[%s7357_s10 + $0x54] sm:$0xf] }
  0x41   : > { %v2342_v4 = vrot.slane %v2341_v55, 4  ;;  %v2351_v8 = vor.u32 %v2350_v59, %v2346_v50  ;;  %v462_v9 = vrot.slane %v460_v0, 5  ;;  %v464_v10 = vshrl.u32 %v282_v49, 16  ;;  %v317_v49 = vld [vmem:[%s7357_s10 + $0x50] sm:$0x1] }
  0x42   : > { %v470_v11 = vshll.u32 %v316_v56, 16  ;;  %6480 = vmatprep.mubr.msk.bf16.mxu1 %vm795_vm3, %v5601_v3  ;;  %v457_v14 = vor.u32 %v456_v6, %v453_v5  ;;  %v2359_v16 = vshrl.u32 %v5820_v58, 16  ;;  %v2362_v17 = vshll.u32 %v5820_v58, 16  ;;  %v7554_v0 = vld [vmem:[%s7357_s10 + $0x58] sm:$0xf] }
  0x43   : > { %v2347_v12 = vsel %vm7384_vm2, %v2342_v4, %v2346_v50  ;;  %v2352_v22 = vrot.slane %v2351_v8, 4  ;;  %v466_v24 = vrot.slane %v464_v10, 4  ;;  %v2368_v30 = vshll.u32 %v7531_v2, 16 }
  0x44   : > { %v472_v28 = vrot.slane %v470_v11, 5  ;;  %v458_v31 = vrot.slane %v457_v14, 4  ;;  %v2361_v23 = vrot.slane %v2359_v16, 4  ;;  %v2364_v34 = vrot.slane %v2362_v17, 5  ;;  %v7559_v11 = vld [vmem:[%s7357_s10 + $0x5c] sm:$0x1] }
  0x45   : > { %v2372_v35 = vshrl.u32 %v7531_v2, 16  ;;  %v2357_v36 = vsel %vm7384_vm2, %v2352_v22, %v2356_v61  ;;  %v467_v37 = vor.u32 %v466_v24, %v462_v9  ;;  %v2370_v38 = vrot.slane %v2368_v30, 5  ;;  %v7567_v22 = vld [vmem:[%s7357_s10 + $0x54] sm:$0xf] }
  0x46   : > { %v2378_v39 = vshll.u32 %v7534_v7, 16  ;;  %v5865_v43 = vcombine.low %v2347_v12, %v2357_v36  ;;  %v463_v45 = vsel %vm7384_vm2, %v458_v31, %v462_v9  ;;  %v2365_v46 = vor.u32 %v2364_v34, %v2361_v23  ;;  %v7570_v23 = vld [vmem:[%s7357_s10 + $0x58] sm:$0xf] }
  0x47   : > { %v2374_v47 = vrot.slane %v2372_v35, 4  ;;  %v468_v42 = vrot.slane %v467_v37, 4  ;;  %v475_v51 = vshrl.u32 %v283_v19, 16  ;;  %v478_v52 = vshll.u32 %v283_v19, 16 }
  0x48   : > { %v2380_v50 = vrot.slane %v2378_v39, 5  ;;  %6640 = vmatprep.mubr.msk.bf16.mxu0 %vm795_vm3, %v5865_v43  ;;  %v2366_v53 = vrot.slane %v2365_v46, 4  ;;  %v484_v56 = vshll.u32 %v284_v41, 16  ;;  %v488_v18 = vshrl.u32 %v284_v41, 16  ;;  %v5826_v46 = vld [vmem:[%s7357_s10 + $0x60] sm:$0xf] }
  0x49   : > { %v2375_v55 = vor.u32 %v2374_v47, %v2370_v38  ;;  %v473_v58 = vsel %vm7384_vm2, %v468_v42, %v472_v28  ;;  %v477_v54 = vrot.slane %v475_v51, 4  ;;  %v480_v59 = vrot.slane %v478_v52, 5 }
  0x4a   : > { %v494_v61 = vshll.u32 %v317_v49, 16  ;;  %v5602_v3 = vcombine.low %v463_v45, %v473_v58  ;;  %v2371_v4 = vsel %vm7384_vm2, %v2366_v53, %v2370_v38  ;;  %v486_v6 = vrot.slane %v484_v56, 5  ;;  %v318_v38 = vld [vmem:[%s7357_s10 + $0x5c] sm:$0x1]  ;;  %v7585_v56 = vld [vmem:[%s7357_s10 + $0x64] sm:$0xf] }
  0x4b   : > { %v2376_v5 = vrot.slane %v2375_v55, 4  ;;  %v481_v8 = vor.u32 %v480_v59, %v477_v54  ;;  %v490_v9 = vrot.slane %v488_v18, 4  ;;  %v2383_v12 = vshrl.u32 %v5823_v57, 16 }
  0x4c   : > { %v496_v10 = vrot.slane %v494_v61, 5  ;;  %6481 = vmatmul.mubr.msk.bf16.gmra.mrb[8].mxu1 %vm795_vm3, %v5602_v3  ;;  %v2386_v16 = vshll.u32 %v5823_v57, 16  ;;  %v2392_v17 = vshll.u32 %v7554_v0, 16  ;;  %v2396_v19 = vshrl.u32 %v7554_v0, 16 }
  0x4d   : > { %v2381_v14 = vsel %vm7384_vm2, %v2376_v5, %v2380_v50  ;;  %v482_v28 = vrot.slane %v481_v8, 4  ;;  %v491_v30 = vor.u32 %v490_v9, %v486_v6  ;;  %v2385_v31 = vrot.slane %v2383_v12, 4  ;;  %v7593_v8 = vld [vmem:[%s7357_s10 + $0x68] sm:$0x1]  ;;  %v7597_v12 = vld [vmem:[%s7357_s10 + $0x60] sm:$0xf] }
  0x4e   : > { %v5866_v24 = vcombine.low %v2371_v4, %v2381_v14  ;;  %v2388_v34 = vrot.slane %v2386_v16, 5  ;;  %v2394_v35 = vrot.slane %v2392_v17, 5  ;;  %v2398_v36 = vrot.slane %v2396_v19, 4 }
  0x4f   : > { %v2402_v37 = vshll.u32 %v7559_v11, 16  ;;  %v487_v39 = vsel %vm7384_vm2, %v482_v28, %v486_v6  ;;  %v492_v41 = vrot.slane %v491_v30, 4  ;;  %v499_v43 = vshrl.u32 %v7567_v22, 16 }
  0x50   : > { %6641 = vmatmul.mubr.msk.bf16.gmra.mrb[8].mxu0 %vm795_vm3, %v5866_v24  ;;  %v502_v45 = vshll.u32 %v7567_v22, 16  ;;  %v2389_v47 = vor.u32 %v2388_v34, %v2385_v31  ;;  %v2399_v49 = vor.u32 %v2398_v36, %v2394_v35  ;;  %v508_v50 = vshll.u32 %v7570_v23, 16  ;;  %v7600_v24 = vld [vmem:[%s7357_s10 + $0x64] sm:$0xf] }
  0x51   : > { %v2404_v42 = vrot.slane %v2402_v37, 5  ;;  %v497_v51 = vsel %vm7384_vm2, %v492_v41, %v496_v10  ;;  %v501_v52 = vrot.slane %v499_v43, 4  ;;  %v512_v55 = vshrl.u32 %v7570_v23, 16 }
  0x52   : > { %v504_v53 = vrot.slane %v502_v45, 5  ;;  %v5603_v18 = vcombine.low %v487_v39, %v497_v51  ;;  %v2390_v57 = vrot.slane %v2389_v47, 4  ;;  %v2400_v58 = vrot.slane %v2399_v49, 4  ;;  %v5897_v47 = vld [vmem:[%s7357_s10 + $0xc] sm:$0xe] }
  0x53   : > { %v510_v54 = vrot.slane %v508_v50, 5  ;;  %v514_v61 = vrot.slane %v512_v55, 4  ;;  %v518_v3 = vshll.u32 %v318_v38, 16  ;;  %v2407_v4 = vshrl.u32 %v5826_v46, 16  ;;  %v319_v38 = vld [vmem:[%s7357_s10 + $0x68] sm:$0x1] }
  0x54   : > { %v505_v59 = vor.u32 %v504_v53, %v501_v52  ;;  %6484 = vmatprep.mubr.msk.bf16.mxu1 %vm795_vm3, %v5603_v18  ;;  %v2395_v5 = vsel %vm7384_vm2, %v2390_v57, %v2394_v35  ;;  %v2405_v6 = vsel %vm7384_vm2, %v2400_v58, %v2404_v42  ;;  %v2410_v9 = vshll.u32 %v5826_v46, 16  ;;  %v7622_v58 = vld [vmem:[%s7357_s10 + $0x6c] sm:$0xf] }
  0x55   : > { %v2416_v10 = vshll.u32 %v7585_v56, 16  ;;  %v5867_v14 = vcombine.low %v2395_v5, %v2405_v6  ;;  %v515_v17 = vor.u32 %v514_v61, %v510_v54  ;;  %v520_v19 = vrot.slane %v518_v3, 5 }
  0x56   : > { %v506_v16 = vrot.slane %v505_v59, 4  ;;  %v2409_v28 = vrot.slane %v2407_v4, 4  ;;  %v2412_v30 = vrot.slane %v2410_v9, 5  ;;  %v2420_v34 = vshrl.u32 %v7585_v56, 16 }
  0x57   : > { %v2418_v31 = vrot.slane %v2416_v10, 5  ;;  %6644 = vmatprep.mubr.msk.bf16.mxu0 %vm795_vm3, %v5867_v14  ;;  %v516_v36 = vrot.slane %v515_v17, 4  ;;  %v2426_v37 = vshll.u32 %v7593_v8, 16  ;;  %v523_v39 = vshrl.u32 %v7597_v12, 16  ;;  %v7634_v17 = vld [vmem:[%s7357_s10 + $0x70] sm:$0xf] }
  0x58   : > { %v511_v35 = vsel %vm7384_vm2, %v506_v16, %v510_v54  ;;  %v2413_v41 = vor.u32 %v2412_v30, %v2409_v28  ;;  %v2422_v43 = vrot.slane %v2420_v34, 4  ;;  %v526_v45 = vshll.u32 %v7597_v12, 16  ;;  %v320_v34 = vld [vmem:[%s7357_s10 + $0x74] sm:$0x1] }
  0x59   : > { %v532_v46 = vshll.u32 %v7600_v24, 16  ;;  %v521_v49 = vsel %vm7384_vm2, %v516_v36, %v520_v19  ;;  %v2428_v42 = vrot.slane %v2426_v37, 5  ;;  %v525_v50 = vrot.slane %v523_v39, 4 }
  0x5a   : > { %v536_v51 = vshrl.u32 %v7600_v24, 16  ;;  %v5604_v52 = vcombine.low %v511_v35, %v521_v49  ;;  %v2414_v53 = vrot.slane %v2413_v41, 4  ;;  %v2423_v55 = vor.u32 %v2422_v43, %v2418_v31  ;;  %v5898_v35 = vld [vmem:[%s7357_s10 + $0x18] sm:$0xe] }
  0x5b   : > { %v528_v18 = vrot.slane %v526_v45, 5  ;;  %v534_v54 = vrot.slane %v532_v46, 5  ;;  %v542_v61 = vshll.u32 %v319_v38, 16  ;;  %v5913_v3 = vrot.slane %v5897_v47, 9  ;;  %v7651_v45 = vld [vmem:[%s7357_s10 + $0x78] sm:$0xf] }
  0x5c   : > { %v538_v59 = vrot.slane %v536_v51, 4  ;;  %6485 = vmatmul.mubr.msk.bf16.gmra.mrb[12].mxu1 %vm795_vm3, %v5604_v52  ;;  %v2419_v4 = vsel %vm7384_vm2, %v2414_v53, %v2418_v31  ;;  %v2424_v5 = vrot.slane %v2423_v55, 4  ;;  %v3012_v9 = vrot.slane %v3010_v62, 4  ;;  %v321_v55 = vld [vmem:[%s7357_s10 + $0x80] sm:$0x1] }
  0x5d   : > { %v529_v6 = vor.u32 %v528_v18, %v525_v50  ;;  %v544_v14 = vrot.slane %v542_v61, 5  ;;  %v3011_v16 = vsel %vm7617_vm6, %v5913_v3, %v3010_v62  ;;  %v547_v19 = vshrl.u32 %v7622_v58, 16 }
  0x5e   : > { %v539_v10 = vor.u32 %v538_v59, %v534_v54  ;;  %v2429_v28 = vsel %vm7384_vm2, %v2424_v5, %v2428_v42  ;;  %v3014_v31 = vsel %vm7617_vm6, %v3012_v9, %v3013_v63  ;;  %v550_v25 = vshll.u32 %v7622_v58, 16  ;;  %v7662_v42 = vld [vmem:[%s7357_s10 + $0x7c] sm:$0xf]  ;;  %v7676_v5 = vld [vmem:[%s7357_s10 + $0x84] sm:$0xf] }
  0x5f   : > { %v530_v30 = vrot.slane %v529_v6, 4  ;;  %v5868_v62 = vcombine.low %v2419_v4, %v2429_v28  ;;  %v5937_v37 = vcombine.low %v3011_v16, %v3014_v31  ;;  %v549_v38 = vrot.slane %v547_v19, 4 }
  0x60   : > { %v540_v36 = vrot.slane %v539_v10, 4  ;;  %v552_v41 = vrot.slane %v550_v25, 5  ;;  %v556_v43 = vshll.u32 %v7634_v17, 16  ;;  %v560_v26 = vshrl.u32 %v7634_v17, 16  ;;  %v7680_v10 = vld [vmem:[%s7357_s10 + $0x88] sm:$0xf] }
  0x61   : > { %v535_v39 = vsel %vm7384_vm2, %v530_v30, %v534_v54  ;;  %6645 = vmatmul.mubr.msk.bf16.gmra.mrb[12].mxu0 %vm795_vm3, %v5868_v62  ;;  %v566_v46 = vshll.u32 %v320_v34, 16  ;;  %v5914_v47 = vrot.slane %v5898_v35, 9  ;;  %v3021_v49 = vsel %vm7617_vm6, %v7429_v32, %v3020_v27  ;;  %v5899_v32 = vld [vmem:[%s7357_s10 + $0x24] sm:$0xe]  ;;  %v7130_v35 = vld [vmem:[%s9279_s1 + $0xc8] sm:$0xff]  }
  0x62   : > { %v545_v63 = vsel %vm7384_vm2, %v540_v36, %v544_v14  ;;  %6672 = vmatprep.mubr.msk.bf16.mxu0 %vm795_vm3, %v5937_v37  ;;  %v553_v51 = vor.u32 %v552_v41, %v549_v38  ;;  %v558_v52 = vrot.slane %v556_v43, 5  ;;  %v562_v53 = vrot.slane %v560_v26, 4  ;;  %v322_v37 = vld [vmem:[%s7357_s10 + $0x8c] sm:$0x1] }
  0x63   : > { %v5605_v50 = vcombine.low %v535_v39, %v545_v63  ;;  %v568_v18 = vrot.slane %v566_v46, 5  ;;  %v3018_v1 = vsel %vm7617_vm6, %v5914_v47, %v3017_v20  ;;  %v571_v54 = vshrl.u32 %v7651_v45, 16  ;;  %v5900_v63 = vld [vmem:[%s7357_s10 + $0x30] sm:$0xe] }
  0x64   : > { %v574_v27 = vshll.u32 %v7651_v45, 16  ;;  %v554_v59 = vrot.slane %v553_v51, 4  ;;  %v563_v61 = vor.u32 %v562_v53, %v558_v52  ;;  %v5938_v3 = vcombine.low %v3018_v1, %v3021_v49 }
  0x65   : > { %6488 = vmatprep.mubr.msk.bf16.mxu1 %vm795_vm3, %v5605_v50  ;;  %v580_v4 = vshll.u32 %v7662_v42, 16  ;;  %v573_v6 = vrot.slane %v571_v54, 4  ;;  %v584_v9 = vshrl.u32 %v7662_v42, 16  ;;  %v590_v20 = vshll.u32 %v321_v55, 16 }
  0x66   : > { %v576_v60 = vrot.slane %v574_v27, 5  ;;  %v559_v14 = vsel %vm7384_vm2, %v554_v59, %v558_v52  ;;  %v564_v16 = vrot.slane %v563_v61, 4  ;;  %v5915_v28 = vrot.slane %v5899_v32, 9  ;;  %v7710_v27 = vld [vmem:[%s7357_s10 + $0x90] sm:$0xf] }
  0x67   : > { %v582_v19 = vrot.slane %v580_v4, 5  ;;  %v586_v31 = vrot.slane %v584_v9, 4  ;;  %v592_v34 = vrot.slane %v590_v20, 5  ;;  %v3024_v25 = vrot.slane %v7436_v44, 5  ;;  %v7713_v32 = vld [vmem:[%s7357_s10 + $0x94] sm:$0xf] }
  0x68   : > { %v577_v30 = vor.u32 %v576_v60, %v573_v6  ;;  %v569_v62 = vsel %vm7384_vm2, %v564_v16, %v568_v18  ;;  %v3027_v36 = vrot.slane %v7440_v48, 5  ;;  %v595_v38 = vshrl.u32 %v7676_v5, 16 }
  0x69   : > { %v598_v39 = vshll.u32 %v7676_v5, 16  ;;  %v5606_v41 = vcombine.low %v559_v14, %v569_v62  ;;  %6673 = vmatmul.mubr.msk.bf16.vlgmr.msra.gmra.mrb[0].mxu0 %vm795_vm3, %v5938_v3  ;;  %v587_v26 = vor.u32 %v586_v31, %v582_v19  ;;  %v3025_v44 = vsel %vm7617_vm6, %v5915_v28, %v3024_v25  ;;  %v323_v14 = vld [vmem:[%s7357_s10 + $0x98] sm:$0x1]  ;;  %v5901_v31 = vld [vmem:[%s7357_s10 + $0x3c] sm:$0xe] }
  0x6a   : > { %v578_v43 = vrot.slane %v577_v30, 4  ;;  %6705 = vmatpush3.bf16.msra.mxu0 %v7502_v13  ;;  %v3026_v46 = vrot.slane %v3024_v25, 4  ;;  %v597_v48 = vrot.slane %v595_v38, 4  ;;  %v604_v49 = vshll.u32 %v7680_v10, 16  ;;  %v7133_v13 = vld [vmem:[%s9279_s1 + $0xd0] sm:$0xff]  }
  0x6b   : > { %v600_v47 = vrot.slane %v598_v39, 5  ;;  %6489 = vmatmul.mubr.msk.bf16.gmra.mrb[16].mxu1 %vm795_vm3, %v5606_v41  ;;  %v588_v51 = vrot.slane %v587_v26, 4  ;;  %v608_v52 = vshrl.u32 %v7680_v10, 16  ;;  %v614_v53 = vshll.u32 %v322_v37, 16  ;;  %6706 = vmatprep.subr.bf16.mxu0 %v7130_v35  ;;  %v7735_v62 = vld [vmem:[%s7357_s10 + $0x9c] sm:$0xf] }
  0x6c   : > { %v583_v50 = vsel %vm7384_vm2, %v578_v43, %v582_v19  ;;  %v3028_v55 = vsel %vm7617_vm6, %v3026_v46, %v3027_v36  ;;  %v606_v1 = vrot.slane %v604_v49, 5  ;;  %v5916_v54 = vrot.slane %v5900_v63, 9  ;;  %v7738_v41 = vld [vmem:[%s7357_s10 + $0xa0] sm:$0xf]  ;;  %v324_v46 = vld [vmem:[%s7357_s10 + $0xa4] sm:$0x1] }
  0x6d   : > { %v601_v18 = vor.u32 %v600_v47, %v597_v48  ;;  %v593_v59 = vsel %vm7384_vm2, %v588_v51, %v592_v34  ;;  %v5939_v61 = vcombine.low %v3025_v44, %v3028_v55  ;;  %v610_v3 = vrot.slane %v608_v52, 4  ;;  %v7749_v51 = vld [vmem:[%s9279_s1 + $0xe0] sm:$0xff]  }
  0x6e   : > { %v616_v4 = vrot.slane %v614_v53, 5  ;;  %v5607_v6 = vcombine.low %v583_v50, %v593_v59  ;;  %v3031_v9 = vrot.slane %v7462_v15, 5  ;;  %v3034_v20 = vrot.slane %v7478_v40, 5  ;;  %6707 = vmatpush3.bf16.msra.mxu0 %v7130_v35  ;;  %v7139_v15 = vld [vmem:[%s9279_s1 + $0xd8] sm:$0xff]  }
  0x6f   : > { %v602_v60 = vrot.slane %v601_v18, 4  ;;  %6676 = vmatprep.mubr.msk.bf16.mxu0 %vm795_vm3, %v5939_v61  ;;  %v611_v16 = vor.u32 %v610_v3, %v606_v1  ;;  %v619_v19 = vshrl.u32 %v7710_v27, 16  ;;  %v622_v28 = vshll.u32 %v7710_v27, 16  ;;  %6708 = vmatprep.subr.bf16.mxu0 %v7133_v13  ;;  %v5902_v18 = vld [vmem:[%s7357_s10 + $0x48] sm:$0xe] }
  0x70   : > { %v628_v30 = vshll.u32 %v7713_v32, 16  ;;  %6492 = vmatprep.mubr.msk.bf16.mxu1 %vm795_vm3, %v5607_v6  ;;  %v3032_v34 = vsel %vm7617_vm6, %v5916_v54, %v3031_v9  ;;  %v3033_v25 = vrot.slane %v3031_v9, 4  ;;  %v632_v35 = vshrl.u32 %v7713_v32, 16  ;;  %v7758_v61 = vld [vmem:[%s7357_s10 + $0xa8] sm:$0xf] }
  0x71   : > { %v607_v40 = vsel %vm7384_vm2, %v602_v60, %v606_v1  ;;  %v612_v36 = vrot.slane %v611_v16, 4  ;;  %v621_v37 = vrot.slane %v619_v19, 4  ;;  %v624_v38 = vrot.slane %v622_v28, 5  ;;  %v7765_v60 = vld [vmem:[%s7357_s10 + $0xac] sm:$0xf] }
  0x72   : > { %v630_v39 = vrot.slane %v628_v30, 5  ;;  %v3035_v43 = vsel %vm7617_vm6, %v3033_v25, %v3034_v20  ;;  %v634_v26 = vrot.slane %v632_v35, 4  ;;  %v638_v44 = vshll.u32 %v323_v14, 16  ;;  %6709 = vmatpush3.bf16.msra.mxu0 %v7133_v13  ;;  %v325_v35 = vld [vmem:[%s7357_s10 + $0xb0] sm:$0x1] }
  0x73   : > { %v5917_v63 = vrot.slane %v5901_v31, 9  ;;  %v617_v48 = vsel %vm7384_vm2, %v612_v36, %v616_v4  ;;  %v5940_v47 = vcombine.low %v3032_v34, %v3035_v43  ;;  %v625_v49 = vor.u32 %v624_v38, %v621_v37  ;;  %6710 = vmatprep.subr.bf16.mxu0 %v7139_v15  ;;  %v5903_v36 = vld [vmem:[%s7357_s10 + $0x54] sm:$0xe] }
  0x74   : > { %v3038_v50 = vrot.slane %v7507_v21, 5  ;;  %v5608_v52 = vcombine.low %v607_v40, %v617_v48  ;;  %v635_v53 = vor.u32 %v634_v26, %v630_v39  ;;  %v640_v55 = vrot.slane %v638_v44, 5 }
  0x75   : > { %v3041_v13 = vrot.slane %v7512_v33, 5  ;;  %6677 = vmatmul.mubr.msk.bf16.gmra.mrb[4].mxu0 %vm795_vm3, %v5940_v47  ;;  %v626_v1 = vrot.slane %v625_v49, 4  ;;  %v643_v59 = vshrl.u32 %v7735_v62, 16  ;;  %v646_v4 = vshll.u32 %v7735_v62, 16 }
  0x76   : > { %v3039_v54 = vsel %vm7617_vm6, %v5917_v63, %v3038_v50  ;;  %v3040_v21 = vrot.slane %v3038_v50, 4  ;;  %6493 = vmatmul.mubr.msk.bf16.gmra.mrb[20].mxu1 %vm795_vm3, %v5608_v52  ;;  %v636_v3 = vrot.slane %v635_v53, 4  ;;  %v652_v6 = vshll.u32 %v7738_v41, 16  ;;  %6711 = vmatpush3.bf16.msra.mxu0 %v7139_v15  ;;  %v7787_v50 = vld [vmem:[%s7357_s10 + $0xb4] sm:$0xf] }
  0x77   : > { %v656_v33 = vshrl.u32 %v7738_v41, 16  ;;  %v631_v9 = vsel %vm7384_vm2, %v626_v1, %v630_v39  ;;  %v645_v14 = vrot.slane %v643_v59, 4  ;;  %v662_v16 = vshll.u32 %v324_v46, 16  ;;  %6744 = vmatprep.subr.bf16.mxu0 %v7749_v51 }
  0x78   : > { %v3042_v20 = vsel %vm7617_vm6, %v3040_v21, %v3041_v13  ;;  %v641_v19 = vsel %vm7384_vm2, %v636_v3, %v640_v55  ;;  %v648_v30 = vrot.slane %v646_v4, 5  ;;  %v654_v31 = vrot.slane %v652_v6, 5  ;;  %v7790_v13 = vld [vmem:[%s7357_s10 + $0xb8] sm:$0xf] }
  0x79   : > { %v5941_v28 = vcombine.low %v3039_v54, %v3042_v20  ;;  %v5609_v40 = vcombine.low %v631_v9, %v641_v19  ;;  %v658_v34 = vrot.slane %v656_v33, 4  ;;  %v664_v25 = vrot.slane %v662_v16, 5  ;;  %v326_v16 = vld [vmem:[%s7357_s10 + $0xbc] sm:$0x1]  ;;  %v5904_v19 = vld [vmem:[%s7357_s10 + $0x60] sm:$0xe] }
  0x7a   : > { %v5918_v15 = vrot.slane %v5902_v18, 9  ;;  %v649_v37 = vor.u32 %v648_v30, %v645_v14  ;;  %v3045_v38 = vrot.slane %v7531_v2, 5  ;;  %v3048_v39 = vrot.slane %v7534_v7, 5 }
  0x7b   : > { %6680 = vmatprep.mubr.msk.bf16.mxu0 %vm795_vm3, %v5941_v28  ;;  %v667_v43 = vshrl.u32 %v7758_v61, 16  ;;  %6496 = vmatprep.mubr.msk.bf16.mxu1 %vm795_vm3, %v5609_v40  ;;  %v659_v26 = vor.u32 %v658_v34, %v654_v31  ;;  %v670_v44 = vshll.u32 %v7758_v61, 16  ;;  %v676_v63 = vshll.u32 %v7765_v60, 16 }
  0x7c   : > { %v680_v46 = vshrl.u32 %v7765_v60, 16  ;;  %v650_v48 = vrot.slane %v649_v37, 4  ;;  %v3046_v47 = vsel %vm7617_vm6, %v5918_v15, %v3045_v38  ;;  %v3047_v49 = vrot.slane %v3045_v38, 4  ;;  %v5830_v15 = vld [vmem:[%s7357_s10 + $0x70] sm:$0xf] }
  0x7d   : > { %v669_v2 = vrot.slane %v667_v43, 4  ;;  %v660_v7 = vrot.slane %v659_v26, 4  ;;  %v672_v52 = vrot.slane %v670_v44, 5  ;;  %v678_v53 = vrot.slane %v676_v63, 5  ;;  %v5905_v43 = vld [vmem:[%s7357_s10 + $0x6c] sm:$0xe] }
  0x7e   : > { %v682_v55 = vrot.slane %v680_v46, 4  ;;  %v655_v18 = vsel %vm7384_vm2, %v650_v48, %v654_v31  ;;  %v3049_v1 = vsel %vm7617_vm6, %v3047_v49, %v3048_v39  ;;  %v686_v54 = vshll.u32 %v325_v35, 16  ;;  %v5831_v35 = vld [vmem:[%s7357_s10 + $0x74] sm:$0x1] }
  0x7f   : > { %v5919_v21 = vrot.slane %v5903_v36, 9  ;;  %v665_v59 = vsel %vm7384_vm2, %v660_v7, %v664_v25  ;;  %v5942_v3 = vcombine.low %v3046_v47, %v3049_v1  ;;  %v673_v4 = vor.u32 %v672_v52, %v669_v2 }
  0x80   : > { %v683_v6 = vor.u32 %v682_v55, %v678_v53  ;;  %v5610_v33 = vcombine.low %v655_v18, %v665_v59  ;;  %v688_v9 = vrot.slane %v686_v54, 5  ;;  %v3052_v20 = vrot.slane %v7554_v0, 5  ;;  %v5906_v59 = vld [vmem:[%s7357_s10 + $0x78] sm:$0xe] }
  0x81   : > { %v3055_v14 = vrot.slane %v7559_v11, 5  ;;  %6681 = vmatmul.mubr.msk.bf16.gmra.mrb[8].mxu0 %vm795_vm3, %v5942_v3  ;;  %v674_v28 = vrot.slane %v673_v4, 4  ;;  %v691_v31 = vshrl.u32 %v7787_v50, 16  ;;  %v694_v40 = vshll.u32 %v7787_v50, 16 }
  0x82   : > { %v684_v30 = vrot.slane %v683_v6, 4  ;;  %6497 = vmatmul.mubr.msk.bf16.gmra.mrb[24].mxu1 %vm795_vm3, %v5610_v33  ;;  %v3053_v34 = vsel %vm7617_vm6, %v5919_v21, %v3052_v20  ;;  %v3054_v25 = vrot.slane %v3052_v20, 4  ;;  %v700_v0 = vshll.u32 %v7790_v13, 16  ;;  %v7827_v6 = vld [vmem:[%s7357_s10 + $0x7c] sm:$0xf] }
  0x83   : > { %v704_v11 = vshrl.u32 %v7790_v13, 16  ;;  %v679_v36 = vsel %vm7384_vm2, %v674_v28, %v678_v53  ;;  %v693_v38 = vrot.slane %v691_v31, 4  ;;  %v696_v39 = vrot.slane %v694_v40, 5  ;;  %v7197_v28 = vld [vmem:[%s7357_s10] sm:$0xf] }
  0x84   : > { %v689_v37 = vsel %vm7384_vm2, %v684_v30, %v688_v9  ;;  %v3056_v44 = vsel %vm7617_vm6, %v3054_v25, %v3055_v14  ;;  %v702_v63 = vrot.slane %v700_v0, 5  ;;  %v710_v49 = vshll.u32 %v326_v16, 16  ;;  %v5836_v14 = vld [vmem:[%s7357_s10 + $0x88] sm:$0xf]  ;;  %v7843_v30 = vld [vmem:[%s7357_s10 + $0x4] sm:$0xf] }
  0x85   : > { %v5611_v26 = vcombine.low %v679_v36, %v689_v37  ;;  %v706_v46 = vrot.slane %v704_v11, 4  ;;  %v5943_v48 = vcombine.low %v3053_v34, %v3056_v44  ;;  %v697_v47 = vor.u32 %v696_v39, %v693_v38  ;;  %v5837_v40 = vld [vmem:[%s7357_s10 + $0x8c] sm:$0x1]  ;;  %v5907_v34 = vld [vmem:[%s7357_s10 + $0x84] sm:$0xe] }
  0x86   : > { %v5920_v2 = vrot.slane %v5904_v19, 9  ;;  %v3059_v52 = vrot.slane %v7585_v56, 5  ;;  %v3062_v53 = vrot.slane %v7593_v8, 5  ;;  %v5921_v55 = vrot.slane %v5905_v43, 9  ;;  %v7830_v8 = vld [vmem:[%s7357_s10 + $0x80] sm:$0x1] }
  0x87   : > { %6500 = vmatprep.mubr.msk.bf16.mxu1 %vm795_vm3, %v5611_v26  ;;  %v707_v7 = vor.u32 %v706_v46, %v702_v63  ;;  %6684 = vmatprep.mubr.msk.bf16.mxu0 %vm795_vm3, %v5943_v48  ;;  %v698_v18 = vrot.slane %v697_v47, 4  ;;  %v712_v1 = vrot.slane %v710_v49, 5  ;;  %v3066_v54 = vrot.slane %v5830_v15, 5  ;;  %v5839_v15 = vld [vmem:[%s7357_s10 + $0x94] sm:$0xf] }
  0x88   : > { %v3069_v21 = vrot.slane %v5831_v35, 5  ;;  %v3060_v4 = vsel %vm7617_vm6, %v5920_v2, %v3059_v52  ;;  %v3061_v56 = vrot.slane %v3059_v52, 4  ;;  %v5633_v31 = vcombine.low %v7197_v28, %v7843_v30  ;;  %v5840_v37 = vld [vmem:[%s7357_s10 + $0x98] sm:$0x1]  ;;  %v5908_v38 = vld [vmem:[%s7357_s10 + $0x90] sm:$0xe] }
  0x89   : > { %v708_v3 = vrot.slane %v707_v7, 4  ;;  %v703_v33 = vsel %vm7384_vm2, %v698_v18, %v702_v63  ;;  %v3067_v9 = vsel %vm7617_vm6, %v5921_v55, %v3066_v54  ;;  %v3068_v20 = vrot.slane %v3066_v54, 4  ;;  %v5842_v44 = vld [vmem:[%s7357_s10 + $0xa0] sm:$0xf]  ;;  %v5843_v2 = vld [vmem:[%s7357_s10 + $0xa4] sm:$0x1] }
  0x8a   : > { %v3063_v19 = vsel %vm7617_vm6, %v3061_v56, %v3062_v53  ;;  %v5922_v36 = vrot.slane %v5906_v59, 9  ;;  %v3073_v39 = vrot.slane %v7827_v6, 5  ;;  %v3076_v43 = vrot.slane %v7830_v8, 5  ;;  %v7199_v7 = vld [vmem:[%s7357_s10 + $0xc] sm:$0xf] }
  0x8b   : > { %v713_v16 = vsel %vm7384_vm2, %v708_v3, %v712_v1  ;;  %v5944_v0 = vcombine.low %v3060_v4, %v3063_v19  ;;  %v3070_v11 = vsel %vm7617_vm6, %v3068_v20, %v3069_v21  ;;  %v5923_v26 = vrot.slane %v5907_v34, 9  ;;  %v7865_v52 = vld [vmem:[%s7357_s10 + $0x10] sm:$0xf]  ;;  %v5909_v1 = vld [vmem:[%s7357_s10 + $0x9c] sm:$0xe] }
  0x8c   : > { %v5612_v25 = vcombine.low %v703_v33, %v713_v16  ;;  %v5945_v35 = vcombine.low %v3067_v9, %v3070_v11  ;;  %v3080_v63 = vrot.slane %v5836_v14, 5  ;;  %v3083_v46 = vrot.slane %v5837_v40, 5  ;;  %v7201_v21 = vld [vmem:[%s7357_s10 + $0x18] sm:$0xf]  ;;  %v7875_v59 = vld [vmem:[%s7357_s10 + $0x1c] sm:$0xf] }
  0x8d   : > { %6685 = vmatmul.mubr.msk.bf16.gmra.mrb[12].mxu0 %vm795_vm3, %v5944_v0  ;;  %v3074_v48 = vsel %vm7617_vm6, %v5922_v36, %v3073_v39  ;;  %v3075_v47 = vrot.slane %v3073_v39, 4  ;;  %v3087_v49 = vrot.slane %v5839_v15, 5  ;;  %v5634_v53 = vcombine.low %v7199_v7, %v7865_v52  ;;  %v7138_v33 = vld [vmem:[%s9279_s1 + $0x48] sm:$0xff]   ;;  %v5846_v0 = vld [vmem:[%s7357_s10 + $0xb0] sm:$0x1]  ;;  %v7203_v11 = vld [vmem:[%s9279_s1 + $0x40] sm:$0xff]  }
  0x8e   : > { %6501 = vmatmul.mubr.msk.bf16.gmra.mrb[28].mxu1 %vm795_vm3, %v5612_v25  ;;  %6688 = vmatprep.mubr.msk.bf16.mxu0 %vm795_vm3, %v5945_v35  ;;  %v3081_v55 = vsel %vm7617_vm6, %v5923_v26, %v3080_v63  ;;  %v3082_v18 = vrot.slane %v3080_v63, 4  ;;  %v5635_v3 = vcombine.low %v7201_v21, %v7875_v59  ;;  %v5924_v4 = vrot.slane %v5908_v38, 9  ;;  %v5845_v40 = vld [vmem:[%s7357_s10 + $0xac] sm:$0xf]  ;;  %v5848_v25 = vld [vmem:[%s7357_s10 + $0xb8] sm:$0xf] }
  0x8f   : > { %6512 = vmatprep.mubr.msk.bf16.mxu1 %vm795_vm3, %v5633_v31  ;;  %v3077_v54 = vsel %vm7617_vm6, %v3075_v47, %v3076_v43  ;;  %v3090_v56 = vrot.slane %v5840_v37, 5  ;;  %v3089_v14 = vrot.slane %v3087_v49, 4  ;;  %v3094_v16 = vrot.slane %v5842_v44, 5  ;;  %v5910_v36 = vld [vmem:[%s7357_s10 + $0xa8] sm:$0xe]  ;;  %v7144_v26 = vld [vmem:[%s9279_s1 + $0x50] sm:$0xff]  }
  0x90   : > { %v5946_v9 = vcombine.low %v3074_v48, %v3077_v54  ;;  %v3084_v20 = vsel %vm7617_vm6, %v3082_v18, %v3083_v46  ;;  %v5925_v28 = vrot.slane %v5909_v1, 9  ;;  %v3097_v31 = vrot.slane %v5843_v2, 5  ;;  %v5849_v44 = vld [vmem:[%s7357_s10 + $0xbc] sm:$0x1]  ;;  %v5911_v63 = vld [vmem:[%s7357_s10 + $0xb4] sm:$0xe] }
  0x91   : > { %v5947_v19 = vcombine.low %v3081_v55, %v3084_v20  ;;  %v3096_v34 = vrot.slane %v3094_v16, 4  ;;  %v3088_v15 = vsel %vm7617_vm6, %v5924_v4, %v3087_v49  ;;  %v3091_v35 = vsel %vm7617_vm6, %v3089_v14, %v3090_v56  ;;  %v7204_v46 = vld [vmem:[%s7357_s10 + $0x24] sm:$0xf]  ;;  %v7909_v48 = vld [vmem:[%s7357_s10 + $0x28] sm:$0xf] }
  0x92   : > { %v3101_v37 = vrot.slane %v5845_v40, 5  ;;  %v3095_v38 = vsel %vm7617_vm6, %v5925_v28, %v3094_v16  ;;  %v3108_v43 = vrot.slane %v5848_v25, 5  ;;  %v5636_v47 = vcombine.low %v7204_v46, %v7909_v48  ;;  %v7206_v2 = vld [vmem:[%s7357_s10 + $0x30] sm:$0xf]  ;;  %v7914_v7 = vld [vmem:[%s7357_s10 + $0x34] sm:$0xf] }
  0x93   : > { %v3098_v39 = vsel %vm7617_vm6, %v3096_v34, %v3097_v31  ;;  %v5948_v49 = vcombine.low %v3088_v15, %v3091_v35  ;;  %v5926_v18 = vrot.slane %v5910_v36, 9  ;;  %v3104_v54 = vrot.slane %v5846_v0, 5  ;;  %v5851_v56 = vld [vmem:[%s7357_s10 + $0xc4] sm:$0xf]  ;;  %v5912_v14 = vld [vmem:[%s7357_s10 + $0xc0] sm:$0xe] }
  0x94   : > { %v5949_v55 = vcombine.low %v3095_v38, %v3098_v39  ;;  %v3103_v1 = vrot.slane %v3101_v37, 4  ;;  %v5927_v21 = vrot.slane %v5911_v63, 9  ;;  %v3111_v4 = vrot.slane %v5849_v44, 5  ;;  %v5852_v31 = vld [vmem:[%s7357_s10 + $0xc8] sm:$0x1]  ;;  %v7938_v40 = vld [vmem:[%s9279_s1 + $0x60] sm:$0xff]  }
  0x95   : > { %6689 = vmatmul.mubr.msk.bf16.gmra.mrb[16].mxu0 %vm795_vm3, %v5946_v9  ;;  %v7154_v9 = vld [vmem:[%s9279_s1 + $0x58] sm:$0xff]   ;;  %v3115_v16 = vrot.slane %v5851_v56, 5  ;;  %v7942_v25 = vld [vmem:[%s7357_s10 + $0x40] sm:$0xf]  ;;  %v5928_v15 = vrot.slane %v5912_v14, 9  ;;  %v2464_v63 = vshll.u32 %v7827_v6, 16 }
  0x96   : > { %6513 = vmatmul.mubr.msk.bf16.vlgmr.msra.gmra.mrb[0].mxu1 %vm795_vm3, %v5634_v53  ;;  %6692 = vmatprep.mubr.msk.bf16.mxu0 %vm795_vm3, %v5947_v19  ;;  %v5637_v53 = vcombine.low %v7206_v2, %v7914_v7  ;;  %v3105_v20 = vsel %vm7617_vm6, %v3103_v1, %v3104_v54  ;;  %v3109_v19 = vsel %vm7617_vm6, %v5927_v21, %v3108_v43  ;;  %v7208_v34 = vld [vmem:[%s7357_s10 + $0x3c] sm:$0xf]  ;;  %v7210_v35 = vld [vmem:[%s7357_s10 + $0x48] sm:$0xf]  ;;  %v7947_v36 = vld [vmem:[%s7357_s10 + $0x4c] sm:$0xf] }
  0x97   : > { %6545 = vmatpush3.bf16.msra.mxu1 %v7203_v11  ;;  %6516 = vmatprep.mubr.msk.bf16.mxu1 %vm795_vm3, %v5635_v3  ;;  %v3110_v3 = vrot.slane %v3108_v43, 4  ;;  %v5638_v0 = vcombine.low %v7208_v34, %v7942_v25  ;;  %v3117_v39 = vrot.slane %v3115_v16, 4  ;;  %v3118_v43 = vrot.slane %v5852_v31, 5  ;;  %v1321_v56 = vld [vmem:[%s7357_s10 + $0x24] sm:$0xe] }
  0x98   : > { %6546 = vmatprep.subr.bf16.mxu1 %v7138_v33  ;;  %v2468_v46 = vshrl.u32 %v7827_v6, 16  ;;  %v5641_v2 = vcombine.low %v7597_v12, %v7600_v24  ;;  %v7967_v1 = vrot.slane %v2464_v63, 5  ;;  %v1378_v21 = vrot.slane %v7865_v52, 5  ;;  %v1319_v12 = vld [vmem:[%s7357_s10 + $0xc] sm:$0xe] }
  0x99   : > { %v3112_v28 = vsel %vm7617_vm6, %v3110_v3, %v3111_v4  ;;  %v3119_v44 = vsel %vm7617_vm6, %v3117_v39, %v3118_v43  ;;  %v7213_v24 = vld [vmem:[%s7357_s10 + $0x14] sm:$0x1]  ;;  %v1320_v3 = vld [vmem:[%s7357_s10 + $0x18] sm:$0xe]  ;;  %v1385_v52 = vrot.slane %v7875_v59, 5  ;;  %v2474_v4 = vshll.u32 %v7830_v8, 16 }
  0x9a   : > { %v5951_v38 = vcombine.low %v3109_v19, %v3112_v28  ;;  %9298 = vst [vmem:[#allocation2_spill] sm:$0xff] %v7967_v1  ;;  %v7969_v54 = vrot.slane %v2468_v46, 4  ;;  %v1381_v6 = vrot.slane %v7213_v24, 5  ;;  %v5643_v19 = vcombine.low %v7651_v45, %v7662_v42  ;;  %v7150_v59 = vld [vmem:[%s7357_s10 + $0x30] sm:$0xff]   ;;  %v7156_v8 = vld [vmem:[%s9279_s1 + $0xe8] sm:$0xff]  }
  0x9b   : > { %6547 = vmatpush3.bf16.msra.mxu1 %v7138_v33  ;;  %v3102_v33 = vsel %vm7617_vm6, %v5926_v18, %v3101_v37  ;;  %v5639_v37 = vcombine.low %v7210_v35, %v7947_v36  ;;  %v5671_v31 = vrot.slane %v1320_v3, 9  ;;  %v1322_v34 = vld [vmem:[%s7357_s10 + $0x30] sm:$0xe]  ;;  %v5644_v35 = vcombine.low %v7676_v5, %v7680_v10  ;;  %v6049_v24 = vld [vmem:[%s7357_s10 + $0x18] sm:$0xf] }
  0x9c   : > { %6548 = vmatprep.subr.bf16.mxu1 %v7144_v26  ;;  %v5950_v11 = vcombine.low %v3102_v33, %v3105_v20  ;;  %v5642_v33 = vcombine.low %v7622_v58, %v7634_v17  ;;  %v7148_v20 = vld [vmem:[%s7357_s10 + $0x24] sm:$0xff]   ;;  %v5672_v58 = vrot.slane %v1321_v56, 9  ;;  %v1399_v17 = vrot.slane %v7914_v7, 5 }
  0x9d   : > { %6693 = vmatmul.mubr.msk.bf16.gmra.mrb[20].mxu0 %vm795_vm3, %v5948_v49  ;;  %v5645_v45 = vcombine.low %v7710_v27, %v7713_v32  ;;  %v5646_v39 = vcombine.low %v7735_v62, %v7738_v41  ;;  %v7221_v10 = vld [vmem:[%s7357_s10 + $0x64] sm:$0xf] }
  0x9e   : > { %6517 = vmatmul.mubr.msk.bf16.gmra.mrb[4].mxu1 %vm795_vm3, %v5636_v47  ;;  %6696 = vmatprep.mubr.msk.bf16.mxu0 %vm795_vm3, %v5949_v55  ;;  %v5640_v47 = vcombine.low %v7567_v22, %v7570_v23  ;;  %v7212_v55 = vld [vmem:[%s7357_s10 + $0x8] sm:$0x1]  ;;  %v1318_v22 = vld [vmem:[%s7357_s10] sm:$0xe]  ;;  %v1371_v23 = vrot.slane %v7843_v30, 5 }
  0x9f   : > { %6520 = vmatprep.mubr.msk.bf16.mxu1 %vm795_vm3, %v5637_v53  ;;  %6549 = vmatpush3.bf16.msra.mxu1 %v7144_v26  ;;  %v3116_v26 = vsel %vm7617_vm6, %v5928_v15, %v3115_v16  ;;  %v7145_v53 = vld [vmem:[%s7357_s10 + $0x18] sm:$0xff]   ;;  %v1374_v18 = vrot.slane %v7212_v55, 5  ;;  %v5669_v14 = vrot.slane %v1318_v22, 9  ;;  %v5670_v16 = vrot.slane %v1319_v12, 9  ;;  %v1324_v22 = vld [vmem:[%s7357_s10 + $0x48] sm:$0xe] }
  0xa0   : > { %6550 = vmatprep.subr.bf16.mxu1 %v7154_v9  ;;  %v5952_v49 = vcombine.low %v3116_v26, %v3119_v44  ;;  %v1373_v28 = vrot.slane %v1371_v23, 4  ;;  %v1406_v26 = vrot.slane %v7942_v25, 5  ;;  %v8015_v44 = vrot.slane %v2474_v4, 5  ;;  %v1323_v25 = vld [vmem:[%s7357_s10 + $0x3c] sm:$0xe] }
  0xa1   : > { %v8008_v43 = vsel %vm7617_vm6, %v5669_v14, %v1371_v23  ;;  %v8012_v7 = vsel %vm7617_vm6, %v5670_v16, %v1378_v21  ;;  %v1401_v55 = vrot.slane %v1399_v17, 4  ;;  %v5674_v3 = vrot.slane %v1323_v25, 9  ;;  %v7217_v4 = vld [vmem:[%s7357_s10 + $0x44] sm:$0x1]  ;;  %v7155_v14 = vld [vmem:[%s7357_s10 + $0x48] sm:$0xff]  }
  0xa2   : > { %9299 = vst [vmem:[#allocation3_spill] sm:$0xff] %v8015_v44  ;;  %v8021_v63 = vsel %vm7617_vm6, %v1373_v28, %v1374_v18  ;;  %v7216_v18 = vld [vmem:[%s7357_s10 + $0x38] sm:$0x1]  ;;  %v1409_v56 = vrot.slane %v7217_v4, 5  ;;  %v8069_v28 = vld [vmem:[%s7357_s10 + $0x54] sm:$0xe] }
  0xa3   : > { %6551 = vmatpush3.bf16.msra.mxu1 %v7154_v9  ;;  %v1392_v9 = vrot.slane %v7909_v48, 5  ;;  %v1380_v48 = vrot.slane %v1378_v21, 4  ;;  %v1402_v21 = vrot.slane %v7216_v18, 5  ;;  %v7218_v25 = vld [vmem:[%s7357_s10 + $0x50] sm:$0x1] }
  0xa4   : > { %6584 = vmatprep.subr.bf16.mxu1 %v7938_v40  ;;  %v6052_v18 = vld [vmem:[%s7357_s10 + $0x24] sm:$0xf] }
  0xa5   : > { %6697 = vmatmul.mubr.msk.bf16.gmra.mrb[24].mxu0 %vm795_vm3, %v5950_v11  ;;  %v7214_v11 = vld [vmem:[%s7357_s10 + $0x20] sm:$0x1]  ;;  %v1394_v42 = vrot.slane %v1392_v9, 4  ;;  %v8025_v46 = vsel %vm7617_vm6, %v1380_v48, %v1381_v6  ;;  %v8048_v23 = vsel %vm7617_vm6, %v5672_v58, %v1392_v9  ;;  %v6050_v6 = vld [vmem:[%s7357_s10 + $0x1c] sm:$0xf]  ;;  %v8077_v48 = vsel %vm7617_vm6, %v1401_v55, %v1402_v21 }
  0xa6   : > { %6521 = vmatmul.mubr.msk.bf16.gmra.mrb[8].mxu1 %vm795_vm3, %v5638_v0  ;;  %6700 = vmatprep.mubr.msk.bf16.mxu0 %vm795_vm3, %v5951_v38  ;;  %v1387_v0 = vrot.slane %v1385_v52, 4  ;;  %v1388_v15 = vrot.slane %v7214_v11, 5  ;;  %v3887_v58 = vshll.u32 %v6050_v6, 16  ;;  %v6051_v55 = vld [vmem:[%s7357_s10 + $0x20] sm:$0x1]  ;;  %v5676_v21 = vrot.slane %v8069_v28, 9 }
  0xa7   : > { %6524 = vmatprep.mubr.msk.bf16.mxu1 %vm795_vm3, %v5639_v37  ;;  %v7215_v37 = vld [vmem:[%s7357_s10 + $0x2c] sm:$0x1]  ;;  %v7158_v28 = vld [vmem:[%s7357_s10 + $0x54] sm:$0xff]  }
  0xa8   : > { %v1395_v38 = vrot.slane %v7215_v37, 5  ;;  %v8124_v32 = vrot.slane %v3887_v58, 5  ;;  %v6056_v58 = vld [vmem:[%s7357_s10 + $0x34] sm:$0xf] }
  0xa9   : > { %v3935_v9 = vshll.u32 %v6056_v58, 16 }
  0xaa   : > { %v8052_v12 = vsel %vm7617_vm6, %v1394_v42, %v1395_v38  ;;  %v8089_v42 = vsel %vm7617_vm6, %v5674_v3, %v1406_v26 }
  0xad   : > { %6701 = vmatmul.mubr.msk.bf16.gmra.mrb[28].mxu0 %vm795_vm3, %v5952_v49  ;;  %v7165_v49 = vld [vmem:[%s9279_s1 + $0xf0] sm:$0xff]  }
  0xae   : > { %6525 = vmatmul.mubr.msk.bf16.gmra.mrb[12].mxu1 %vm795_vm3, %v5640_v47  ;;  %6712 = vmatprep.mubr.msk.bf16.mxu0 %vm795_vm3, %v7145_v53  ;;  %v8029_v47 = vsel %vm7617_vm6, %v5671_v31, %v1385_v52  ;;  %v5673_v53 = vrot.slane %v1322_v34, 9  ;;  %v1408_v52 = vrot.slane %v1406_v26, 4  ;;  %v8080_v31 = vld [vmem:[%s7357_s10 + $0x60] sm:$0xe]  ;;  %v3878_v34 = vshrl.u32 %v6049_v24, 16 }
  0xaf   : > { %6528 = vmatprep.mubr.msk.bf16.mxu1 %vm795_vm3, %v5641_v2  ;;  %v8039_v2 = vsel %vm7617_vm6, %v1387_v0, %v1388_v15  ;;  %v3881_v0 = vshll.u32 %v6049_v24, 16  ;;  %v5675_v15 = vrot.slane %v1324_v22, 9  ;;  %v7219_v22 = vld [vmem:[%s7357_s10 + $0x58] sm:$0xf]  ;;  %v5677_v5 = vrot.slane %v8080_v31, 9  ;;  %v7160_v31 = vld [vmem:[%s7357_s10 + $0x60] sm:$0xff]  }
  0xb0   : > { %v8093_v37 = vsel %vm7617_vm6, %v1408_v52, %v1409_v56  ;;  %v1420_v24 = vrot.slane %v7219_v22, 5  ;;  %v6053_v52 = vld [vmem:[%s7357_s10 + $0x28] sm:$0xf]  ;;  %v3880_v4 = vrot.slane %v3878_v34, 4  ;;  %v7222_v22 = vld [vmem:[%s7357_s10 + $0x70] sm:$0xf] }
  0xb1   : > { %v3883_v56 = vrot.slane %v3881_v0, 5  ;;  %v8137_v0 = vld [vmem:[%s9279_s1 + $0x100] sm:$0xff]   ;;  %v7223_v26 = vld [vmem:[%s7357_s10 + $0x68] sm:$0x1] }
  0xb2   : > { %v1430_v11 = vrot.slane %v7223_v26, 5  ;;  %v7224_v26 = vld [vmem:[%s7357_s10 + $0x74] sm:$0x1]  ;;  %v8164_v62 = vsel %vm7617_vm6, %v5676_v21, %v1420_v24 }
  0xb5   : > { %6713 = vmatmul.mubr.msk.bf16.vlgmr.msra.gmra.mrb[0].mxu0 %vm795_vm3, %v7148_v20  ;;  %v7152_v20 = vld [vmem:[%s7357_s10 + $0x3c] sm:$0xff]  }
  0xb6   : > { %6529 = vmatmul.mubr.msk.bf16.gmra.mrb[16].mxu1 %vm795_vm3, %v5642_v33  ;;  %6745 = vmatpush3.bf16.msra.mxu0 %v7749_v51  ;;  %v1413_v33 = vrot.slane %v7947_v36, 5  ;;  %v8073_v36 = vsel %vm7617_vm6, %v5673_v53, %v1399_v17  ;;  %v3891_v17 = vshrl.u32 %v6050_v6, 16  ;;  %v1416_v53 = vrot.slane %v7218_v25, 5  ;;  %v7220_v6 = vld [vmem:[%s7357_s10 + $0x5c] sm:$0x1] }
  0xb7   : > { %6532 = vmatprep.mubr.msk.bf16.mxu1 %vm795_vm3, %v5643_v19  ;;  %6716 = vmatprep.mubr.msk.bf16.mxu0 %vm795_vm3, %v7150_v59  ;;  %v1423_v3 = vrot.slane %v7220_v6, 5  ;;  %v1434_v6 = vrot.slane %v7222_v22, 5  ;;  %v3915_v25 = vshrl.u32 %v6053_v52, 16  ;;  %v6054_v19 = vld [vmem:[%s7357_s10 + $0x2c] sm:$0x1] }
  0xb8   : > { %6746 = vmatprep.subr.bf16.mxu0 %v7156_v8  ;;  %v1415_v38 = vrot.slane %v1413_v33, 4  ;;  %v8122_v27 = vsel %vm7617_vm6, %v5675_v15, %v1413_v33  ;;  %v3902_v33 = vshrl.u32 %v6052_v18, 16  ;;  %v3905_v15 = vshll.u32 %v6052_v18, 16 }
  0xb9   : > { %v3939_v18 = vshrl.u32 %v6056_v58, 16  ;;  %v1328_v58 = vld [vmem:[%s7357_s10 + $0x78] sm:$0xe] }
  0xba   : > { %6747 = vmatpush3.bf16.msra.mxu0 %v7156_v8  ;;  %v7171_v8 = vld [vmem:[%s9279_s1 + $0xf8] sm:$0xff]   ;;  %v8132_v34 = vsel %vm7617_vm6, %v1415_v38, %v1416_v53  ;;  %v3904_v22 = vrot.slane %v3902_v33, 4  ;;  %v3907_v51 = vrot.slane %v3905_v15, 5  ;;  %v3921_v33 = vshll.u32 %v6054_v19, 16 }
  0xbb   : > { %6748 = vmatprep.subr.bf16.mxu0 %v7165_v49  ;;  %v7164_v15 = vld [vmem:[%s7357_s10 + $0x78] sm:$0xff]  }
  0xbd   : > { %6717 = vmatmul.mubr.msk.bf16.gmra.mrb[4].mxu0 %vm795_vm3, %v7152_v20  ;;  %v6055_v20 = vld [vmem:[%s7357_s10 + $0x30] sm:$0xf] }
  0xbe   : > { %6533 = vmatmul.mubr.msk.bf16.gmra.mrb[20].mxu1 %vm795_vm3, %v5644_v35  ;;  %6720 = vmatprep.mubr.msk.bf16.mxu0 %vm795_vm3, %v7155_v14  ;;  %v1427_v35 = vrot.slane %v7221_v10, 5  ;;  %v8127_v14 = vld [vmem:[%s7357_s10 + $0x6c] sm:$0xe]  ;;  %v3911_v10 = vshll.u32 %v6053_v52, 16  ;;  %v3926_v38 = vshrl.u32 %v6055_v20, 16  ;;  %v3929_v53 = vshll.u32 %v6055_v20, 16 }
  0xbf   : > { %6536 = vmatprep.mubr.msk.bf16.mxu1 %vm795_vm3, %v5645_v45  ;;  %6749 = vmatpush3.bf16.msra.mxu0 %v7165_v49  ;;  %v3893_v45 = vrot.slane %v3891_v17, 4  ;;  %v3897_v49 = vshll.u32 %v6051_v55, 16  ;;  %v1422_v17 = vrot.slane %v1420_v24, 4  ;;  %v3884_v55 = vor.u32 %v3883_v56, %v3880_v4 }
  0xc0   : > { %6750 = vmatprep.subr.bf16.mxu0 %v7171_v8  ;;  %v1429_v30 = vrot.slane %v1427_v35, 4  ;;  %v5678_v52 = vrot.slane %v8127_v14, 9  ;;  %v1437_v4 = vrot.slane %v7224_v26, 5  ;;  %v8154_v56 = vrot.slane %v3911_v10, 5 }
  0xc1   : > { %v3894_v59 = vor.u32 %v3893_v45, %v8124_v32  ;;  %v8144_v16 = vrot.slane %v3897_v49, 5  ;;  %v3917_v20 = vrot.slane %v3915_v25, 4  ;;  %v6057_v45 = vld [vmem:[%s7357_s10 + $0x38] sm:$0x1]  ;;  %v9300_v14 = vcombine.low %v7758_v61, %v7765_v60 }
  0xc2   : > { %v8168_v41 = vsel %vm7617_vm6, %v1422_v17, %v1423_v3  ;;  %v3885_v25 = vrot.slane %v3884_v55, 4  ;;  %v8170_v61 = vrot.slane %v3935_v9, 5  ;;  %v3941_v60 = vrot.slane %v3939_v18, 4  ;;  %v7162_v3 = vld [vmem:[%s7357_s10 + $0x6c] sm:$0xff]   ;;  %v7225_v17 = vld [vmem:[%s7357_s10 + $0x7c] sm:$0xf] }
  0xc3   : > { %6751 = vmatpush3.bf16.msra.mxu0 %v7171_v8  ;;  %v1436_v8 = vrot.slane %v1434_v6, 4  ;;  %v3895_v49 = vrot.slane %v3894_v59, 4  ;;  %v8176_v21 = vsel %vm7617_vm6, %v5677_v5, %v1427_v35  ;;  %v3908_v24 = vor.u32 %v3907_v51, %v3904_v22  ;;  %v7226_v22 = vld [vmem:[%s7357_s10 + $0x88] sm:$0xf] }
  0xc4   : > { %6784 = vmatprep.subr.bf16.mxu0 %v8137_v0  ;;  %v3918_v9 = vor.u32 %v3917_v20, %v8154_v56  ;;  %v1441_v10 = vrot.slane %v7225_v17, 5  ;;  %v8187_v5 = vsel %vm7617_vm6, %v1429_v30, %v1430_v11  ;;  %v8191_v51 = vsel %vm7617_vm6, %v5678_v52, %v1434_v6  ;;  %v1329_v11 = vld [vmem:[%s7357_s10 + $0x84] sm:$0xe]  ;;  %v6059_v52 = vld [vmem:[%s7357_s10 + $0x40] sm:$0xf] }
  0xc5   : > { %6721 = vmatmul.mubr.msk.bf16.gmra.mrb[8].mxu0 %vm795_vm3, %v7158_v28  ;;  %v3931_v28 = vrot.slane %v3929_v53, 5  ;;  %v8195_v19 = vsel %vm7617_vm6, %v1436_v8, %v1437_v4  ;;  %v6058_v53 = vld [vmem:[%s7357_s10 + $0x3c] sm:$0xf]  ;;  %v3890_v55 = vsel %vm7384_vm2, %v3885_v25, %v8124_v32  ;;  %v3900_v18 = vsel %vm7384_vm2, %v3895_v49, %v8144_v16  ;;  %v7227_v20 = vld [vmem:[%s7357_s10 + $0x80] sm:$0x1] }
  0xc6   : > { %6537 = vmatmul.mubr.msk.bf16.gmra.mrb[24].mxu1 %vm795_vm3, %v5646_v39  ;;  %6724 = vmatprep.mubr.msk.bf16.mxu0 %vm795_vm3, %v7160_v31  ;;  %v3928_v39 = vrot.slane %v3926_v38, 4  ;;  %v3945_v38 = vshll.u32 %v6057_v45, 16  ;;  %v3942_v30 = vor.u32 %v3941_v60, %v8170_v61  ;;  %v1448_v6 = vrot.slane %v7226_v22, 5  ;;  %v7167_v22 = vld [vmem:[%s7357_s10 + $0x90] sm:$0xff]  }
  0xc7   : > { %6540 = vmatprep.mubr.msk.bf16.mxu1 %vm795_vm3, %v9300_v14  ;;  %v3909_v26 = vrot.slane %v3908_v24, 4  ;;  %v3923_v8 = vrot.slane %v3921_v33, 5  ;;  %v5679_v4 = vrot.slane %v1328_v58, 9  ;;  %v1444_v45 = vrot.slane %v7227_v20, 5  ;;  %v7166_v33 = vld [vmem:[%s7357_s10 + $0x84] sm:$0xff]  }
  0xc8   : > { %v3932_v35 = vor.u32 %v3931_v28, %v3928_v39  ;;  %v9301_v32 = vcombine.low %v7787_v50, %v7790_v13  ;;  %v3919_v16 = vrot.slane %v3918_v9, 4  ;;  %v1443_v14 = vrot.slane %v1441_v10, 4  ;;  %v6060_v13 = vld [vmem:[%s7357_s10 + $0x44] sm:$0x1]  ;;  %v7228_v58 = vld [vmem:[%s7357_s10 + $0x8c] sm:$0x1] }
  0xc9   : > { %v3947_v39 = vrot.slane %v3945_v38, 5  ;;  %v3950_v28 = vshrl.u32 %v6058_v53, 16  ;;  %v9302_v25 = vcombine.low %v8008_v43, %v8021_v63  ;;  %v5680_v50 = vrot.slane %v1329_v11, 9  ;;  %v6061_v43 = vld [vmem:[%s7357_s10 + $0x48] sm:$0xf] }
  0xca   : > { %v3933_v49 = vrot.slane %v3932_v35, 4  ;;  %v3953_v60 = vshll.u32 %v6058_v53, 16  ;;  %v3959_v24 = vshll.u32 %v6059_v52, 16  ;;  %v1450_v9 = vrot.slane %v1448_v6, 4  ;;  %v8234_v11 = vld [vmem:[%s7357_s10 + $0x4c] sm:$0xf] }
  0xcb   : > { %v1451_v17 = vrot.slane %v7228_v58, 5  ;;  %v3963_v38 = vshrl.u32 %v6059_v52, 16  ;;  %v8231_v53 = vsel %vm7617_vm6, %v5679_v4, %v1441_v10  ;;  %v7169_v52 = vld [vmem:[%s9279_s1 + $0x68] sm:$0xff]   ;;  %v8248_v10 = vsel %vm7617_vm6, %v1443_v14, %v1444_v45  ;;  %v8251_v20 = vld [vmem:[%s7357_s10 + $0x58] sm:$0xf] }
  0xcc   : > { %v3952_v4 = vrot.slane %v3950_v28, 4  ;;  %v3969_v14 = vshll.u32 %v6060_v13, 16  ;;  %v1330_v28 = vld [vmem:[%s7357_s10 + $0x90] sm:$0xe]  ;;  %v3974_v58 = vshrl.u32 %v6061_v43, 16  ;;  %v3977_v35 = vshll.u32 %v6061_v43, 16 }
  0xcd   : > { %6725 = vmatmul.mubr.msk.bf16.gmra.mrb[12].mxu0 %vm795_vm3, %v7162_v3  ;;  %v3943_v3 = vrot.slane %v3942_v30, 4  ;;  %v6064_v30 = vld [vmem:[%s7357_s10 + $0x54] sm:$0xf]  ;;  %v8266_v45 = vsel %vm7617_vm6, %v1450_v9, %v1451_v17  ;;  %v5681_v9 = vrot.slane %v1330_v28, 9  ;;  %v6067_v17 = vld [vmem:[%s7357_s10 + $0x60] sm:$0xf] }
  0xce   : > { %6541 = vmatmul.mubr.msk.bf16.gmra.mrb[28].mxu1 %vm795_vm3, %v9301_v32  ;;  %6728 = vmatprep.mubr.msk.bf16.mxu0 %vm795_vm3, %v7164_v15  ;;  %v8225_v15 = vcombine.low %v3890_v55, %v3900_v18  ;;  %v3914_v55 = vsel %vm7384_vm2, %v3909_v26, %v8154_v56  ;;  %v3924_v18 = vsel %vm7384_vm2, %v3919_v16, %v3923_v8  ;;  %v3955_v56 = vrot.slane %v3953_v60, 5  ;;  %v7230_v63 = vld [vmem:[%s7357_s10 + $0x98] sm:$0x1] }
  0xcf   : > { %6552 = vmatprep.mubr.msk.bf16.mxu1 %vm795_vm3, %v9302_v25  ;;  %v3938_v32 = vsel %vm7384_vm2, %v3933_v49, %v8170_v61  ;;  %v8258_v25 = vsel %vm7617_vm6, %v5680_v50, %v1448_v6  ;;  %v8260_v26 = vrot.slane %v3959_v24, 5  ;;  %v3948_v8 = vsel %vm7384_vm2, %v3943_v3, %v3947_v39  ;;  %v8277_v39 = vld [vmem:[%s7357_s10 + $0x50] sm:$0x1] }
  0xd0   : > { %v3965_v16 = vrot.slane %v3963_v38, 4  ;;  %v3983_v61 = vshll.u32 %v8234_v11, 16  ;;  %v3987_v6 = vshrl.u32 %v8234_v11, 16  ;;  %v9303_v49 = vcombine.low %v8012_v7, %v8025_v46  ;;  %v8292_v38 = vld [vmem:[%s7357_s10 + $0x64] sm:$0xf] }
  0xd1   : > { %v3998_v50 = vshrl.u32 %v6064_v30, 16  ;;  %v4001_v13 = vshll.u32 %v6064_v30, 16  ;;  %v4007_v60 = vshll.u32 %v8251_v20, 16  ;;  %v4011_v24 = vshrl.u32 %v8251_v20, 16  ;;  %9305 = vst [vmem:[#allocation4_spill] sm:$0xff] %v8292_v38 }
  0xd2   : > { %v9304_v3 = vcombine.low %v8029_v47, %v8039_v2  ;;  %v8286_v7 = vcombine.low %v3914_v55, %v3924_v18  ;;  %v7175_v47 = vld [vmem:[%s9279_s1 + $0x70] sm:$0xff]   ;;  %v8299_v2 = vcombine.low %v3938_v32, %v3948_v8  ;;  %v3966_v30 = vor.u32 %v3965_v16, %v8260_v26  ;;  %v7170_v18 = vld [vmem:[%s7357_s10 + $0xa8] sm:$0xff]  }
  0xd3   : > { %v8304_v55 = vrot.slane %v3969_v14, 5  ;;  %v3989_v28 = vrot.slane %v3987_v6, 4  ;;  %v4000_v32 = vrot.slane %v3998_v50, 4  ;;  %v4003_v8 = vrot.slane %v4001_v13, 5  ;;  %v7229_v16 = vld [vmem:[%s7357_s10 + $0x94] sm:$0xf] }
  0xd4   : > { %v4013_v46 = vrot.slane %v4011_v24, 4  ;;  %v1455_v14 = vrot.slane %v7229_v16, 5  ;;  %v4022_v6 = vshrl.u32 %v6067_v17, 16  ;;  %v4025_v59 = vshll.u32 %v6067_v17, 16 }
  0xd5   : > { %6729 = vmatmul.mubr.msk.bf16.gmra.mrb[16].mxu0 %vm795_vm3, %v7166_v33  ;;  %v3956_v33 = vor.u32 %v3955_v56, %v3952_v4  ;;  %v3976_v4 = vrot.slane %v3974_v58, 4  ;;  %v8307_v56 = vrot.slane %v3983_v61, 5  ;;  %v1458_v58 = vrot.slane %v7230_v63, 5  ;;  %v8320_v61 = vld [vmem:[%s7357_s10 + $0x5c] sm:$0x1] }
  0xd6   : > { %6553 = vmatmul.mubr.msk.bf16.vlgmr.msra.gmra.mrb[0].mxu1 %vm795_vm3, %v9303_v49  ;;  %6732 = vmatprep.mubr.msk.bf16.mxu0 %vm795_vm3, %v7167_v22  ;;  %v3979_v22 = vrot.slane %v3977_v35, 5  ;;  %v8310_v49 = vld [vmem:[%s7357_s10 + $0x9c] sm:$0xe]  ;;  %v3993_v35 = vshll.u32 %v8277_v39, 16  ;;  %9306 = vst [vmem:[#allocation5_spill] sm:$0xff] %v8320_v61  ;;  %v4031_v50 = vshll.u32 %v8292_v38, 16  ;;  %v9307_v17 = vcombine.low %v8048_v23, %v8052_v12 }
  0xd7   : > { %6585 = vmatpush3.bf16.msra.mxu1 %v7938_v40  ;;  %6556 = vmatprep.mubr.msk.bf16.mxu1 %vm795_vm3, %v9304_v3  ;;  %v7168_v40 = vld [vmem:[%s7357_s10 + $0x9c] sm:$0xff]   ;;  %v8312_v3 = vrot.slane %v4007_v60, 5  ;;  %v8314_v43 = vrot.slane %v3956_v33, 4  ;;  %v4035_v13 = vshrl.u32 %v8292_v38, 16  ;;  %v8324_v60 = vrot.slane %v3966_v30, 4 }
  0xd8   : > { %6586 = vmatprep.subr.bf16.mxu1 %v7169_v52  ;;  %v3980_v24 = vor.u32 %v3979_v22, %v3976_v4  ;;  %v3990_v63 = vor.u32 %v3989_v28, %v8307_v56  ;;  %v7231_v33 = vld [vmem:[%s7357_s10 + $0xa0] sm:$0xf]  ;;  %v8338_v30 = vsel %vm7617_vm6, %v5681_v9, %v1455_v14  ;;  %v4004_v31 = vor.u32 %v4003_v8, %v4000_v32  ;;  %v1332_v9 = vld [vmem:[%s7357_s10 + $0xa8] sm:$0xe]  ;;  %v7232_v28 = vld [vmem:[%s7357_s10 + $0xac] sm:$0xf] }
  0xd9   : > { %v1462_v16 = vrot.slane %v7231_v33, 5  ;;  %v4014_v44 = vor.u32 %v4013_v46, %v8312_v3  ;;  %v4017_v4 = vshll.u32 %v8320_v61, 16  ;;  %v9308_v22 = vcombine.low %v8073_v36, %v8077_v48  ;;  %v1333_v61 = vld [vmem:[%s7357_s10 + $0xb4] sm:$0xe] }
  0xda   : > { %v1457_v23 = vrot.slane %v1455_v14, 4  ;;  %v3995_v12 = vrot.slane %v3993_v35, 5  ;;  %v1469_v32 = vrot.slane %v7232_v28, 5  ;;  %v4024_v46 = vrot.slane %v4022_v6, 4  ;;  %v7233_v35 = vld [vmem:[%s7357_s10 + $0xa4] sm:$0x1] }
  0xdb   : > { %6587 = vmatpush3.bf16.msra.mxu1 %v7169_v52  ;;  %v7177_v52 = vld [vmem:[%s9279_s1 + $0x78] sm:$0xff]   ;;  %v4027_v8 = vrot.slane %v4025_v59, 5  ;;  %v8350_v33 = vrot.slane %v4031_v50, 5  ;;  %v4037_v36 = vrot.slane %v4035_v13, 4  ;;  %v3981_v48 = vrot.slane %v3980_v24, 4  ;;  %v7173_v59 = vld [vmem:[%s7357_s10 + $0xc0] sm:$0xff]  }
  0xdc   : > { %6588 = vmatprep.subr.bf16.mxu1 %v7175_v47  ;;  %v1464_v14 = vrot.slane %v1462_v16, 4  ;;  %v4005_v38 = vrot.slane %v4004_v31, 4  ;;  %v4019_v6 = vrot.slane %v4017_v4, 5  ;;  %v5683_v28 = vrot.slane %v1332_v9, 9 }
  0xdd   : > { %6733 = vmatmul.mubr.msk.bf16.gmra.mrb[20].mxu0 %vm795_vm3, %v7168_v40  ;;  %v5682_v40 = vrot.slane %v8310_v49, 9  ;;  %v7172_v49 = vld [vmem:[%s7357_s10 + $0xb4] sm:$0xff]   ;;  %v3962_v50 = vsel %vm7384_vm2, %v8314_v43, %v8260_v26  ;;  %v3972_v13 = vsel %vm7384_vm2, %v8324_v60, %v8304_v55  ;;  %v1471_v24 = vrot.slane %v1469_v32, 4  ;;  %v6070_v26 = vld [vmem:[%s7357_s10 + $0x6c] sm:$0xf] }
  0xde   : > { %6557 = vmatmul.mubr.msk.bf16.gmra.mrb[4].mxu1 %vm795_vm3, %v9307_v17  ;;  %6736 = vmatprep.mubr.msk.bf16.mxu0 %vm795_vm3, %v7170_v18  ;;  %v3991_v18 = vrot.slane %v3990_v63, 4  ;;  %v1465_v17 = vrot.slane %v7233_v35, 5  ;;  %v7234_v63 = vld [vmem:[%s7357_s10 + $0xb0] sm:$0x1]  ;;  %v8369_v31 = vsel %vm7617_vm6, %v1457_v23, %v1458_v58  ;;  %v4038_v4 = vor.u32 %v4037_v36, %v8350_v33 }
  0xdf   : > { %6560 = vmatprep.mubr.msk.bf16.mxu1 %vm795_vm3, %v9308_v22  ;;  %6589 = vmatpush3.bf16.msra.mxu1 %v7175_v47  ;;  %v8354_v22 = vld [vmem:[%s7357_s10 + $0x68] sm:$0x1]  ;;  %v4015_v47 = vrot.slane %v4014_v44, 4  ;;  %v1472_v35 = vrot.slane %v7234_v63, 5  ;;  %v4028_v44 = vor.u32 %v4027_v8, %v4024_v46  ;;  %v3986_v43 = vsel %vm7384_vm2, %v3981_v48, %v8307_v56 }
  0xe0   : > { %6590 = vmatprep.subr.bf16.mxu1 %v7177_v52  ;;  %v4041_v9 = vshll.u32 %v8354_v22, 16  ;;  %v3996_v55 = vsel %vm7384_vm2, %v3991_v18, %v3995_v12  ;;  %v8382_v58 = vsel %vm7617_vm6, %v5682_v40, %v1462_v16  ;;  %v8386_v60 = vsel %vm7617_vm6, %v1464_v14, %v1465_v17 }
  0xe1   : > { %v9310_v56 = vor.u32 %v7969_v54, %v7967_v1  ;;  %v9312_v16 = vcombine.low %v8089_v42, %v8093_v37  ;;  %v4010_v12 = vsel %vm7384_vm2, %v4005_v38, %v8312_v3  ;;  %v4020_v40 = vsel %vm7384_vm2, %v4015_v47, %v4019_v6  ;;  %v7236_v38 = vld [vmem:[%s7357_s10 + $0xb8] sm:$0xf]  ;;  %v8444_v47 = vld [vmem:[%s7357_s10 + $0x7c] sm:$0xf]  ;;  %v6076_v6 = vld [vmem:[%s7357_s10 + $0x84] sm:$0xf] }
  0xe2   : > { %v8411_v46 = vsel %vm7617_vm6, %v5683_v28, %v1469_v32  ;;  %v9313_v54 = vcombine.low %v8122_v27, %v8132_v34  ;;  %v8420_v42 = vsel %vm7617_vm6, %v1471_v24, %v1472_v35  ;;  %v5684_v37 = vrot.slane %v1333_v61, 9  ;;  %v8424_v32 = vld [vmem:[%s7357_s10 + $0x70] sm:$0xf]  ;;  %9315 = vst [vmem:[#allocation9_spill] sm:$0xff] %v8444_v47  ;;  %v8456_v35 = vld [vmem:[%s7357_s10 + $0x88] sm:$0xf] }
  0xe3   : > { %6591 = vmatpush3.bf16.msra.mxu1 %v7177_v52  ;;  %v8391_v52 = vld [vmem:[%s9279_s1 + $0x80] sm:$0xff]   ;;  %v8397_v23 = vrot.slane %v9310_v56, 4  ;;  %v1476_v3 = vrot.slane %v7236_v38, 5  ;;  %9314 = vst [vmem:[#allocation8_spill] sm:$0xff] %v8424_v32  ;;  %v4046_v8 = vshrl.u32 %v6070_v26, 16  ;;  %v8426_v27 = vcombine.low %v3962_v50, %v3972_v13  ;;  %v7174_v28 = vld [vmem:[%s7357_s10 + $0xcc] sm:$0xff]  }
  0xe4   : > { %9309 = vst [vmem:[#allocation6_spill] sm:$0xff] %v8391_v52  ;;  %6824 = vmatprep.subr.bf16.mxu1 %v8391_v52  ;;  %v8428_v34 = vrot.slane %v4028_v44, 4  ;;  %v8430_v36 = vrot.slane %v4038_v4, 4  ;;  %v8432_v48 = vrot.slane %v4041_v9, 5  ;;  %v8436_v61 = vcombine.low %v3986_v43, %v3996_v55  ;;  %v8451_v50 = vld [vmem:[%s7357_s10 + $0xbc] sm:$0x1] }
  0xe5   : > { %9311 = vst [vmem:[#allocation7_spill] sm:$0xff] %v8397_v23  ;;  %6737 = vmatmul.mubr.msk.bf16.gmra.mrb[24].mxu0 %vm795_vm3, %v7172_v49  ;;  %v8440_v17 = vcombine.low %v4010_v12, %v4020_v40  ;;  %v6073_v49 = vld [vmem:[%s7357_s10 + $0x78] sm:$0xf]  ;;  %v4049_v24 = vshll.u32 %v6070_v26, 16  ;;  %v4055_v63 = vshll.u32 %v8424_v32, 16  ;;  %9316 = vst [vmem:[#allocation10_spill] sm:$0xff] %v8456_v35  ;;  %v8460_v44 = vsel %vm7617_vm6, %v5684_v37, %v1476_v3 }
  0xe6   : > { %6561 = vmatmul.mubr.msk.bf16.gmra.mrb[8].mxu1 %vm795_vm3, %v9312_v16  ;;  %6740 = vmatprep.mubr.msk.bf16.mxu0 %vm795_vm3, %v7173_v59  ;;  %v8462_v4 = vrot.slane %v1476_v3, 4  ;;  %v8464_v9 = vrot.slane %v4046_v8, 4  ;;  %v4059_v43 = vshrl.u32 %v8424_v32, 16  ;;  %v6079_v55 = vld [vmem:[%s7357_s10 + $0x90] sm:$0xf]  ;;  %v4070_v16 = vshrl.u32 %v6073_v49, 16 }
  0xe7   : > { %6564 = vmatprep.mubr.msk.bf16.mxu1 %vm795_vm3, %v9313_v54  ;;  %v4073_v12 = vshll.u32 %v6073_v49, 16  ;;  %v8477_v40 = vld [vmem:[%s7357_s10 + $0x94] sm:$0xf]  ;;  %v4079_v37 = vshll.u32 %v8444_v47, 16  ;;  %v4083_v38 = vshrl.u32 %v8444_v47, 16  ;;  %v4094_v3 = vshrl.u32 %v6076_v6, 16 }
  0xe8   : > { %9317 = vst [vmem:[#allocation11_spill] sm:$0xff] %v8477_v40  ;;  %v8480_v54 = vld [vmem:[%s7357_s10 + $0x74] sm:$0x1]  ;;  %v4097_v8 = vshll.u32 %v6076_v6, 16  ;;  %v9319_v59 = vcombine.low %v8164_v62, %v8168_v41  ;;  %v4103_v49 = vshll.u32 %v8456_v35, 16  ;;  %v4107_v14 = vshrl.u32 %v8456_v35, 16 }
  0xe9   : > { %9318 = vst [vmem:[#allocation12_spill] sm:$0xff] %v8480_v54  ;;  %v4118_v26 = vshrl.u32 %v6079_v55, 16  ;;  %v4121_v56 = vshll.u32 %v6079_v55, 16  ;;  %v9320_v18 = vcombine.low %v8176_v21, %v8187_v5  ;;  %v4051_v62 = vrot.slane %v4049_v24, 5  ;;  %v8500_v6 = vld [vmem:[%s7357_s10 + $0x80] sm:$0x1] }
  0xea   : > { %v8497_v41 = vrot.slane %v4055_v63, 5  ;;  %v4061_v55 = vrot.slane %v4059_v43, 4  ;;  %v4065_v13 = vshll.u32 %v8480_v54, 16  ;;  %v4072_v21 = vrot.slane %v4070_v16, 4  ;;  %v8509_v24 = vld [vmem:[%s7357_s10 + $0x8c] sm:$0x1] }
  0xeb   : > { %v4075_v5 = vrot.slane %v4073_v12, 5  ;;  %v8506_v1 = vrot.slane %v4079_v37, 5  ;;  %v4096_v63 = vrot.slane %v4094_v3, 4  ;;  %v4099_v52 = vrot.slane %v4097_v8, 5  ;;  %v8517_v43 = vld [vmem:[%s7357_s10 + $0x98] sm:$0x1] }
  0xec   : > { %v8511_v35 = vrot.slane %v4103_v49, 5  ;;  %v4109_v23 = vrot.slane %v4107_v14, 4  ;;  %v4120_v47 = vrot.slane %v4118_v26, 4  ;;  %v4123_v32 = vrot.slane %v4121_v56, 5  ;;  %9322 = vst [vmem:[#allocation14_spill] sm:$0xff] %v8517_v43 }
  0xed   : > { %6741 = vmatmul.mubr.msk.bf16.gmra.mrb[28].mxu0 %vm795_vm3, %v7174_v28  ;;  %v4127_v28 = vshll.u32 %v8477_v40, 16  ;;  %v4052_v3 = vor.u32 %v4051_v62, %v8464_v9  ;;  %v4062_v8 = vor.u32 %v4061_v55, %v8497_v41  ;;  %v4076_v14 = vor.u32 %v4075_v5, %v4072_v21 }
  0xee   : > { %6565 = vmatmul.mubr.msk.bf16.gmra.mrb[12].mxu1 %vm795_vm3, %v9319_v59  ;;  %6752 = vmatprep.mubr.msk.bf16.mxu0 %vm795_vm3, %v8225_v15  ;;  %v4131_v59 = vshrl.u32 %v8477_v40, 16  ;;  %v4085_v15 = vrot.slane %v4083_v38, 4  ;;  %v8514_v40 = vld [vmem:[%s7357_s10 + $0xa0] sm:$0xf]  ;;  %v7178_v38 = vld [vmem:[%s9279_s1 + $0x108] sm:$0xff]   ;;  %v4089_v26 = vshll.u32 %v8500_v6, 16  ;;  %v4100_v49 = vor.u32 %v4099_v52, %v4096_v63 }
  0xef   : > { %6568 = vmatprep.mubr.msk.bf16.mxu1 %vm795_vm3, %v9320_v18  ;;  %v6082_v18 = vld [vmem:[%s7357_s10 + $0x9c] sm:$0xf]  ;;  %9321 = vst [vmem:[#allocation13_spill] sm:$0xff] %v8514_v40  ;;  %v8519_v54 = vrot.slane %v4127_v28, 5  ;;  %v4151_v28 = vshll.u32 %v8514_v40, 16  ;;  %v4110_v9 = vor.u32 %v4109_v23, %v8511_v35  ;;  %v4113_v62 = vshll.u32 %v8509_v24, 16 }
  0xf0   : > { %v4133_v16 = vrot.slane %v4131_v59, 4  ;;  %v4142_v12 = vshrl.u32 %v6082_v18, 16  ;;  %v4145_v37 = vshll.u32 %v6082_v18, 16  ;;  %v4086_v56 = vor.u32 %v4085_v15, %v8506_v1 }
  0xf1   : > { %v4155_v59 = vshrl.u32 %v8514_v40, 16  ;;  %v9323_v18 = vcombine.low %v8191_v51, %v8195_v19  ;;  %v4124_v55 = vor.u32 %v4123_v32, %v4120_v47  ;;  %v4137_v52 = vshll.u32 %v8517_v43, 16  ;;  %v7180_v19 = vld [vmem:[%s9279_s1 + $0x110] sm:$0xff]   ;;  %v6085_v47 = vld [vmem:[%s7357_s10 + $0xa8] sm:$0xf] }
  0xf2   : > { %v9324_v21 = vcombine.low %v8231_v53, %v8248_v10  ;;  %v4067_v51 = vrot.slane %v4065_v13, 5  ;;  %v4144_v23 = vrot.slane %v4142_v12, 4  ;;  %v4147_v5 = vrot.slane %v4145_v37, 5  ;;  %v8554_v40 = vld [vmem:[%s7357_s10 + $0xa4] sm:$0x1] }
  0xf3   : > { %v4063_v32 = vrot.slane %v4062_v8, 4  ;;  %v4077_v53 = vrot.slane %v4076_v14, 4  ;;  %v4091_v10 = vrot.slane %v4089_v26, 5  ;;  %v4087_v13 = vrot.slane %v4086_v56, 4 }
  0xf4   : > { %v4101_v15 = vrot.slane %v4100_v49, 4  ;;  %v8551_v63 = vrot.slane %v4151_v28, 5  ;;  %v4125_v12 = vrot.slane %v4124_v55, 4  ;;  %v4139_v37 = vrot.slane %v4137_v52, 5 }
  0xf5   : > { %6753 = vmatmul.mubr.msk.bf16.vlgmr.msra.gmra.mrb[0].mxu0 %vm795_vm3, %v8286_v7  ;;  %v4134_v7 = vor.u32 %v4133_v16, %v8519_v54  ;;  %v4115_v16 = vrot.slane %v4113_v62, 5  ;;  %v4148_v43 = vor.u32 %v4147_v5, %v4144_v23  ;;  %v4166_v8 = vshrl.u32 %v6085_v47, 16 }
  0xf6   : > { %6569 = vmatmul.mubr.msk.bf16.gmra.mrb[16].mxu1 %vm795_vm3, %v9323_v18  ;;  %6785 = vmatpush3.bf16.msra.mxu0 %v8137_v0  ;;  %v4053_v0 = vrot.slane %v4052_v3, 4  ;;  %v4157_v18 = vrot.slane %v4155_v59, 4  ;;  %v8557_v3 = vld [vmem:[%s7357_s10 + $0xac] sm:$0xf]  ;;  %v4169_v14 = vshll.u32 %v6085_v47, 16  ;;  %v9325_v26 = vrot.slane %v8451_v50, 5 }
  0xf7   : > { %6572 = vmatprep.mubr.msk.bf16.mxu1 %vm795_vm3, %v9324_v21  ;;  %6756 = vmatprep.mubr.msk.bf16.mxu0 %vm795_vm3, %v8299_v2  ;;  %v4111_v21 = vrot.slane %v4110_v9, 4  ;;  %v4135_v2 = vrot.slane %v4134_v7, 4  ;;  %v4082_v28 = vsel %vm7384_vm2, %v4077_v53, %v8506_v1  ;;  %v4092_v50 = vsel %vm7384_vm2, %v4087_v13, %v4091_v10  ;;  %v7185_v9 = vld [vmem:[%s9279_s1 + $0x118] sm:$0xff]   ;;  %v6146_v47 = vld [vmem:[%s7357_s10 + $0x54] sm:$0xe] }
  0xf8   : > { %6786 = vmatprep.subr.bf16.mxu0 %v7178_v38  ;;  %v8564_v56 = vsel %vm7617_vm6, %v8462_v4, %v9325_v26  ;;  %v4058_v49 = vsel %vm7384_vm2, %v4053_v0, %v8497_v41  ;;  %v4106_v4 = vsel %vm7384_vm2, %v4101_v15, %v8511_v35  ;;  %v4158_v59 = vor.u32 %v4157_v18, %v8551_v63 }
  0xf9   : > { %v4161_v41 = vshll.u32 %v8554_v40, 16  ;;  %v9326_v1 = vcombine.low %v8258_v25, %v8266_v45  ;;  %v4116_v62 = vsel %vm7384_vm2, %v4111_v21, %v4115_v16  ;;  %v4130_v35 = vsel %vm7384_vm2, %v4125_v12, %v8519_v54  ;;  %v8609_v54 = vld [vmem:[%s7357_s10 + $0xb0] sm:$0x1]  ;;  %v6147_v12 = vld [vmem:[%s7357_s10 + $0x60] sm:$0xe] }
  0xfa   : > { %6787 = vmatpush3.bf16.msra.mxu0 %v7178_v38  ;;  %v4068_v38 = vsel %vm7384_vm2, %v4063_v32, %v4067_v51  ;;  %v4175_v55 = vshll.u32 %v8557_v3, 16  ;;  %v4179_v52 = vshrl.u32 %v8557_v3, 16  ;;  %v6145_v51 = vld [vmem:[%s7357_s10 + $0x48] sm:$0xe]  ;;  %v9327_v25 = vcombine.low %v8338_v30, %v8369_v31  ;;  %v6088_v32 = vld [vmem:[%s7357_s10 + $0xb4] sm:$0xf] }
  0xfb   : > { %6788 = vmatprep.subr.bf16.mxu0 %v7180_v19  ;;  %v4140_v45 = vsel %vm7384_vm2, %v4135_v2, %v4139_v37  ;;  %v4168_v7 = vrot.slane %v4166_v8, 4  ;;  %v4171_v23 = vrot.slane %v4169_v14, 5  ;;  %v9328_v30 = vsel %vm7384_vm2, %v8430_v36, %v8432_v48  ;;  %v9330_v14 = vld [vmem:[#allocation5_spill] sm:$0xff] }
  0xfc   : > { %v9329_v31 = vsel %vm7384_vm2, %v8428_v34, %v8350_v33  ;;  %v5708_v5 = vcombine.low %v8460_v44, %v8564_v56  ;;  %v8625_v0 = vcombine.low %v4082_v28, %v4092_v50  ;;  %v8628_v53 = vcombine.low %v4106_v4, %v4116_v62  ;;  %v8660_v50 = vld [vmem:[%s7357_s10 + $0xb8] sm:$0xf] }
  0xfd   : > { %6757 = vmatmul.mubr.msk.bf16.gmra.mrb[4].mxu0 %vm795_vm3, %v8426_v27  ;;  %v8606_v27 = vrot.slane %v4148_v43, 4  ;;  %v8623_v43 = vcombine.low %v4058_v49, %v4068_v38  ;;  %v4159_v10 = vrot.slane %v4158_v59, 4  ;;  %v4163_v36 = vrot.slane %v4161_v41, 5  ;;  %v6148_v49 = vld [vmem:[%s7357_s10 + $0x6c] sm:$0xe] }
  0xfe   : > { %6573 = vmatmul.mubr.msk.bf16.gmra.mrb[20].mxu1 %vm795_vm3, %v9326_v1  ;;  %6760 = vmatprep.mubr.msk.bf16.mxu0 %vm795_vm3, %v8436_v61  ;;  %v6111_v61 = vcombine.low %v9329_v31, %v9328_v30  ;;  %v6161_v48 = vrot.slane %v6145_v51, 9  ;;  %v8631_v33 = vcombine.low %v4130_v35, %v4140_v45  ;;  %v8633_v34 = vrot.slane %v4175_v55, 5  ;;  %v6091_v45 = vld [vmem:[%s7357_s10 + $0xc0] sm:$0xf] }
  0xff   : > { %6576 = vmatprep.mubr.msk.bf16.mxu1 %vm795_vm3, %v9327_v25  ;;  %6789 = vmatpush3.bf16.msra.mxu0 %v7180_v19  ;;  %v4181_v13 = vrot.slane %v4179_v52, 4  ;;  %v4185_v15 = vshll.u32 %v8609_v54, 16  ;;  %v4154_v19 = vsel %vm7384_vm2, %v8606_v27, %v8551_v63  ;;  %v4172_v18 = vor.u32 %v4171_v23, %v4168_v7  ;;  %v9335_v52 = vld [vmem:[#allocation12_spill] sm:$0xff] }
 0x100   : > { %6790 = vmatprep.subr.bf16.mxu0 %v7185_v9  ;;  %v4677_v21 = vrot.slane %v8234_v11, 5  ;;  %v4680_v16 = vrot.slane %v8277_v39, 5  ;;  %v4190_v37 = vshrl.u32 %v6088_v32, 16  ;;  %v6162_v2 = vrot.slane %v6146_v47, 9 }
 0x101   : > { %v4684_v8 = vrot.slane %v8251_v20, 5  ;;  %v4687_v26 = vrot.slane %v9330_v14, 5  ;;  %v4164_v38 = vsel %vm7384_vm2, %v4159_v10, %v4163_v36  ;;  %v4193_v28 = vshll.u32 %v6088_v32, 16  ;;  %v6149_v32 = vld [vmem:[%s7357_s10 + $0x78] sm:$0xe]  ;;  %v7179_v10 = vld [vmem:[%s7357_s10 + $0xc] sm:$0xff]  }
 0x102   : > { %v8650_v63 = vsel %vm7617_vm6, %v6161_v48, %v4677_v21  ;;  %v4679_v11 = vrot.slane %v4677_v21, 4  ;;  %v9331_v39 = vcombine.low %v8382_v58, %v8386_v60  ;;  %v4182_v20 = vor.u32 %v4181_v13, %v8633_v34  ;;  %v9333_v60 = vld [vmem:[#allocation4_spill] sm:$0xff] }
 0x103   : > { %6791 = vmatpush3.bf16.msra.mxu0 %v7185_v9  ;;  %v8664_v4 = vsel %vm7617_vm6, %v6162_v2, %v4684_v8  ;;  %v4686_v59 = vrot.slane %v4684_v8, 4  ;;  %v6163_v41 = vrot.slane %v6147_v12, 9  ;;  %v9332_v9 = vcombine.low %v8411_v46, %v8420_v42  ;;  %v9334_v42 = vld [vmem:[#allocation8_spill] sm:$0xff]  ;;  %v8718_v12 = vld [vmem:[%s7357_s10 + $0xc4] sm:$0xf] }
 0x104   : > { %v8673_v58 = vsel %vm7617_vm6, %v4679_v11, %v4680_v16  ;;  %v4694_v1 = vrot.slane %v8354_v22, 5  ;;  %v6164_v62 = vrot.slane %v6148_v49, 9  ;;  %v4698_v55 = vrot.slane %v9334_v42, 5  ;;  %v8738_v49 = vld [vmem:[%s7357_s10 + $0xbc] sm:$0x1]  ;;  %v9339_v42 = vld [vmem:[#allocation10_spill] sm:$0xff] }
 0x105   : > { %6761 = vmatmul.mubr.msk.bf16.gmra.mrb[8].mxu0 %vm795_vm3, %v8440_v17  ;;  %v4691_v17 = vrot.slane %v9333_v60, 5  ;;  %v6185_v35 = vcombine.low %v8650_v63, %v8673_v58  ;;  %v8681_v46 = vsel %vm7617_vm6, %v4686_v59, %v4687_v26  ;;  %v4701_v51 = vrot.slane %v9335_v52, 5  ;;  %v6150_v26 = vld [vmem:[%s7357_s10 + $0x84] sm:$0xe]  ;;  %v9338_v59 = vld [vmem:[#allocation7_spill] sm:$0xff]  ;;  %v7181_v52 = vld [vmem:[%s7357_s10 + $0x18] sm:$0xff]  }
 0x106   : > { %6577 = vmatmul.mubr.msk.bf16.gmra.mrb[24].mxu1 %vm795_vm3, %v9331_v39  ;;  %6764 = vmatprep.mubr.msk.bf16.mxu0 %vm795_vm3, %v6111_v61  ;;  %v4199_v25 = vshll.u32 %v8660_v50, 16  ;;  %v6186_v22 = vcombine.low %v8664_v4, %v8681_v46  ;;  %v8693_v23 = vrot.slane %v4185_v15, 5  ;;  %v4203_v30 = vshrl.u32 %v8660_v50, 16  ;;  %v5832_v15 = vld [vmem:[%s7357_s10 + $0x78] sm:$0xf] }
 0x107   : > { %6580 = vmatprep.mubr.msk.bf16.mxu1 %vm795_vm3, %v9332_v9  ;;  %v8691_v27 = vsel %vm7617_vm6, %v6163_v41, %v4691_v17  ;;  %v4693_v7 = vrot.slane %v4691_v17, 4  ;;  %v8698_v31 = vsel %vm7617_vm6, %v6164_v62, %v4698_v55  ;;  %v4700_v61 = vrot.slane %v4698_v55, 4  ;;  %v7254_v46 = vld [vmem:[%s7357_s10 + $0x8c] sm:$0x1] }
 0x108   : > { %v8702_v36 = vcombine.low %v4154_v19, %v4164_v38  ;;  %v8704_v48 = vrot.slane %v4172_v18, 4  ;;  %v8706_v47 = vrot.slane %v4190_v37, 4  ;;  %v8713_v21 = vrot.slane %v4182_v20, 4 }
 0x109   : > { %v8710_v13 = vsel %vm7617_vm6, %v4693_v7, %v4694_v1  ;;  %v8715_v16 = vrot.slane %v4193_v28, 5  ;;  %v8724_v18 = vsel %vm7617_vm6, %v4700_v61, %v4701_v51  ;;  %v8726_v37 = vrot.slane %v4199_v25, 5  ;;  %v9336_v28 = vld [vmem:[#allocation9_spill] sm:$0xff]  ;;  %v7182_v61 = vld [vmem:[%s7357_s10 + $0x24] sm:$0xff]  }
 0x10a   : > { %v6187_v19 = vcombine.low %v8691_v27, %v8710_v13  ;;  %v4214_v2 = vshrl.u32 %v6091_v45, 16  ;;  %v6188_v8 = vcombine.low %v8698_v31, %v8724_v18  ;;  %v6165_v14 = vrot.slane %v6149_v32, 9 }
 0x10b   : > { %v4217_v38 = vshll.u32 %v6091_v45, 16  ;;  %v4705_v11 = vrot.slane %v9336_v28, 5  ;;  %v4708_v39 = vrot.slane %v8500_v6, 5  ;;  %v2455_v20 = vshrl.u32 %v5832_v15, 16  ;;  %v6094_v45 = vld [vmem:[%s7357_s10 + $0xcc] sm:$0xf] }
 0x10c   : > { %v4223_v44 = vshll.u32 %v8718_v12, 16  ;;  %v4227_v56 = vshrl.u32 %v8718_v12, 16  ;;  %v6166_v17 = vrot.slane %v6150_v26, 9  ;;  %v4209_v1 = vshll.u32 %v8738_v49, 16  ;;  %v6151_v26 = vld [vmem:[%s7357_s10 + $0x90] sm:$0xe] }
 0x10d   : > { %6765 = vmatmul.mubr.msk.bf16.gmra.mrb[12].mxu0 %vm795_vm3, %v8623_v43  ;;  %v9337_v43 = vld [vmem:[#allocation3_spill] sm:$0xff]  ;;  %v8753_v6 = vsel %vm7617_vm6, %v6165_v14, %v4705_v11  ;;  %v4707_v9 = vrot.slane %v4705_v11, 4  ;;  %v2457_v60 = vrot.slane %v2455_v20, 4  ;;  %v4712_v55 = vrot.slane %v9339_v42, 5 }
 0x10e   : > { %6581 = vmatmul.mubr.msk.bf16.gmra.mrb[28].mxu1 %vm795_vm3, %v5708_v5  ;;  %6768 = vmatprep.mubr.msk.bf16.mxu0 %vm795_vm3, %v8625_v0  ;;  %v2458_v5 = vshll.u32 %v5832_v15, 16  ;;  %v2477_v41 = vsel %vm7384_vm2, %v9338_v59, %v9337_v43  ;;  %v4205_v0 = vrot.slane %v4203_v30, 4  ;;  %v4178_v51 = vsel %vm7384_vm2, %v8704_v48, %v8633_v34 }
 0x10f   : > { %6592 = vmatprep.mubr.msk.bf16.mxu1 %vm795_vm3, %v7179_v10  ;;  %v4196_v25 = vor.u32 %v8715_v16, %v8706_v47  ;;  %v8767_v7 = vsel %vm7617_vm6, %v4707_v9, %v4708_v39  ;;  %v4715_v30 = vrot.slane %v8509_v24, 5  ;;  %v4216_v32 = vrot.slane %v4214_v2, 4  ;;  %v8777_v47 = vld [vmem:[%s7357_s10 + $0xd0] sm:$0xf]  ;;  %v9342_v9 = vld [vmem:[#allocation2_spill] sm:$0xff] }
 0x110   : > { %v2460_v62 = vrot.slane %v2458_v5, 5  ;;  %v4219_v10 = vrot.slane %v4217_v38, 5  ;;  %v6189_v15 = vcombine.low %v8753_v6, %v8767_v7  ;;  %v8774_v34 = vrot.slane %v4223_v44, 5  ;;  %v8789_v38 = vld [vmem:[%s7357_s10 + $0xc8] sm:$0x1] }
 0x111   : > { %v4229_v48 = vrot.slane %v4227_v56, 4  ;;  %v8781_v16 = vsel %vm7617_vm6, %v6166_v17, %v4712_v55  ;;  %v4714_v28 = vrot.slane %v4712_v55, 4  ;;  %v4188_v24 = vsel %vm7384_vm2, %v8713_v21, %v8693_v23  ;;  %v9340_v5 = vld [vmem:[#allocation11_spill] sm:$0xff]  ;;  %v9341_v23 = vld [vmem:[#allocation6_spill] sm:$0xff] }
 0x112   : > { %v2461_v14 = vor.u32 %v2460_v62, %v2457_v60  ;;  %v4206_v2 = vor.u32 %v4205_v0, %v8726_v37  ;;  %v4238_v11 = vshrl.u32 %v6094_v45, 16  ;;  %v4241_v20 = vshll.u32 %v6094_v45, 16  ;;  %v7238_v17 = vld [vmem:[%s9279_s1 + $0x88] sm:$0xff]  }
 0x113   : > { %v8796_v44 = vsel %vm7617_vm6, %v4714_v28, %v4715_v30  ;;  %v6167_v56 = vrot.slane %v6151_v26, 9  ;;  %v4719_v43 = vrot.slane %v9340_v5, 5  ;;  %v4247_v21 = vshll.u32 %v8777_v47, 16  ;;  %v9343_v30 = vld [vmem:[#allocation14_spill] sm:$0xff] }
 0x114   : > { %v2462_v39 = vrot.slane %v2461_v14, 4  ;;  %v4251_v59 = vshrl.u32 %v8777_v47, 16  ;;  %v6190_v60 = vcombine.low %v8781_v16, %v8796_v44  ;;  %v4220_v0 = vor.u32 %v4219_v10, %v4216_v32  ;;  %v7183_v14 = vld [vmem:[%s7357_s10 + $0x30] sm:$0xff]   ;;  %v6152_v10 = vld [vmem:[%s7357_s10 + $0x9c] sm:$0xe] }
 0x115   : > { %6769 = vmatmul.mubr.msk.bf16.gmra.mrb[16].mxu0 %vm795_vm3, %v8628_v53  ;;  %v4230_v62 = vor.u32 %v4229_v48, %v8774_v34  ;;  %v4233_v42 = vshll.u32 %v8789_v38, 16  ;;  %v8819_v45 = vsel %vm7617_vm6, %v6167_v56, %v4719_v43  ;;  %v6117_v26 = vcombine.low %v4178_v51, %v4188_v24  ;;  %v7184_v5 = vld [vmem:[%s7357_s10 + $0x3c] sm:$0xff]   ;;  %v8826_v48 = vld [vmem:[%s7357_s10 + $0xd4] sm:$0x1]  ;;  %v7260_v16 = vld [vmem:[%s7357_s10 + $0xc4] sm:$0xf] }
 0x116   : > { %6593 = vmatmul.mubr.msk.bf16.vlgmr.msra.gmra.mrb[0].mxu1 %vm795_vm3, %v7181_v52  ;;  %v2467_v53 = vsel %vm7384_vm2, %v2462_v39, %v9342_v9  ;;  %6772 = vmatprep.mubr.msk.bf16.mxu0 %vm795_vm3, %v8631_v33  ;;  %v4211_v52 = vrot.slane %v4209_v1, 5  ;;  %v4721_v33 = vrot.slane %v4719_v43, 4  ;;  %v4197_v28 = vrot.slane %v4196_v25, 4  ;;  %v7239_v51 = vld [vmem:[%s9279_s1 + $0x90] sm:$0xff]  }
 0x117   : > { %6828 = vmatpush3.bf16.msra.mxu1 %v9341_v23  ;;  %6596 = vmatprep.mubr.msk.bf16.mxu1 %vm795_vm3, %v7182_v61  ;;  %v8815_v55 = vcombine.low %v2467_v53, %v2477_v41  ;;  %v4722_v61 = vrot.slane %v9343_v30, 5  ;;  %v4207_v39 = vrot.slane %v4206_v2, 4  ;;  %v4240_v32 = vrot.slane %v4238_v11, 4  ;;  %v9344_v2 = vld [vmem:[#allocation13_spill] sm:$0xff] }
 0x118   : > { %6825 = vmatprep.subr.bf16.mxu1 %v7238_v17  ;;  %v4243_v41 = vrot.slane %v4241_v20, 5  ;;  %v8828_v23 = vrot.slane %v4247_v21, 5  ;;  %v4253_v1 = vrot.slane %v4251_v59, 4  ;;  %v4221_v43 = vrot.slane %v4220_v0, 4 }
 0x119   : > { %v8832_v56 = vsel %vm7617_vm6, %v4721_v33, %v4722_v61  ;;  %v4231_v9 = vrot.slane %v4230_v62, 4  ;;  %v4235_v53 = vrot.slane %v4233_v42, 5  ;;  %v6168_v24 = vrot.slane %v6152_v10, 9  ;;  %v6141_v62 = vld [vmem:[%s7357_s10 + $0x18] sm:$0xe] }
 0x11a   : > { %v6191_v25 = vcombine.low %v8819_v45, %v8832_v56  ;;  %v4726_v11 = vrot.slane %v9344_v2, 5  ;;  %v4202_v20 = vsel %vm7384_vm2, %v4197_v28, %v8726_v37  ;;  %v4212_v21 = vsel %vm7384_vm2, %v4207_v39, %v4211_v52  ;;  %v7240_v33 = vld [vmem:[%s7357_s10 + $0x1c] sm:$0xf]  ;;  %v7186_v28 = vld [vmem:[%s7357_s10 + $0x48] sm:$0xff]  }
 0x11b   : > { %6829 = vmatpush3.bf16.msra.mxu1 %v7238_v17  ;;  %v4257_v59 = vshll.u32 %v8826_v48, 16  ;;  %v4729_v17 = vrot.slane %v8554_v40, 5  ;;  %v4244_v0 = vor.u32 %v4243_v41, %v4240_v32  ;;  %v4226_v40 = vsel %vm7384_vm2, %v4221_v43, %v8774_v34  ;;  %v7241_v61 = vld [vmem:[%s9279_s1 + $0x98] sm:$0xff]  }
 0x11c   : > { %6826 = vmatprep.subr.bf16.mxu1 %v7239_v51  ;;  %v8856_v37 = vsel %vm7617_vm6, %v6168_v24, %v4726_v11  ;;  %v4728_v42 = vrot.slane %v4726_v11, 4  ;;  %v4236_v52 = vsel %vm7384_vm2, %v4231_v9, %v4235_v53  ;;  %v4649_v30 = vrot.slane %v7240_v33, 5  ;;  %v7242_v9 = vld [vmem:[%s7357_s10 + $0x20] sm:$0x1] }
 0x11d   : > { %6773 = vmatmul.mubr.msk.bf16.gmra.mrb[20].mxu0 %vm795_vm3, %v8702_v36  ;;  %v4254_v36 = vor.u32 %v4253_v1, %v8828_v23  ;;  %v6118_v34 = vcombine.low %v4202_v20, %v4212_v21  ;;  %v4259_v39 = vrot.slane %v4257_v59, 5  ;;  %v6157_v32 = vrot.slane %v6141_v62, 9  ;;  %v6154_v20 = vld [vmem:[%s7357_s10 + $0xb4] sm:$0xe] }
 0x11e   : > { %6597 = vmatmul.mubr.msk.bf16.gmra.mrb[4].mxu1 %vm795_vm3, %v7183_v14  ;;  %6776 = vmatprep.mubr.msk.bf16.mxu0 %vm795_vm3, %v6117_v26  ;;  %v8869_v14 = vsel %vm7617_vm6, %v4728_v42, %v4729_v17  ;;  %v6153_v26 = vld [vmem:[%s7357_s10 + $0xa8] sm:$0xe]  ;;  %v6119_v41 = vcombine.low %v4226_v40, %v4236_v52  ;;  %v4245_v1 = vrot.slane %v4244_v0, 4  ;;  %v4652_v53 = vrot.slane %v7242_v9, 5  ;;  %v6142_v0 = vld [vmem:[%s7357_s10 + $0x24] sm:$0xe] }
 0x11f   : > { %6600 = vmatprep.mubr.msk.bf16.mxu1 %vm795_vm3, %v7184_v5  ;;  %6830 = vmatpush3.bf16.msra.mxu1 %v7239_v51  ;;  %v6192_v10 = vcombine.low %v8856_v37, %v8869_v14  ;;  %v7187_v5 = vld [vmem:[%s7357_s10 + $0x54] sm:$0xff]   ;;  %v4255_v43 = vrot.slane %v4254_v36, 4  ;;  %v4651_v51 = vrot.slane %v4649_v30, 4  ;;  %v6169_v24 = vrot.slane %v6153_v26, 9  ;;  %v7243_v36 = vld [vmem:[%s7357_s10 + $0x28] sm:$0xf] }
 0x120   : > { %6827 = vmatprep.subr.bf16.mxu1 %v7241_v61  ;;  %v4733_v2 = vrot.slane %v8557_v3, 5  ;;  %v4736_v11 = vrot.slane %v8609_v54, 5  ;;  %v4250_v3 = vsel %vm7384_vm2, %v4245_v1, %v8828_v23  ;;  %v4650_v17 = vsel %vm7617_vm6, %v6157_v32, %v4649_v30  ;;  %v7244_v40 = vld [vmem:[%s7357_s10 + $0x34] sm:$0xf]  ;;  %v7245_v32 = vld [vmem:[%s7357_s10 + $0x2c] sm:$0x1] }
 0x121   : > { %v4260_v54 = vsel %vm7384_vm2, %v4255_v43, %v4259_v39  ;;  %v4656_v62 = vrot.slane %v7243_v36, 5  ;;  %v4653_v42 = vsel %vm7617_vm6, %v4651_v51, %v4652_v53  ;;  %v4663_v52 = vrot.slane %v7244_v40, 5  ;;  %v7189_v1 = vld [vmem:[%s7357_s10 + $0x6c] sm:$0xff]  }
 0x122   : > { %v8884_v21 = vsel %vm7617_vm6, %v6169_v24, %v4733_v2  ;;  %v4735_v59 = vrot.slane %v4733_v2, 4  ;;  %v6170_v23 = vrot.slane %v6154_v20, 9  ;;  %v4740_v30 = vrot.slane %v8660_v50, 5  ;;  %v7246_v50 = vld [vmem:[%s7357_s10 + $0x38] sm:$0x1] }
 0x123   : > { %6831 = vmatpush3.bf16.msra.mxu1 %v7241_v61  ;;  %v6143_v61 = vld [vmem:[%s7357_s10 + $0x30] sm:$0xe]  ;;  %v6158_v39 = vrot.slane %v6142_v0, 9  ;;  %v6181_v43 = vcombine.low %v4650_v17, %v4653_v42  ;;  %v4658_v9 = vrot.slane %v4656_v62, 4  ;;  %v4665_v2 = vrot.slane %v4663_v52, 4 }
 0x124   : > { %v8902_v33 = vsel %vm7617_vm6, %v4735_v59, %v4736_v11  ;;  %v8914_v53 = vsel %vm7617_vm6, %v6170_v23, %v4740_v30  ;;  %v4742_v51 = vrot.slane %v4740_v30, 4  ;;  %v6159_v24 = vrot.slane %v6143_v61, 9  ;;  %v6155_v20 = vld [vmem:[%s7357_s10 + $0xc0] sm:$0xe]  ;;  %v6144_v23 = vld [vmem:[%s7357_s10 + $0x3c] sm:$0xe] }
 0x125   : > { %6777 = vmatmul.mubr.msk.bf16.gmra.mrb[24].mxu0 %vm795_vm3, %v6118_v34  ;;  %v6193_v26 = vcombine.low %v8884_v21, %v8902_v33  ;;  %v6120_v34 = vcombine.low %v4250_v3, %v4260_v54  ;;  %v4666_v11 = vrot.slane %v7246_v50, 5  ;;  %v4657_v3 = vsel %vm7617_vm6, %v6158_v39, %v4656_v62  ;;  %v7247_v17 = vld [vmem:[%s7357_s10 + $0x40] sm:$0xf]  ;;  %v5829_v62 = vld [vmem:[%s7357_s10 + $0x6c] sm:$0xf] }
 0x126   : > { %6601 = vmatmul.mubr.msk.bf16.gmra.mrb[8].mxu1 %vm795_vm3, %v7186_v28  ;;  %6780 = vmatprep.mubr.msk.bf16.mxu0 %vm795_vm3, %v6119_v41  ;;  %v7188_v28 = vld [vmem:[%s7357_s10 + $0x60] sm:$0xff]   ;;  %v4743_v41 = vrot.slane %v8738_v49, 5  ;;  %v4670_v0 = vrot.slane %v7247_v17, 5  ;;  %v6171_v36 = vrot.slane %v6155_v20, 9  ;;  %v4664_v42 = vsel %vm7617_vm6, %v6159_v24, %v4663_v52 }
 0x127   : > { %6604 = vmatprep.mubr.msk.bf16.mxu1 %vm795_vm3, %v7187_v5  ;;  %v4659_v5 = vrot.slane %v7245_v32, 5  ;;  %v4667_v40 = vsel %vm7617_vm6, %v4665_v2, %v4666_v11  ;;  %v4747_v61 = vrot.slane %v8718_v12, 5  ;;  %v4750_v30 = vrot.slane %v8789_v38, 5  ;;  %v7249_v11 = vld [vmem:[%s7357_s10 + $0x70] sm:$0xf] }
 0x128   : > { %v8920_v59 = vsel %vm7617_vm6, %v4742_v51, %v4743_v41  ;;  %v7191_v41 = vld [vmem:[%s7357_s10 + $0x84] sm:$0xff]   ;;  %v6183_v52 = vcombine.low %v4664_v42, %v4667_v40  ;;  %v2431_v24 = vshrl.u32 %v5829_v62, 16  ;;  %v2434_v12 = vshll.u32 %v5829_v62, 16 }
 0x129   : > { %v6194_v49 = vcombine.low %v8914_v53, %v8920_v59  ;;  %v4660_v54 = vsel %vm7617_vm6, %v4658_v9, %v4659_v5  ;;  %v8945_v32 = vsel %vm7617_vm6, %v6171_v36, %v4747_v61  ;;  %v4749_v5 = vrot.slane %v4747_v61, 4  ;;  %v7248_v9 = vld [vmem:[%s7357_s10 + $0x44] sm:$0x1] }
 0x12a   : > { %v6182_v39 = vcombine.low %v4657_v3, %v4660_v54  ;;  %v4673_v51 = vrot.slane %v7248_v9, 5  ;;  %v2440_v20 = vshll.u32 %v7249_v11, 16  ;;  %v2444_v3 = vshrl.u32 %v7249_v11, 16  ;;  %v5838_v11 = vld [vmem:[%s7357_s10 + $0x90] sm:$0xf] }
 0x12b   : > { %v8951_v38 = vsel %vm7617_vm6, %v4749_v5, %v4750_v30  ;;  %v4754_v54 = vrot.slane %v8777_v47, 5  ;;  %v4757_v17 = vrot.slane %v8826_v48, 5  ;;  %v2433_v40 = vrot.slane %v2431_v24, 4  ;;  %v7192_v30 = vld [vmem:[%s7357_s10 + $0x90] sm:$0xff]  }
 0x12c   : > { %v6195_v50 = vcombine.low %v8945_v32, %v8951_v38  ;;  %v2442_v62 = vrot.slane %v2440_v20, 5  ;;  %v7194_v20 = vld [vmem:[%s7357_s10 + $0xa8] sm:$0xff]   ;;  %v2503_v63 = vshrl.u32 %v5838_v11, 16  ;;  %v2506_v58 = vshll.u32 %v5838_v11, 16  ;;  %v7196_v11 = vld [vmem:[%s7357_s10 + $0xc0] sm:$0xff]  }
 0x12d   : > { %6781 = vmatmul.mubr.msk.bf16.gmra.mrb[28].mxu0 %vm795_vm3, %v6120_v34  ;;  %v7190_v34 = vld [vmem:[%s7357_s10 + $0x78] sm:$0xff]   ;;  %v4756_v47 = vrot.slane %v4754_v54, 4  ;;  %v2608_v44 = vshll.u32 %v7260_v16, 16 }
 0x12e   : > { %6605 = vmatmul.mubr.msk.bf16.gmra.mrb[12].mxu1 %vm795_vm3, %v7188_v28  ;;  %6792 = vmatprep.mubr.msk.bf16.mxu0 %vm795_vm3, %v6181_v43  ;;  %v6156_v28 = vld [vmem:[%s7357_s10 + $0xcc] sm:$0xe]  ;;  %v4672_v43 = vrot.slane %v4670_v0, 4 }
 0x12f   : > { %6608 = vmatprep.mubr.msk.bf16.mxu1 %vm795_vm3, %v7189_v1  ;;  %v6160_v1 = vrot.slane %v6144_v23, 9  ;;  %v6172_v2 = vrot.slane %v6156_v28, 9  ;;  %v2436_v23 = vrot.slane %v2434_v12, 5  ;;  %v2446_v28 = vrot.slane %v2444_v3, 4 }
 0x130   : > { %v4674_v42 = vsel %vm7617_vm6, %v4672_v43, %v4673_v51  ;;  %v7251_v51 = vld [vmem:[%s7357_s10 + $0x88] sm:$0xf]  ;;  %v2610_v45 = vrot.slane %v2608_v44, 5 }
 0x131   : > { %v4671_v36 = vsel %vm7617_vm6, %v6160_v1, %v4670_v0  ;;  %v8968_v61 = vsel %vm7617_vm6, %v6172_v2, %v4754_v54  ;;  %v7193_v0 = vld [vmem:[%s7357_s10 + $0x9c] sm:$0xff]   ;;  %v7250_v1 = vld [vmem:[%s7357_s10 + $0x74] sm:$0x1]  ;;  %v2488_v24 = vshll.u32 %v7251_v51, 16  ;;  %v2492_v12 = vshrl.u32 %v7251_v51, 16 }
 0x132   : > { %v6184_v48 = vcombine.low %v4671_v36, %v4674_v42  ;;  %v2450_v43 = vshll.u32 %v7250_v1, 16  ;;  %v5841_v42 = vld [vmem:[%s7357_s10 + $0x9c] sm:$0xf]  ;;  %v7253_v1 = vld [vmem:[%s7357_s10 + $0xa0] sm:$0xf] }
 0x134   : > { %v2452_v54 = vrot.slane %v2450_v43, 5  ;;  %v2540_v43 = vshrl.u32 %v7253_v1, 16 }
 0x135   : > { %6793 = vmatmul.mubr.msk.bf16.vlgmr.msra.gmra.mrb[0].mxu0 %vm795_vm3, %v6182_v39  ;;  %v5835_v39 = vld [vmem:[%s7357_s10 + $0x84] sm:$0xf] }
 0x136   : > { %6609 = vmatmul.mubr.msk.bf16.gmra.mrb[16].mxu1 %vm795_vm3, %v7190_v34  ;;  %6796 = vmatprep.mubr.msk.bf16.mxu0 %vm795_vm3, %v6183_v52  ;;  %v8973_v34 = vsel %vm7617_vm6, %v4756_v47, %v4757_v17  ;;  %v2447_v52 = vor.u32 %v2446_v28, %v2442_v62  ;;  %v2479_v57 = vshrl.u32 %v5835_v39, 16  ;;  %v2482_v9 = vshll.u32 %v5835_v39, 16 }
 0x137   : > { %6612 = vmatprep.mubr.msk.bf16.mxu1 %vm795_vm3, %v7191_v41  ;;  %v6196_v5 = vcombine.low %v8968_v61, %v8973_v34  ;;  %v2437_v41 = vor.u32 %v2436_v23, %v2433_v40  ;;  %v7195_v40 = vld [vmem:[%s7357_s10 + $0xb4] sm:$0xff]   ;;  %v8992_v23 = vrot.slane %v2488_v24, 5  ;;  %v2494_v47 = vrot.slane %v2492_v12, 4 }
 0x138   : > { %v2448_v3 = vrot.slane %v2447_v52, 4  ;;  %v2481_v17 = vrot.slane %v2479_v57, 4  ;;  %v2484_v36 = vrot.slane %v2482_v9, 5  ;;  %v2530_v39 = vshll.u32 %v5841_v42, 16 }
 0x139   : > { %v2438_v2 = vrot.slane %v2437_v41, 4  ;;  %v2495_v4 = vor.u32 %v2494_v47, %v8992_v23  ;;  %v2505_v57 = vrot.slane %v2503_v63, 4  ;;  %v2508_v9 = vrot.slane %v2506_v58, 5  ;;  %v7256_v58 = vld [vmem:[%s7357_s10 + $0xa4] sm:$0x1] }
 0x13a   : > { %v2453_v41 = vsel %vm7384_vm2, %v2448_v3, %v2452_v54  ;;  %v2485_v52 = vor.u32 %v2484_v36, %v2481_v17  ;;  %v5844_v3 = vld [vmem:[%s7357_s10 + $0xa8] sm:$0xf] }
 0x13b   : > { %v2496_v54 = vrot.slane %v2495_v4, 4  ;;  %v2509_v36 = vor.u32 %v2508_v9, %v2505_v57  ;;  %v7258_v4 = vld [vmem:[%s7357_s10 + $0xb8] sm:$0xf] }
 0x13c   : > { %v2486_v27 = vrot.slane %v2485_v52, 4 }
 0x13d   : > { %6797 = vmatmul.mubr.msk.bf16.gmra.mrb[4].mxu0 %vm795_vm3, %v6184_v48  ;;  %v2510_v18 = vrot.slane %v2509_v36, 4 }
 0x13e   : > { %6613 = vmatmul.mubr.msk.bf16.gmra.mrb[20].mxu1 %vm795_vm3, %v7192_v30  ;;  %6800 = vmatprep.mubr.msk.bf16.mxu0 %vm795_vm3, %v6185_v35  ;;  %v2443_v35 = vsel %vm7384_vm2, %v2438_v2, %v2442_v62  ;;  %v7252_v30 = vld [vmem:[%s7357_s10 + $0x94] sm:$0xf]  ;;  %v2536_v62 = vshll.u32 %v7253_v1, 16  ;;  %v2532_v2 = vrot.slane %v2530_v39, 5  ;;  %v7257_v39 = vld [vmem:[%s7357_s10 + $0xac] sm:$0xf]  ;;  %v2491_v1 = vsel %vm7384_vm2, %v2486_v27, %v8992_v23 }
 0x13f   : > { %6616 = vmatprep.mubr.msk.bf16.mxu1 %vm795_vm3, %v7193_v0  ;;  %v2512_v48 = vshll.u32 %v7252_v30, 16  ;;  %v2516_v28 = vshrl.u32 %v7252_v30, 16  ;;  %v2527_v0 = vshrl.u32 %v5841_v42, 16  ;;  %v7255_v42 = vld [vmem:[%s7357_s10 + $0x98] sm:$0x1]  ;;  %v2546_v30 = vshll.u32 %v7256_v58, 16 }
 0x140   : > { %v9015_v13 = vrot.slane %v2536_v62, 5  ;;  %v2564_v52 = vshrl.u32 %v7257_v39, 16  ;;  %v2612_v58 = vshrl.u32 %v7260_v16, 16 }
 0x141   : > { %v9012_v51 = vrot.slane %v2512_v48, 5  ;;  %v2518_v24 = vrot.slane %v2516_v28, 4  ;;  %v2529_v12 = vrot.slane %v2527_v0, 4  ;;  %v2551_v48 = vshrl.u32 %v5844_v3, 16  ;;  %v5847_v28 = vld [vmem:[%s7357_s10 + $0xb4] sm:$0xf] }
 0x142   : > { %v2554_v0 = vshll.u32 %v5844_v3, 16  ;;  %v2575_v62 = vshrl.u32 %v5847_v28, 16  ;;  %v2548_v6 = vrot.slane %v2546_v30, 5  ;;  %v2566_v23 = vrot.slane %v2564_v52, 4  ;;  %v5850_v3 = vld [vmem:[%s7357_s10 + $0xc0] sm:$0xf] }
 0x143   : > { %v2519_v47 = vor.u32 %v2518_v24, %v9012_v51  ;;  %v2533_v63 = vor.u32 %v2532_v2, %v2529_v12  ;;  %v2553_v7 = vrot.slane %v2551_v48, 4  ;;  %v7261_v48 = vld [vmem:[%s7357_s10 + $0xbc] sm:$0x1]  ;;  %v2614_v56 = vrot.slane %v2612_v58, 4 }
 0x144   : > { %v2556_v24 = vrot.slane %v2554_v0, 5 }
 0x145   : > { %6801 = vmatmul.mubr.msk.bf16.gmra.mrb[8].mxu0 %vm795_vm3, %v6186_v22  ;;  %v2498_v22 = vshll.u32 %v7254_v46, 16  ;;  %v2584_v46 = vshll.u32 %v7258_v4, 16  ;;  %v2520_v57 = vrot.slane %v2519_v47, 4  ;;  %v2534_v9 = vrot.slane %v2533_v63, 4  ;;  %v7259_v47 = vld [vmem:[%s7357_s10 + $0xb0] sm:$0x1] }
 0x146   : > { %6617 = vmatmul.mubr.msk.bf16.gmra.mrb[24].mxu1 %vm795_vm3, %v7194_v20  ;;  %6804 = vmatprep.mubr.msk.bf16.mxu0 %vm795_vm3, %v6187_v19  ;;  %v5869_v20 = vcombine.low %v2443_v35, %v2453_v41  ;;  %v2542_v19 = vrot.slane %v2540_v43, 4  ;;  %v2560_v41 = vshll.u32 %v7257_v39, 16  ;;  %v2578_v43 = vshll.u32 %v5847_v28, 16 }
 0x147   : > { %6620 = vmatprep.mubr.msk.bf16.mxu1 %vm795_vm3, %v7195_v40  ;;  %v2500_v17 = vrot.slane %v2498_v22, 5  ;;  %v2522_v40 = vshll.u32 %v7255_v42, 16  ;;  %v2588_v22 = vshrl.u32 %v7258_v4, 16  ;;  %v2586_v27 = vrot.slane %v2584_v46, 5 }
 0x148   : > { %v2543_v35 = vor.u32 %v2542_v19, %v9015_v13  ;;  %v2562_v12 = vrot.slane %v2560_v41, 5  ;;  %v2539_v36 = vsel %vm7384_vm2, %v2534_v9, %v9015_v13  ;;  %v2570_v63 = vshll.u32 %v7259_v47, 16 }
 0x149   : > { %v2501_v31 = vsel %vm7384_vm2, %v2496_v54, %v2500_v17  ;;  %v2590_v19 = vrot.slane %v2588_v22, 4  ;;  %v2515_v54 = vsel %vm7384_vm2, %v2510_v18, %v9012_v51  ;;  %v2557_v51 = vor.u32 %v2556_v24, %v2553_v7  ;;  %v7262_v22 = vld [vmem:[%s7357_s10 + $0xc8] sm:$0x1]  ;;  %s6251_s10 = sshll.u32 %s9350_s15, 7 }
 0x14a   : > { %v5871_v2 = vcombine.low %v2491_v1, %v2501_v31  ;;  %v2602_v13 = vshll.u32 %v5850_v3, 16  ;;  %v2594_v28 = vshll.u32 %v7261_v48, 16  ;;  %v2572_v52 = vrot.slane %v2570_v63, 5  ;;  %s9123_s22 = scalar_lea.vmem %s9280_s2, %s6251_s10 }
 0x14b   : > { %v2591_v30 = vor.u32 %v2590_v19, %v2586_v27  ;;  %v2558_v39 = vrot.slane %v2557_v51, 4  ;;  %v2615_v46 = vor.u32 %v2614_v56, %v2610_v45 }
 0x14c   : > { %v2604_v31 = vrot.slane %v2602_v13, 5 }
 0x14d   : > { %6805 = vmatmul.mubr.msk.bf16.gmra.mrb[12].mxu0 %vm795_vm3, %v6188_v8  ;;  %v2524_v8 = vrot.slane %v2522_v40, 5  ;;  %v2567_v40 = vor.u32 %v2566_v23, %v2562_v12  ;;  %v2592_v18 = vrot.slane %v2591_v30, 4  ;;  %v2616_v7 = vrot.slane %v2615_v46, 4 }
 0x14e   : > { %6621 = vmatmul.mubr.msk.bf16.gmra.mrb[28].mxu1 %vm795_vm3, %v7196_v11  ;;  %6808 = vmatprep.mubr.msk.bf16.mxu0 %vm795_vm3, %v6189_v15  ;;  %v2544_v15 = vrot.slane %v2543_v35, 4  ;;  %v2577_v11 = vrot.slane %v2575_v62, 4  ;;  %v2563_v62 = vsel %vm7384_vm2, %v2558_v39, %v2562_v12 }
 0x14f   : > { %6648 = vmatprep.mubr.msk.bf16.mxu1 %vm795_vm3, %v5869_v20  ;;  %v2580_v20 = vrot.slane %v2578_v43, 5  ;;  %v2525_v17 = vsel %vm7384_vm2, %v2520_v57, %v2524_v8  ;;  %v2568_v41 = vrot.slane %v2567_v40, 4  ;;  %v2596_v8 = vrot.slane %v2594_v28, 5 }
 0x150   : > { %v2549_v42 = vsel %vm7384_vm2, %v2544_v15, %v2548_v6  ;;  %v5872_v35 = vcombine.low %v2515_v54, %v2525_v17  ;;  %v2618_v57 = vshll.u32 %v7262_v22, 16 }
 0x151   : > { %v5873_v0 = vcombine.low %v2539_v36, %v2549_v42  ;;  %v2573_v43 = vsel %vm7384_vm2, %v2568_v41, %v2572_v52  ;;  %v2597_v14 = vsel %vm7384_vm2, %v2592_v18, %v2596_v8 }
 0x152   : > { %v2620_v21 = vrot.slane %v2618_v57, 5 }
 0x155   : > { %6809 = vmatmul.mubr.msk.bf16.gmra.mrb[16].mxu0 %vm795_vm3, %v6190_v60  ;;  %v2581_v60 = vor.u32 %v2580_v20, %v2577_v11 }
 0x156   : > { %6649 = vmatmul.mubr.msk.bf16.vlgmr.msra.gmra.mrb[16].mxu1 %vm795_vm3, %v8815_v55  ;;  %6812 = vmatprep.mubr.msk.bf16.mxu0 %vm795_vm3, %v6191_v25  ;;  %v2599_v55 = vshrl.u32 %v5850_v3, 16 }
 0x157   : > { %6652 = vmatprep.mubr.msk.bf16.mxu1 %vm795_vm3, %v5871_v2  ;;  %v2582_v25 = vrot.slane %v2581_v60, 4 }
 0x158   : > { %v2601_v1 = vrot.slane %v2599_v55, 4 }
 0x159   : > { %v2587_v37 = vsel %vm7384_vm2, %v2582_v25, %v2586_v27 }
 0x15a   : > { %v2605_v4 = vor.u32 %v2604_v31, %v2601_v1  ;;  %v5875_v9 = vcombine.low %v2587_v37, %v2597_v14 }
 0x15c   : > { %v2606_v6 = vrot.slane %v2605_v4, 4 }
 0x15d   : > { %6813 = vmatmul.mubr.msk.bf16.gmra.mrb[20].mxu0 %vm795_vm3, %v6192_v10  ;;  %v5874_v10 = vcombine.low %v2563_v62, %v2573_v43 }
 0x15e   : > { %6653 = vmatmul.mubr.msk.bf16.gmra.mrb[20].mxu1 %vm795_vm3, %v5872_v35  ;;  %6816 = vmatprep.mubr.msk.bf16.mxu0 %vm795_vm3, %v6193_v26  ;;  %v2611_v33 = vsel %vm7384_vm2, %v2606_v6, %v2610_v45  ;;  %v2621_v26 = vsel %vm7384_vm2, %v2616_v7, %v2620_v21 }
 0x15f   : > { %6656 = vmatprep.mubr.msk.bf16.mxu1 %vm795_vm3, %v5873_v0  ;;  %v5876_v15 = vcombine.low %v2611_v33, %v2621_v26 }
 0x165   : > { %6817 = vmatmul.mubr.msk.bf16.gmra.mrb[24].mxu0 %vm795_vm3, %v6194_v49 }
 0x166   : > { %6657 = vmatmul.mubr.msk.bf16.gmra.mrb[24].mxu1 %vm795_vm3, %v5874_v10  ;;  %6820 = vmatprep.mubr.msk.bf16.mxu0 %vm795_vm3, %v6195_v50 }
 0x167   : > { %6660 = vmatprep.mubr.msk.bf16.mxu1 %vm795_vm3, %v5875_v9 }
 0x16d   : > { %6821 = vmatmul.mubr.msk.bf16.gmra.mrb[28].mxu0 %vm795_vm3, %v6196_v5 }
 0x16e   : > { %6661 = vmatmul.mubr.msk.bf16.gmra.mrb[28].mxu1 %vm795_vm3, %v5876_v15 }
 0x1e9   : > { %v6594_v53 = vpop.f32.mrb[0].mxu1 }
 0x1ea   : > { %v2031_v59 = vpop.f32.mrb[1].mxu1 }
 0x1eb   : > { %v6595_v49 = vpop.f32.mrb[2].mxu1 }
 0x1ec   : > { %v2034_v32 = vpop.f32.mrb[3].mxu1 }
 0x1f1   : > { %v6598_v38 = vpop.f32.mrb[4].mxu1 }
 0x1f2   : > { %v2047_v50 = vpop.f32.mrb[5].mxu1 }
 0x1f3   : > { %v6599_v24 = vpop.f32.mrb[6].mxu1 }
 0x1f4   : > { %v2050_v12 = vpop.f32.mrb[7].mxu1 }
 0x1f9   : > { %v9103_v23 = vpop.f32.mrb[8].mxu1 }
 0x1fa   : > { %v9105_v29 = vpop.f32.mrb[9].mxu1 }
 0x1fb   : > { %v9107_v2 = vpop.f32.mrb[10].mxu1 }
 0x1fc   : > { %v9109_v11 = vpop.f32.mrb[11].mxu1 }
 0x201   : > { %v9111_v61 = vpop.f32.mrb[12].mxu1 }
 0x202   : > { %v9113_v34 = vpop.f32.mrb[13].mxu1 }
 0x203   : > { %v9115_v5 = vpop.f32.mrb[14].mxu1 }
 0x204   : > { %v9117_v20 = vpop.f32.mrb[15].mxu1 }
 0x208   : > { %v6794_v27 = vpop.f32.mrb[0].mxu0 }
 0x209   : > { %v6832_v19 = vadd.f32 %v6794_v27, %v6594_v53  ;;  %v4922_v3 = vpop.f32.mrb[1].mxu0 }
 0x20a   : > { %v6833_v54 = vadd.f32 %v4922_v3, %v2031_v59  ;;  %v6795_v17 = vpop.f32.mrb[2].mxu0 }
 0x20b   : > { %v6254_v36 = vpack.c.bf16 %v6832_v19, %v6832_v19  ;;  %v6834_v42 = vadd.f32 %v6795_v17, %v6595_v49  ;;  %v4925_v51 = vpop.f32.mrb[3].mxu0  ;;  %v5315_v55 = vmul.f32 %v6832_v19, %v6832_v19  ;;  %v5245_v28 = vsel %vm795_vm3, %v6832_v19, 0.0 }
 0x20c   : > { %v6252_v40 = vpack.c.bf16 %v6833_v54, %v6833_v54  ;;  %v5313_v47 = vmul.f32 %v6833_v54, %v6833_v54  ;;  %v6835_v63 = vadd.f32 %v4925_v51, %v2034_v32  ;;  %v5242_v16 = vsel %vm795_vm3, %v6833_v54, 0.0 }
 0x20d   : > { %5212 = vst.msk [vmem:[%s9123_s22 + $0x8] sm:$0xf] %vm5209_vm7, %v6254_v36  ;;  %v6255_v13 = vpack.c.bf16 %v6834_v42, %v6834_v42  ;;  %v5316_v30 = vmul.f32 %v6834_v42, %v6834_v42  ;;  %v5348_v45 = vsel %vm795_vm3, %v5315_v55, 0.0  ;;  %v5247_v18 = vsel %vm795_vm3, %v6834_v42, 0.0 }
 0x20e   : > { %5210 = vst.msk [vmem:[%s9123_s22] sm:$0xf] %vm5209_vm7, %v6252_v40  ;;  %v6253_v44 = vpack.c.bf16 %v6835_v63, %v6835_v63  ;;  %v5243_v58 = vsel %vm795_vm3, %v6835_v63, 0.0  ;;  %v5314_v60 = vmul.f32 %v6835_v63, %v6835_v63  ;;  %v5345_v35 = vsel %vm795_vm3, %v5313_v47, 0.0 }
 0x20f   : > { %5213 = vst.msk [vmem:[%s9123_s22 + $0xc] sm:$0xf] %vm5209_vm7, %v6255_v13  ;;  %v5244_v48 = vadd.f32 %v5243_v58, %v5242_v16  ;;  %v5350_v8 = vsel %vm795_vm3, %v5316_v30, 0.0 }
 0x210   : > { %5211 = vst.msk [vmem:[%s9123_s22 + $0x4] sm:$0xf] %vm5209_vm7, %v6253_v44  ;;  %v5346_v0 = vsel %vm795_vm3, %v5314_v60, 0.0  ;;  %v6798_v39 = vpop.f32.mrb[4].mxu0 }
 0x211   : > { %v5246_v41 = vadd.f32 %v5245_v28, %v5244_v48  ;;  %v5347_v52 = vadd.f32 %v5346_v0, %v5345_v35  ;;  %v6836_v1 = vadd.f32 %v6798_v39, %v6598_v38  ;;  %v4938_v31 = vpop.f32.mrb[5].mxu0 }
 0x212   : > { %v6837_v56 = vadd.f32 %v4938_v31, %v2047_v50  ;;  %v6799_v25 = vpop.f32.mrb[6].mxu0 }
 0x213   : > { %v5349_v62 = vadd.f32 %v5348_v45, %v5347_v52  ;;  %v6258_v43 = vpack.c.bf16 %v6836_v1, %v6836_v1  ;;  %v4941_v4 = vpop.f32.mrb[7].mxu0  ;;  %v5248_v22 = vadd.f32 %v5247_v18, %v5246_v41  ;;  %v6838_v10 = vadd.f32 %v6799_v25, %v6599_v24 }
 0x214   : > { %v6256_v46 = vpack.c.bf16 %v6837_v56, %v6837_v56  ;;  %v5249_v57 = vsel %vm795_vm3, %v6837_v56, 0.0  ;;  %v5317_v37 = vmul.f32 %v6837_v56, %v6837_v56  ;;  %v6839_v9 = vadd.f32 %v4941_v4, %v2050_v12 }
 0x215   : > { %5216 = vst.msk [vmem:[%s9123_s22 + $0x18] sm:$0xf] %vm5209_vm7, %v6258_v43  ;;  %v5351_v14 = vadd.f32 %v5350_v8, %v5349_v62  ;;  %v5250_v6 = vadd.f32 %v5249_v57, %v5248_v22  ;;  %v5319_v21 = vmul.f32 %v6836_v1, %v6836_v1  ;;  %v6259_v26 = vpack.c.bf16 %v6838_v10, %v6838_v10 }
 0x216   : > { %5214 = vst.msk [vmem:[%s9123_s22 + $0x10] sm:$0xf] %vm5209_vm7, %v6256_v46  ;;  %v5352_v7 = vsel %vm795_vm3, %v5317_v37, 0.0  ;;  %v6257_v15 = vpack.c.bf16 %v6839_v9, %v6839_v9  ;;  %v5251_v53 = vsel %vm795_vm3, %v6839_v9, 0.0  ;;  %v5318_v59 = vmul.f32 %v6839_v9, %v6839_v9 }
 0x217   : > { %v5353_v33 = vadd.f32 %v5352_v7, %v5351_v14  ;;  %5217 = vst.msk [vmem:[%s9123_s22 + $0x1c] sm:$0xf] %vm5209_vm7, %v6259_v26  ;;  %v5252_v32 = vadd.f32 %v5251_v53, %v5250_v6  ;;  %v5253_v24 = vsel %vm795_vm3, %v6836_v1, 0.0  ;;  %v5320_v12 = vmul.f32 %v6838_v10, %v6838_v10 }
 0x218   : > { %v6802_v49 = vpop.f32.mrb[8].mxu0  ;;  %5215 = vst.msk [vmem:[%s9123_s22 + $0x14] sm:$0xf] %vm5209_vm7, %v6257_v15  ;;  %v5354_v27 = vsel %vm795_vm3, %v5318_v59, 0.0  ;;  %v5356_v54 = vsel %vm795_vm3, %v5319_v21, 0.0 }
 0x219   : > { %v6840_v38 = vadd.f32 %v6802_v49, %v9103_v23  ;;  %v4954_v50 = vpop.f32.mrb[9].mxu0  ;;  %v5254_v17 = vadd.f32 %v5253_v24, %v5252_v32  ;;  %v5355_v36 = vadd.f32 %v5354_v27, %v5353_v33  ;;  %v5255_v23 = vsel %vm795_vm3, %v6838_v10, 0.0 }
 0x21a   : > { %v6841_v19 = vadd.f32 %v4954_v50, %v9105_v29  ;;  %v6803_v3 = vpop.f32.mrb[10].mxu0  ;;  %v5358_v44 = vsel %vm795_vm3, %v5320_v12, 0.0 }
 0x21b   : > { %v6262_v42 = vpack.c.bf16 %v6840_v38, %v6840_v38  ;;  %v4957_v51 = vpop.f32.mrb[11].mxu0  ;;  %v5357_v55 = vadd.f32 %v5356_v54, %v5355_v36  ;;  %v5256_v13 = vadd.f32 %v5255_v23, %v5254_v17  ;;  %v6842_v29 = vadd.f32 %v6803_v3, %v9107_v2 }
 0x21c   : > { %v6260_v40 = vpack.c.bf16 %v6841_v19, %v6841_v19  ;;  %v5257_v47 = vsel %vm795_vm3, %v6841_v19, 0.0  ;;  %v5321_v63 = vmul.f32 %v6841_v19, %v6841_v19  ;;  %v6843_v16 = vadd.f32 %v4957_v51, %v9109_v11 }
 0x21d   : > { %5220 = vst.msk [vmem:[%s9123_s22 + $0x28] sm:$0xf] %vm5209_vm7, %v6262_v42  ;;  %v5323_v60 = vmul.f32 %v6840_v38, %v6840_v38  ;;  %v5258_v30 = vadd.f32 %v5257_v47, %v5256_v13  ;;  %v5359_v48 = vadd.f32 %v5358_v44, %v5357_v55  ;;  %v6263_v28 = vpack.c.bf16 %v6842_v29, %v6842_v29 }
 0x21e   : > { %5218 = vst.msk [vmem:[%s9123_s22 + $0x20] sm:$0xf] %vm5209_vm7, %v6260_v40  ;;  %v5360_v58 = vsel %vm795_vm3, %v5321_v63, 0.0  ;;  %v6261_v35 = vpack.c.bf16 %v6843_v16, %v6843_v16  ;;  %v5259_v0 = vsel %vm795_vm3, %v6843_v16, 0.0  ;;  %v5322_v39 = vmul.f32 %v6843_v16, %v6843_v16 }
 0x21f   : > { %v5361_v52 = vadd.f32 %v5360_v58, %v5359_v48  ;;  %5221 = vst.msk [vmem:[%s9123_s22 + $0x2c] sm:$0xf] %vm5209_vm7, %v6263_v28  ;;  %v5260_v2 = vadd.f32 %v5259_v0, %v5258_v30  ;;  %v5261_v31 = vsel %vm795_vm3, %v6840_v38, 0.0  ;;  %v5324_v45 = vmul.f32 %v6842_v29, %v6842_v29 }
 0x220   : > { %v6806_v41 = vpop.f32.mrb[12].mxu0  ;;  %5219 = vst.msk [vmem:[%s9123_s22 + $0x24] sm:$0xf] %vm5209_vm7, %v6261_v35  ;;  %v5362_v56 = vsel %vm795_vm3, %v5322_v39, 0.0  ;;  %v5364_v8 = vsel %vm795_vm3, %v5323_v60, 0.0 }
 0x221   : > { %v6844_v11 = vadd.f32 %v6806_v41, %v9111_v61  ;;  %v4970_v1 = vpop.f32.mrb[13].mxu0  ;;  %v5262_v62 = vadd.f32 %v5261_v31, %v5260_v2  ;;  %v5363_v43 = vadd.f32 %v5362_v56, %v5361_v52  ;;  %v5263_v61 = vsel %vm795_vm3, %v6842_v29, 0.0 }
 0x222   : > { %v6845_v25 = vadd.f32 %v4970_v1, %v9113_v34  ;;  %v6807_v18 = vpop.f32.mrb[14].mxu0  ;;  %v5366_v6 = vsel %vm795_vm3, %v5324_v45, 0.0 }
 0x223   : > { %v6266_v4 = vpack.c.bf16 %v6844_v11, %v6844_v11  ;;  %v4973_v46 = vpop.f32.mrb[15].mxu0  ;;  %v5365_v14 = vadd.f32 %v5364_v8, %v5363_v43  ;;  %v5264_v10 = vadd.f32 %v5263_v61, %v5262_v62  ;;  %v6846_v34 = vadd.f32 %v6807_v18, %v9115_v5 }
 0x224   : > { %v6264_v22 = vpack.c.bf16 %v6845_v25, %v6845_v25  ;;  %v5265_v57 = vsel %vm795_vm3, %v6845_v25, 0.0  ;;  %v5325_v37 = vmul.f32 %v6845_v25, %v6845_v25  ;;  %v6847_v9 = vadd.f32 %v4973_v46, %v9117_v20 }
 0x225   : > { %5224 = vst.msk [vmem:[%s9123_s22 + $0x38] sm:$0xf] %vm5209_vm7, %v6266_v4  ;;  %v5327_v21 = vmul.f32 %v6844_v11, %v6844_v11  ;;  %v5266_v33 = vadd.f32 %v5265_v57, %v5264_v10  ;;  %v5367_v26 = vadd.f32 %v5366_v6, %v5365_v14  ;;  %v6267_v15 = vpack.c.bf16 %v6846_v34, %v6846_v34 }
 0x226   : > { %5222 = vst.msk [vmem:[%s9123_s22 + $0x30] sm:$0xf] %vm5209_vm7, %v6264_v22  ;;  %v5368_v7 = vsel %vm795_vm3, %v5325_v37, 0.0  ;;  %v6265_v53 = vpack.c.bf16 %v6847_v9, %v6847_v9  ;;  %v5267_v59 = vsel %vm795_vm3, %v6847_v9, 0.0  ;;  %v5326_v49 = vmul.f32 %v6847_v9, %v6847_v9 }
 0x227   : > { %v5369_v5 = vadd.f32 %v5368_v7, %v5367_v26  ;;  %5225 = vst.msk [vmem:[%s9123_s22 + $0x3c] sm:$0xf] %vm5209_vm7, %v6267_v15  ;;  %v5268_v20 = vadd.f32 %v5267_v59, %v5266_v33  ;;  %v5269_v27 = vsel %vm795_vm3, %v6844_v11, 0.0  ;;  %v5328_v19 = vmul.f32 %v6846_v34, %v6846_v34 }
 0x228   : > { %v6810_v38 = vpop.f32.mrb[16].mxu0  ;;  %5223 = vst.msk [vmem:[%s9123_s22 + $0x34] sm:$0xf] %vm5209_vm7, %v6265_v53  ;;  %v5370_v3 = vsel %vm795_vm3, %v5326_v49, 0.0  ;;  %v5372_v42 = vsel %vm795_vm3, %v5327_v21, 0.0  ;;  %v5271_v55 = vsel %vm795_vm3, %v6846_v34, 0.0 }
 0x229   : > { %v6650_v32 = vpop.f32.mrb[16].mxu1  ;;  %v4986_v12 = vpop.f32.mrb[17].mxu0  ;;  %v5270_v51 = vadd.f32 %v5269_v27, %v5268_v20  ;;  %v5371_v23 = vadd.f32 %v5370_v3, %v5369_v5  ;;  %v5374_v48 = vsel %vm795_vm3, %v5328_v19, 0.0 }
 0x22a   : > { %v6848_v50 = vadd.f32 %v6810_v38, %v6650_v32  ;;  %v2849_v24 = vpop.f32.mrb[17].mxu1  ;;  %v6811_v36 = vpop.f32.mrb[18].mxu0 }
 0x22b   : > { %v6849_v54 = vadd.f32 %v4986_v12, %v2849_v24  ;;  %v6651_v17 = vpop.f32.mrb[18].mxu1  ;;  %v4989_v63 = vpop.f32.mrb[19].mxu0  ;;  %v5373_v44 = vadd.f32 %v5372_v42, %v5371_v23  ;;  %v5272_v58 = vadd.f32 %v5271_v55, %v5270_v51 }
 0x22c   : > { %v6270_v40 = vpack.c.bf16 %v6848_v50, %v6848_v50  ;;  %v2852_v47 = vpop.f32.mrb[19].mxu1  ;;  %v6850_v60 = vadd.f32 %v6811_v36, %v6651_v17  ;;  %v5331_v35 = vmul.f32 %v6848_v50, %v6848_v50  ;;  %v5277_v62 = vsel %vm795_vm3, %v6848_v50, 0.0 }
 0x22d   : > { %v6268_v13 = vpack.c.bf16 %v6849_v54, %v6849_v54  ;;  %v5273_v29 = vsel %vm795_vm3, %v6849_v54, 0.0  ;;  %v5329_v16 = vmul.f32 %v6849_v54, %v6849_v54  ;;  %v6851_v30 = vadd.f32 %v4989_v63, %v2852_v47 }
 0x22e   : > { %5228 = vst.msk [vmem:[%s9123_s22 + $0x48] sm:$0xf] %vm5209_vm7, %v6270_v40  ;;  %v5274_v0 = vadd.f32 %v5273_v29, %v5272_v58  ;;  %v5375_v39 = vadd.f32 %v5374_v48, %v5373_v44  ;;  %v6271_v41 = vpack.c.bf16 %v6850_v60, %v6850_v60  ;;  %v5332_v43 = vmul.f32 %v6850_v60, %v6850_v60 }
 0x22f   : > { %5226 = vst.msk [vmem:[%s9123_s22 + $0x40] sm:$0xf] %vm5209_vm7, %v6268_v13  ;;  %v5376_v28 = vsel %vm795_vm3, %v5329_v16, 0.0  ;;  %v6269_v52 = vpack.c.bf16 %v6851_v30, %v6851_v30  ;;  %v5275_v2 = vsel %vm795_vm3, %v6851_v30, 0.0  ;;  %v5330_v11 = vmul.f32 %v6851_v30, %v6851_v30 }
 0x230   : > { %v6814_v31 = vpop.f32.mrb[20].mxu0  ;;  %v5377_v45 = vadd.f32 %v5376_v28, %v5375_v39  ;;  %5229 = vst.msk [vmem:[%s9123_s22 + $0x4c] sm:$0xf] %vm5209_vm7, %v6271_v41  ;;  %v5276_v56 = vadd.f32 %v5275_v2, %v5274_v0  ;;  %v5380_v57 = vsel %vm795_vm3, %v5331_v35, 0.0  ;;  %v5279_v6 = vsel %vm795_vm3, %v6850_v60, 0.0 }
 0x231   : > { %v6654_v1 = vpop.f32.mrb[20].mxu1  ;;  %v5002_v8 = vpop.f32.mrb[21].mxu0  ;;  %5227 = vst.msk [vmem:[%s9123_s22 + $0x44] sm:$0xf] %vm5209_vm7, %v6269_v52  ;;  %v5378_v4 = vsel %vm795_vm3, %v5330_v11, 0.0  ;;  %v5382_v49 = vsel %vm795_vm3, %v5332_v43, 0.0 }
 0x232   : > { %v6852_v25 = vadd.f32 %v6814_v31, %v6654_v1  ;;  %v2865_v18 = vpop.f32.mrb[21].mxu1  ;;  %v6815_v22 = vpop.f32.mrb[22].mxu0  ;;  %v5278_v37 = vadd.f32 %v5277_v62, %v5276_v56  ;;  %v5379_v14 = vadd.f32 %v5378_v4, %v5377_v45 }
 0x233   : > { %v6853_v46 = vadd.f32 %v5002_v8, %v2865_v18  ;;  %v6655_v61 = vpop.f32.mrb[22].mxu1  ;;  %v5005_v9 = vpop.f32.mrb[23].mxu0 }
 0x234   : > { %v6274_v10 = vpack.c.bf16 %v6852_v25, %v6852_v25  ;;  %v2868_v34 = vpop.f32.mrb[23].mxu1  ;;  %v5381_v26 = vadd.f32 %v5380_v57, %v5379_v14  ;;  %v5280_v15 = vadd.f32 %v5279_v6, %v5278_v37  ;;  %v6854_v53 = vadd.f32 %v6815_v22, %v6655_v61 }
 0x235   : > { %v6272_v7 = vpack.c.bf16 %v6853_v46, %v6853_v46  ;;  %v5281_v21 = vsel %vm795_vm3, %v6853_v46, 0.0  ;;  %v5333_v33 = vmul.f32 %v6853_v46, %v6853_v46  ;;  %v6855_v59 = vadd.f32 %v5005_v9, %v2868_v34 }
 0x236   : > { %5232 = vst.msk [vmem:[%s9123_s22 + $0x58] sm:$0xf] %vm5209_vm7, %v6274_v10  ;;  %v5335_v38 = vmul.f32 %v6852_v25, %v6852_v25  ;;  %v5282_v5 = vadd.f32 %v5281_v21, %v5280_v15  ;;  %v5383_v20 = vadd.f32 %v5382_v49, %v5381_v26  ;;  %v6275_v50 = vpack.c.bf16 %v6854_v53, %v6854_v53 }
 0x237   : > { %5230 = vst.msk [vmem:[%s9123_s22 + $0x50] sm:$0xf] %vm5209_vm7, %v6272_v7  ;;  %v5384_v32 = vsel %vm795_vm3, %v5333_v33, 0.0  ;;  %v6273_v24 = vpack.c.bf16 %v6855_v59, %v6855_v59  ;;  %v5283_v12 = vsel %vm795_vm3, %v6855_v59, 0.0  ;;  %v5334_v27 = vmul.f32 %v6855_v59, %v6855_v59 }
 0x238   : > { %v6818_v3 = vpop.f32.mrb[24].mxu0  ;;  %v5385_v54 = vadd.f32 %v5384_v32, %v5383_v20  ;;  %5233 = vst.msk [vmem:[%s9123_s22 + $0x5c] sm:$0xf] %vm5209_vm7, %v6275_v50  ;;  %v5284_v17 = vadd.f32 %v5283_v12, %v5282_v5  ;;  %v5285_v23 = vsel %vm795_vm3, %v6852_v25, 0.0  ;;  %v5336_v40 = vmul.f32 %v6854_v53, %v6854_v53 }
 0x239   : > { %v6658_v19 = vpop.f32.mrb[24].mxu1  ;;  %v5018_v51 = vpop.f32.mrb[25].mxu0  ;;  %5231 = vst.msk [vmem:[%s9123_s22 + $0x54] sm:$0xf] %vm5209_vm7, %v6273_v24  ;;  %v5386_v47 = vsel %vm795_vm3, %v5334_v27, 0.0  ;;  %v5388_v29 = vsel %vm795_vm3, %v5335_v38, 0.0 }
 0x23a   : > { %v6856_v36 = vadd.f32 %v6818_v3, %v6658_v19  ;;  %v2881_v42 = vpop.f32.mrb[25].mxu1  ;;  %v6819_v13 = vpop.f32.mrb[26].mxu0  ;;  %v5286_v16 = vadd.f32 %v5285_v23, %v5284_v17  ;;  %v5387_v44 = vadd.f32 %v5386_v47, %v5385_v54  ;;  %v5287_v48 = vsel %vm795_vm3, %v6854_v53, 0.0 }
 0x23b   : > { %v6857_v63 = vadd.f32 %v5018_v51, %v2881_v42  ;;  %v6659_v55 = vpop.f32.mrb[26].mxu1  ;;  %v5021_v30 = vpop.f32.mrb[27].mxu0  ;;  %v5390_v11 = vsel %vm795_vm3, %v5336_v40, 0.0 }
 0x23c   : > { %v6278_v58 = vpack.c.bf16 %v6856_v36, %v6856_v36  ;;  %v2884_v60 = vpop.f32.mrb[27].mxu1  ;;  %v5389_v39 = vadd.f32 %v5388_v29, %v5387_v44  ;;  %v5288_v41 = vadd.f32 %v5287_v48, %v5286_v16  ;;  %v6858_v52 = vadd.f32 %v6819_v13, %v6659_v55 }
 0x23d   : > { %v6276_v28 = vpack.c.bf16 %v6857_v63, %v6857_v63  ;;  %v5289_v35 = vsel %vm795_vm3, %v6857_v63, 0.0  ;;  %v5337_v0 = vmul.f32 %v6857_v63, %v6857_v63  ;;  %v6859_v2 = vadd.f32 %v5021_v30, %v2884_v60 }
 0x23e   : > { %5236 = vst.msk [vmem:[%s9123_s22 + $0x68] sm:$0xf] %vm5209_vm7, %v6278_v58  ;;  %v5339_v31 = vmul.f32 %v6856_v36, %v6856_v36  ;;  %v5290_v45 = vadd.f32 %v5289_v35, %v5288_v41  ;;  %v5391_v56 = vadd.f32 %v5390_v11, %v5389_v39  ;;  %v6279_v25 = vpack.c.bf16 %v6858_v52, %v6858_v52 }
 0x23f   : > { %5234 = vst.msk [vmem:[%s9123_s22 + $0x60] sm:$0xf] %vm5209_vm7, %v6276_v28  ;;  %v5392_v1 = vsel %vm795_vm3, %v5337_v0, 0.0  ;;  %v6277_v18 = vpack.c.bf16 %v6859_v2, %v6859_v2  ;;  %v5291_v8 = vsel %vm795_vm3, %v6859_v2, 0.0  ;;  %v5338_v62 = vmul.f32 %v6859_v2, %v6859_v2 }
 0x240   : > { %v6822_v4 = vpop.f32.mrb[28].mxu0  ;;  %v5393_v46 = vadd.f32 %v5392_v1, %v5391_v56  ;;  %5237 = vst.msk [vmem:[%s9123_s22 + $0x6c] sm:$0xf] %vm5209_vm7, %v6279_v25  ;;  %v5292_v61 = vadd.f32 %v5291_v8, %v5290_v45  ;;  %v5293_v14 = vsel %vm795_vm3, %v6856_v36, 0.0  ;;  %v5340_v10 = vmul.f32 %v6858_v52, %v6858_v52 }
 0x241   : > { %v6662_v43 = vpop.f32.mrb[28].mxu1  ;;  %v5034_v37 = vpop.f32.mrb[29].mxu0  ;;  %5235 = vst.msk [vmem:[%s9123_s22 + $0x64] sm:$0xf] %vm5209_vm7, %v6277_v18  ;;  %v5394_v34 = vsel %vm795_vm3, %v5338_v62, 0.0  ;;  %v5396_v21 = vsel %vm795_vm3, %v5339_v31, 0.0 }
 0x242   : > { %v6860_v22 = vadd.f32 %v6822_v4, %v6662_v43  ;;  %v2897_v57 = vpop.f32.mrb[29].mxu1  ;;  %v6823_v7 = vpop.f32.mrb[30].mxu0  ;;  %v5294_v33 = vadd.f32 %v5293_v14, %v5292_v61  ;;  %v5395_v26 = vadd.f32 %v5394_v34, %v5393_v46  ;;  %v5295_v49 = vsel %vm795_vm3, %v6858_v52, 0.0 }
 0x243   : > { %v6861_v9 = vadd.f32 %v5034_v37, %v2897_v57  ;;  %v6663_v6 = vpop.f32.mrb[30].mxu1  ;;  %v5037_v59 = vpop.f32.mrb[31].mxu0  ;;  %v5398_v27 = vsel %vm795_vm3, %v5340_v10, 0.0 }
 0x244   : > { %v6282_v15 = vpack.c.bf16 %v6860_v22, %v6860_v22  ;;  %v2900_v53 = vpop.f32.mrb[31].mxu1  ;;  %v5397_v20 = vadd.f32 %v5396_v21, %v5395_v26  ;;  %v5296_v50 = vadd.f32 %v5295_v49, %v5294_v33  ;;  %v6862_v24 = vadd.f32 %v6823_v7, %v6663_v6 }
 0x245   : > { %v6280_v32 = vpack.c.bf16 %v6861_v9, %v6861_v9  ;;  %v5297_v38 = vsel %vm795_vm3, %v6861_v9, 0.0  ;;  %v5341_v5 = vmul.f32 %v6861_v9, %v6861_v9  ;;  %v6863_v12 = vadd.f32 %v5037_v59, %v2900_v53 }
 0x246   : > { %5240 = vst.msk [vmem:[%s9123_s22 + $0x78] sm:$0xf] %vm5209_vm7, %v6282_v15  ;;  %v5298_v3 = vadd.f32 %v5297_v38, %v5296_v50  ;;  %v5399_v54 = vadd.f32 %v5398_v27, %v5397_v20  ;;  %v6283_v17 = vpack.c.bf16 %v6862_v24, %v6862_v24  ;;  %v5343_v36 = vmul.f32 %v6860_v22, %v6860_v22 }
 0x247   : > { %5238 = vst.msk [vmem:[%s9123_s22 + $0x70] sm:$0xf] %vm5209_vm7, %v6280_v32  ;;  %v5400_v19 = vsel %vm795_vm3, %v5341_v5, 0.0  ;;  %v6281_v42 = vpack.c.bf16 %v6863_v12, %v6863_v12  ;;  %v5299_v51 = vsel %vm795_vm3, %v6863_v12, 0.0  ;;  %v5342_v23 = vmul.f32 %v6863_v12, %v6863_v12 }
 0x248   : > { %v5401_v40 = vadd.f32 %v5400_v19, %v5399_v54  ;;  %5241 = vst.msk [vmem:[%s9123_s22 + $0x7c] sm:$0xf] %vm5209_vm7, %v6283_v17  ;;  %v5300_v47 = vadd.f32 %v5299_v51, %v5298_v3  ;;  %v5301_v63 = vsel %vm795_vm3, %v6860_v22, 0.0  ;;  %v5344_v55 = vmul.f32 %v6862_v24, %v6862_v24 }
 0x249   : > { %5239 = vst.msk [vmem:[%s9123_s22 + $0x74] sm:$0xf] %vm5209_vm7, %v6281_v42  ;;  %v5402_v13 = vsel %vm795_vm3, %v5342_v23, 0.0  ;;  %v5404_v44 = vsel %vm795_vm3, %v5343_v36, 0.0  ;;  %v5303_v58 = vsel %vm795_vm3, %v6862_v24, 0.0 }
 0x24a   : > { %v5302_v29 = vadd.f32 %v5301_v63, %v5300_v47  ;;  %v5403_v16 = vadd.f32 %v5402_v13, %v5401_v40  ;;  %v5406_v48 = vsel %vm795_vm3, %v5344_v55, 0.0 }
 0x24c   : > { %v5304_v60 = vadd.f32 %v5303_v58, %v5302_v29  ;;  %v5405_v30 = vadd.f32 %v5404_v44, %v5403_v16 }
 0x24e   : > { %v5305_v28 = vrot.slane %v5304_v60, 4  ;;  %v5407_v35 = vadd.f32 %v5406_v48, %v5405_v30 }
 0x250   : > { %v5306_v0 = vadd.f32 %v5305_v28, %v5304_v60  ;;  %v5408_v39 = vrot.slane %v5407_v35, 4 }
 0x252   : > { %v5307_v41 = vrot.slane %v5306_v0, 2  ;;  %v5409_v52 = vadd.f32 %v5408_v39, %v5407_v35 }
 0x254   : > { %v5308_v2 = vadd.f32 %v5307_v41, %v5306_v0  ;;  %v5410_v11 = vrot.slane %v5409_v52, 2 }
 0x256   : > { %v5309_v1 = vrot.slane %v5308_v2, 1  ;;  %v5411_v31 = vadd.f32 %v5410_v11, %v5409_v52 }
 0x258   : > { %v5310_v45 = vadd.f32 %v5309_v1, %v5308_v2  ;;  %v5412_v56 = vrot.slane %v5411_v31, 1 }
 0x25a   : > { %5312 = vst.msk [vmem:[%s263_s25] sm:$0x1] %vm5311_vm8, %v5310_v45  ;;  %v5413_v25 = vadd.f32 %v5412_v56, %v5411_v31 }
 0x25c   : > { %5414 = vst.msk [vmem:[%s269_s28] sm:$0x1] %vm5311_vm8, %v5413_v25 }
 0x25d PF: > { %s15_s17 = sadd.s32 1, %s7285_s17   ;;  %s9345_s15 = smov %s7281_s16 }
 0x25e   : > { %p12_p5 = scmp.ge.s32.totalorder %s15_s17, 4   ;;  %s9346_s16 = smov %s9348_s18 }
 0x260   :  { %14 = sbr.rel (!%p12_p5) target bundleno = 2 (0x2), region = 92 }

// kernel: unet_conv_block_3d.4
= control target key start
LH: loop header
LB: loop body
LE: loop exit
PB: predicated region body
PF: predicated region fallthrough
CT: control target
= control target key end

     0   :  { %s5288_s21 = smov 0   ;;  %s5290_s22 = smov 0   ;;  %s6257_s0 = inlined_call_operand.vmem [shape: bf16[2,1,18,18,64], index: 0, kind: input, shape index: {}]   ;;  %s6258_s1 = inlined_call_operand.vmem [shape: bf16[9,64,128], index: 1, kind: input, shape index: {}]   ;;  %s6259_s2 = inlined_call_operand.vmem [shape: f32[2,1,64], index: 2, kind: input, shape index: {}]   ;;  %s6260_s3 = inlined_call_operand.vmem [shape: f32[2,1,64], index: 3, kind: input, shape index: {}]   ;;  %s6261_s4 = inlined_call_operand.vmem [shape: bf16[2,16,16,128], index: 4, kind: output, shape index: {0}]   ;;  %s6262_s5 = inlined_call_operand.vmem [shape: f32[2,1,1,128], index: 5, kind: output, shape index: {1}]   ;;  %s6263_s6 = inlined_call_operand.vmem [shape: f32[2,1,1,128], index: 6, kind: output, shape index: {2}]  }
   0x1   :  { %s5292_s23 = smov 0  }
   0x2 LB: > { %s29_s24 = sadd.s32 1, %s5245_s22  ;;  %p3904_p0 = scmp.ge.s32.totalorder %s5249_s23, 1  ;;  %s5249_s23 = sphi %s5292_s23, %s17_s23   ;;  %s5245_s22 = sphi %s5290_s22, %s6272_s22   ;;  %s5241_s21 = sphi %s5288_s21, %s6271_s21  }
   0x3   : > { %p31_p1 = scmp.ge.s32.totalorder %s29_s24, 2  ;;  %p257_p2 = scmp.lt.s32.totalorder %s5249_s23, 3 }
   0x5   : > { %s6274_s24 = smov (%p31_p1, %s29_s24), 0  ;;  %p258_p3 = pnand %p3904_p0, %p257_p2 }
   0x7   : > { %261 = sbr.rel (%p258_p3) target bundleno = 603 (0x25b), region = 36 }
   0xe   : > { %v5185_v0 = vld [vmem:[%s6258_s1 + $0x20] sm:$0xff]   ;;  %v764_v1 = vlaneseq  ;;  %v5251_v3 = vmov 0   ;;  %v5187_v5 = vld [vmem:[%s6258_s1 + $0x28] sm:$0xff]   ;;  %vm1260_vm0 = vcmask 523264   ;;  %p314_p4 = scmp.lt.s32.totalorder %s5241_s21, 1  ;;  %v5189_v7 = vld [vmem:[%s6258_s1 + $0x30] sm:$0xff]  }
   0xf   : > { %v5186_v2 = vld [vmem:[%s6258_s1 + $0x80] sm:$0xff]   ;;  %v5312_v4 = vrot.slane %v5251_v3, 1  ;;  %4534 = vmatprep.subr.bf16.mxu1 %v5185_v0  ;;  %v5188_v6 = vld [vmem:[%s6258_s1 + $0x88] sm:$0xff]   ;;  %v5190_v9 = vld [vmem:[%s6258_s1 + $0x90] sm:$0xff]   ;;  %vm1034_vm6 = vsmask.f32 7424 }
  0x10   : > { %4694 = vmatprep.subr.bf16.mxu0 %v5186_v2  ;;  %4535 = vmatpush3.bf16.msra.mxu1 %v5185_v0  ;;  %v5323_v8 = vshrl.u32 %v764_v1, 7  ;;  %s6276_s21 = smov (!%p314_p4, %s5241_s21), 1  ;;  %v5191_v10 = vld [vmem:[%s6258_s1 + $0x38] sm:$0xff]   ;;  %v5370_v17 = vld [vmem:[%s6258_s1] sm:$0xff]  }
  0x11   : > { %6267 = vst [vmem:[#allocation2_spill] sm:$0xff] %v5312_v4  ;;  %4695 = vmatpush3.bf16.msra.mxu0 %v5186_v2  ;;  %4536 = vmatprep.subr.bf16.mxu1 %v5187_v5  ;;  %s5158_s13 = smul.u32 216, %s6276_s21  ;;  %s5337_s16 = scalar_lea.vmem %s6259_s2, %s6276_s21  ;;  %v5192_v11 = vld [vmem:[%s6258_s1 + $0x98] sm:$0xff]   ;;  %v5375_v21 = vld [vmem:[%s6258_s1 + $0xa0] sm:$0xff]  }
  0x12   : > { %4696 = vmatprep.subr.bf16.mxu0 %v5188_v6  ;;  %4542 = vmatprep.mubr.msk.bf16.mxu1 %vm1260_vm0, %v5312_v4  ;;  %s5349_s27 = scalar_lea.vmem %s6260_s3, %s6276_s21  ;;  %v5352_v12 = vadd.s32 16, %v5323_v8  ;;  %v5360_v13 = vld [vmem:[%s5337_s16] ss:$0 sm:$0xff]  ;;  %vm822_vm1 = vcmp.eq.s32.totalorder %v5323_v8, 0  ;;  %s4186_s14 = sshll.u32 %s6276_s21, 7 }
  0x13   : > { %s5357_s30 = scalar_lea.vmem %s6257_s0, %s5158_s13  ;;  %v5365_v16 = vld [vmem:[%s5349_s27] ss:$0 sm:$0xff]  ;;  %s6218_s18 = scalar_lea.vmem %s6261_s4, %s4186_s14 }
  0x14   : > { %4537 = vmatpush3.bf16.msra.mxu1 %v5187_v5  ;;  %v356_v14 = vld [vmem:[%s5357_s30 + $0xc] sm:$0xff]   ;;  %v358_v15 = vld [vmem:[%s5357_s30 + $0x14] sm:$0x1]  ;;  %vm881_vm2 = vcmp.eq.s32.totalorder %v5352_v12, 17  ;;  %v4331_v22 = vld [vmem:[%s5357_s30 + $0x18] sm:$0xff]   ;;  %s351_s25 = scalar_lea.vmem %s6263_s6, %s6276_s21 }
  0x15   : > { %4697 = vmatpush3.bf16.msra.mxu0 %v5188_v6  ;;  %4538 = vmatprep.subr.bf16.mxu1 %v5189_v7  ;;  %v410_v18 = vunpack.c.l.bf16 %v356_v14  ;;  %v411_v19 = vunpack.c.h.bf16 %v356_v14  ;;  %v412_v20 = vunpack.c.l.bf16 %v358_v15  ;;  %v361_v23 = vld [vmem:[%s5357_s30 + $0x20] sm:$0x1]  ;;  %v362_v24 = vld [vmem:[%s5357_s30 + $0x24] sm:$0xff]   ;;  %v4221_v28 = vunpack.c.l.bf16 %v4331_v22  ;;  %v364_v29 = vld [vmem:[%s5357_s30 + $0x2c] sm:$0x1] }
  0x16   : > { %4698 = vmatprep.subr.bf16.mxu0 %v5190_v9  ;;  %v4222_v30 = vunpack.c.h.bf16 %v4331_v22  ;;  %v415_v31 = vunpack.c.l.bf16 %v361_v23  ;;  %v416_v32 = vunpack.c.l.bf16 %v362_v24  ;;  %v417_v33 = vunpack.c.h.bf16 %v362_v24 }
  0x17   : > { %v471_v25 = vmul.f32 %v5360_v13, %v410_v18  ;;  %v472_v26 = vmul.f32 %v5360_v13, %v411_v19  ;;  %v473_v27 = vmul.f32 %v5360_v13, %v412_v20  ;;  %v474_v37 = vmul.f32 %v4221_v28, %v5360_v13  ;;  %v367_v20 = vld [vmem:[%s5357_s30 + $0x38] sm:$0x1] }
  0x18   : > { %4539 = vmatpush3.bf16.msra.mxu1 %v5189_v7  ;;  %v475_v38 = vmul.f32 %v4222_v30, %v5360_v13  ;;  %v476_v39 = vmul.f32 %v5360_v13, %v415_v31  ;;  %v418_v40 = vunpack.c.l.bf16 %v364_v29  ;;  %v477_v41 = vmul.f32 %v5360_v13, %v416_v32 }
  0x19   : > { %4699 = vmatpush3.bf16.msra.mxu0 %v5190_v9  ;;  %4540 = vmatprep.subr.bf16.mxu1 %v5191_v10  ;;  %v532_v34 = vadd.f32 %v5365_v16, %v471_v25  ;;  %v533_v35 = vadd.f32 %v5365_v16, %v472_v26  ;;  %v534_v36 = vadd.f32 %v5365_v16, %v473_v27  ;;  %v5196_v26 = vld [vmem:[%s6258_s1 + $0x8] sm:$0xff]  }
  0x1a   : > { %4700 = vmatprep.subr.bf16.mxu0 %v5192_v11  ;;  %v535_v45 = vadd.f32 %v5365_v16, %v474_v37  ;;  %v536_v46 = vadd.f32 %v5365_v16, %v475_v38  ;;  %v537_v48 = vadd.f32 %v5365_v16, %v476_v39  ;;  %v478_v49 = vmul.f32 %v5360_v13, %v417_v33 }
  0x1b   : > { %vm586_vm3 = vcmp.ge.f32.partialorder %v532_v34, 0.0  ;;  %vm587_vm4 = vcmp.ge.f32.partialorder %v533_v35, 0.0  ;;  %vm588_vm5 = vcmp.ge.f32.partialorder %v534_v36, 0.0  ;;  %v640_v42 = vmul.f32 0.01, %v532_v34 }
  0x1c   : > { %4541 = vmatpush3.bf16.msra.mxu1 %v5191_v10  ;;  %v641_v43 = vmul.f32 0.01, %v533_v35  ;;  %v642_v44 = vmul.f32 0.01, %v534_v36  ;;  %v479_v50 = vmul.f32 %v5360_v13, %v418_v40  ;;  %vm589_vm7 = vcmp.ge.f32.partialorder %v535_v45, 0.0  ;;  %v4332_v10 = vld [vmem:[%s5357_s30 + $0x30] sm:$0xff]  }
  0x1d   : > { %4701 = vmatpush3.bf16.msra.mxu0 %v5192_v11  ;;  %4574 = vmatprep.subr.bf16.mxu1 %v5370_v17  ;;  %v694_v47 = vsel %vm586_vm3, %v532_v34, %v640_v42  ;;  %vm590_vm8 = vcmp.ge.f32.partialorder %v536_v46, 0.0  ;;  %vm591_vm9 = vcmp.ge.f32.partialorder %v537_v48, 0.0  ;;  %v643_v57 = vmul.f32 0.01, %v535_v45 }
  0x1e   : > { %4734 = vmatprep.subr.bf16.mxu0 %v5375_v21  ;;  %v695_v51 = vsel %vm587_vm4, %v533_v35, %v641_v43  ;;  %v696_v52 = vsel %vm588_vm5, %v534_v36, %v642_v44  ;;  %v939_v53 = vsel %vm822_vm1, 0.0, %v694_v47  ;;  %v644_v58 = vmul.f32 0.01, %v536_v46  ;;  %v368_v35 = vld [vmem:[%s5357_s30 + $0x3c] sm:$0xff]   ;;  %v5195_v43 = vld [vmem:[%s6258_s1 + $0xa8] sm:$0xff]  }
  0x1f   : > { %v941_v54 = vsel %vm881_vm2, 0.0, %v696_v52  ;;  %v5404_v55 = vpack.c.bf16 %v695_v51, %v939_v53  ;;  %v645_v59 = vmul.f32 0.01, %v537_v48  ;;  %v538_v62 = vadd.f32 %v5365_v16, %v477_v41  ;;  %v370_v47 = vld [vmem:[%s5357_s30 + $0x44] sm:$0x1] }
  0x20   : > { %v5406_v56 = vpack.c.bf16 %v941_v54, %v941_v54  ;;  %v539_v63 = vadd.f32 %v5365_v16, %v478_v49  ;;  %v697_v1 = vsel %vm589_vm7, %v535_v45, %v643_v57  ;;  %v698_v2 = vsel %vm590_vm8, %v536_v46, %v644_v58  ;;  %v5199_v49 = vld [vmem:[%s6258_s1 + $0x10] sm:$0xff]  }
  0x21   : > { %v1048_v60 = vshrl.u32 %v5404_v55, 16  ;;  %v1050_v61 = vshll.u32 %v5404_v55, 16  ;;  %v699_v3 = vsel %vm591_vm9, %v537_v48, %v645_v59  ;;  %v942_v6 = vsel %vm822_vm1, 0.0, %v697_v1 }
  0x22   : > { %v1055_v0 = vshll.u32 %v5406_v56, 16  ;;  %v944_v7 = vsel %vm881_vm2, 0.0, %v699_v3  ;;  %v540_v9 = vadd.f32 %v5365_v16, %v479_v50  ;;  %v5419_v14 = vpack.c.bf16 %v698_v2, %v942_v6  ;;  %v4333_v2 = vld [vmem:[%s5357_s30 + $0x48] sm:$0xff]  }
  0x23   : > { %v1052_v5 = vrot.slane %v1050_v61, 1  ;;  %v5421_v15 = vpack.c.bf16 %v944_v7, %v944_v7  ;;  %vm592_vm10 = vcmp.ge.f32.partialorder %v538_v62, 0.0  ;;  %vm593_vm11 = vcmp.ge.f32.partialorder %v539_v63, 0.0 }
  0x24   : > { %v1057_v11 = vrot.slane %v1055_v0, 1  ;;  %vm594_vm12 = vcmp.ge.f32.partialorder %v540_v9, 0.0  ;;  %v646_v19 = vmul.f32 0.01, %v538_v62  ;;  %v1060_v22 = vshrl.u32 %v5419_v14, 16 }
  0x25   : > { %v1053_v18 = vor.u32 %v1052_v5, %v1048_v60  ;;  %v1062_v23 = vshll.u32 %v5419_v14, 16  ;;  %v1067_v24 = vshll.u32 %v5421_v15, 16  ;;  %v1727_v25 = vrot.slane %v5421_v15, 1 }
  0x26   : > { %v647_v28 = vmul.f32 0.01, %v539_v63  ;;  %v648_v29 = vmul.f32 0.01, %v540_v9  ;;  %v700_v30 = vsel %vm592_vm10, %v538_v62, %v646_v19  ;;  %v4225_v34 = vunpack.c.l.bf16 %v4332_v10 }
  0x27   : > { %v1058_v27 = vsel %vm1034_vm6, %v1053_v18, %v1057_v11  ;;  %v1064_v31 = vrot.slane %v1062_v23, 1  ;;  %v1069_v32 = vrot.slane %v1067_v24, 1  ;;  %v945_v33 = vsel %vm822_vm1, 0.0, %v700_v30  ;;  %v5201_v18 = vld [vmem:[%s6258_s1 + $0x18] sm:$0xff]  }
  0x28   : > { %4543 = vmatmul.mubr.msk.bf16.vlgmr.msra.gmra.mrb[0].mxu1 %vm1260_vm0, %v1058_v27  ;;  %4702 = vmatprep.mubr.msk.bf16.mxu0 %vm1260_vm0, %v1058_v27  ;;  %v701_v36 = vsel %vm593_vm11, %v539_v63, %v647_v28  ;;  %v702_v37 = vsel %vm594_vm12, %v540_v9, %v648_v29  ;;  %v4226_v38 = vunpack.c.h.bf16 %v4332_v10  ;;  %v421_v39 = vunpack.c.l.bf16 %v367_v20  ;;  %v5197_v63 = vld [vmem:[%s6258_s1 + $0xb0] sm:$0xff]   ;;  %v5198_v30 = vld [vmem:[%s6258_s1 + $0xb8] sm:$0xff]  }
  0x29   : > { %4575 = vmatpush3.bf16.msra.mxu1 %v5370_v17  ;;  %v1065_v40 = vor.u32 %v1064_v31, %v1060_v22  ;;  %v947_v41 = vsel %vm881_vm2, 0.0, %v702_v37  ;;  %v5442_v42 = vpack.c.bf16 %v701_v36, %v945_v33  ;;  %v480_v44 = vmul.f32 %v4225_v34, %v5360_v13  ;;  %v373_v29 = vld [vmem:[%s5357_s30 + $0x50] sm:$0x1]  ;;  %v5507_v34 = vld [vmem:[%s6258_s1 + $0x40] sm:$0xff]  }
  0x2a   : > { %4576 = vmatprep.subr.bf16.mxu1 %v5196_v26  ;;  %v5448_v17 = vpack.c.bf16 %v947_v41, %v947_v41  ;;  %v481_v45 = vmul.f32 %v4226_v38, %v5360_v13  ;;  %v482_v46 = vmul.f32 %v5360_v13, %v421_v39  ;;  %v422_v48 = vunpack.c.l.bf16 %v368_v35  ;;  %v374_v41 = vld [vmem:[%s5357_s30 + $0x54] sm:$0xff]  }
  0x2b   : > { %v5457_v50 = vsel %vm1034_vm6, %v1065_v40, %v1069_v32  ;;  %v1072_v51 = vshrl.u32 %v5442_v42, 16  ;;  %v1074_v52 = vshll.u32 %v5442_v42, 16  ;;  %v541_v53 = vadd.f32 %v5365_v16, %v480_v44 }
  0x2c   : > { %4703 = vmatmul.mubr.msk.bf16.vlgmr.msra.gmra.mrb[0].mxu0 %vm1260_vm0, %v5457_v50  ;;  %4546 = vmatprep.mubr.msk.bf16.mxu1 %vm1260_vm0, %v5457_v50  ;;  %v1079_v54 = vshll.u32 %v5448_v17, 16  ;;  %v542_v57 = vadd.f32 %v5365_v16, %v481_v45  ;;  %v543_v58 = vadd.f32 %v5365_v16, %v482_v46  ;;  %v423_v59 = vunpack.c.h.bf16 %v368_v35 }
  0x2d   : > { %4735 = vmatpush3.bf16.msra.mxu0 %v5375_v21  ;;  %v1076_v60 = vrot.slane %v1074_v52, 1  ;;  %vm595_vm13 = vcmp.ge.f32.partialorder %v541_v53, 0.0  ;;  %v649_v61 = vmul.f32 0.01, %v541_v53  ;;  %v424_v62 = vunpack.c.l.bf16 %v370_v47  ;;  %4577 = vmatpush3.bf16.msra.mxu1 %v5196_v26 }
  0x2e   : > { %v1081_v0 = vrot.slane %v1079_v54, 1  ;;  %4736 = vmatprep.subr.bf16.mxu0 %v5195_v43  ;;  %vm596_vm14 = vcmp.ge.f32.partialorder %v542_v57, 0.0  ;;  %vm597_vm15 = vcmp.ge.f32.partialorder %v543_v58, 0.0  ;;  %v650_v1 = vmul.f32 0.01, %v542_v57  ;;  %4578 = vmatprep.subr.bf16.mxu1 %v5199_v49 }
  0x2f   : > { %v1077_v3 = vor.u32 %v1076_v60, %v1072_v51  ;;  %v651_v5 = vmul.f32 0.01, %v543_v58  ;;  %v703_v6 = vsel %vm595_vm13, %v541_v53, %v649_v61  ;;  %v483_v21 = vmul.f32 %v5360_v13, %v422_v48 }
  0x30   : > { %v704_v7 = vsel %vm596_vm14, %v542_v57, %v650_v1  ;;  %v948_v9 = vsel %vm822_vm1, 0.0, %v703_v6  ;;  %v484_v10 = vmul.f32 %v5360_v13, %v423_v59  ;;  %v485_v11 = vmul.f32 %v5360_v13, %v424_v62  ;;  %v376_v59 = vld [vmem:[%s5357_s30 + $0x5c] sm:$0x1] }
  0x31   : > { %v5483_v19 = vsel %vm1034_vm6, %v1077_v3, %v1081_v0  ;;  %v705_v20 = vsel %vm597_vm15, %v543_v58, %v651_v5  ;;  %v5485_v22 = vpack.c.bf16 %v704_v7, %v948_v9  ;;  %4737 = vmatpush3.bf16.msra.mxu0 %v5195_v43  ;;  %v544_v23 = vadd.f32 %v5365_v16, %v483_v21  ;;  %v5514_v43 = vld [vmem:[%s6258_s1 + $0xc0] sm:$0xff]  }
  0x32   : > { %4547 = vmatmul.mubr.msk.bf16.gmra.mrb[4].mxu1 %vm1260_vm0, %v5483_v19  ;;  %4706 = vmatprep.mubr.msk.bf16.mxu0 %vm1260_vm0, %v5483_v19  ;;  %v950_v24 = vsel %vm881_vm2, 0.0, %v705_v20  ;;  %v545_v26 = vadd.f32 %v5365_v16, %v484_v10  ;;  %v546_v27 = vadd.f32 %v5365_v16, %v485_v11  ;;  %v4229_v28 = vunpack.c.l.bf16 %v4333_v2 }
  0x33   : > { %v5500_v31 = vpack.c.bf16 %v950_v24, %v950_v24  ;;  %v1084_v32 = vshrl.u32 %v5485_v22, 16  ;;  %v1086_v33 = vshll.u32 %v5485_v22, 16  ;;  %vm598_vm3 = vcmp.ge.f32.partialorder %v544_v23, 0.0  ;;  %4738 = vmatprep.subr.bf16.mxu0 %v5197_v63  ;;  %4579 = vmatpush3.bf16.msra.mxu1 %v5199_v49 }
  0x34   : > { %vm599_vm4 = vcmp.ge.f32.partialorder %v545_v26, 0.0  ;;  %vm600_vm5 = vcmp.ge.f32.partialorder %v546_v27, 0.0  ;;  %v652_v35 = vmul.f32 0.01, %v544_v23  ;;  %v653_v36 = vmul.f32 0.01, %v545_v26  ;;  %4580 = vmatprep.subr.bf16.mxu1 %v5201_v18 }
  0x35   : > { %v1088_v37 = vrot.slane %v1086_v33, 1  ;;  %v1091_v38 = vshll.u32 %v5500_v31, 16  ;;  %v654_v39 = vmul.f32 0.01, %v546_v27  ;;  %v4230_v40 = vunpack.c.h.bf16 %v4333_v2  ;;  %4739 = vmatpush3.bf16.msra.mxu0 %v5197_v63 }
  0x36   : > { %v706_v44 = vsel %vm598_vm3, %v544_v23, %v652_v35  ;;  %v707_v45 = vsel %vm599_vm4, %v545_v26, %v653_v36  ;;  %v427_v46 = vunpack.c.l.bf16 %v373_v29  ;;  %v486_v47 = vmul.f32 %v4229_v28, %v5360_v13  ;;  %4740 = vmatprep.subr.bf16.mxu0 %v5198_v30  ;;  %v4334_v23 = vld [vmem:[%s5357_s30 + $0x60] sm:$0xff]   ;;  %v379_v35 = vld [vmem:[%s5357_s30 + $0x68] sm:$0x1] }
  0x37   : > { %v1089_v48 = vor.u32 %v1088_v37, %v1084_v32  ;;  %v1093_v49 = vrot.slane %v1091_v38, 1  ;;  %v708_v51 = vsel %vm600_vm5, %v546_v27, %v654_v39  ;;  %v951_v52 = vsel %vm822_vm1, 0.0, %v706_v44  ;;  %4581 = vmatpush3.bf16.msra.mxu1 %v5201_v18 }
  0x38   : > { %v953_v53 = vsel %vm881_vm2, 0.0, %v708_v51  ;;  %v5523_v54 = vpack.c.bf16 %v707_v45, %v951_v52  ;;  %v487_v57 = vmul.f32 %v4230_v40, %v5360_v13  ;;  %v488_v58 = vmul.f32 %v5360_v13, %v427_v46  ;;  %4614 = vmatprep.subr.bf16.mxu1 %v5507_v34 }
  0x39   : > { %v5530_v60 = vsel %vm1034_vm6, %v1089_v48, %v1093_v49  ;;  %v5532_v61 = vpack.c.bf16 %v953_v53, %v953_v53  ;;  %v547_v62 = vadd.f32 %v5365_v16, %v486_v47  ;;  %v428_v63 = vunpack.c.l.bf16 %v374_v41  ;;  %4741 = vmatpush3.bf16.msra.mxu0 %v5198_v30 }
  0x3a   : > { %4707 = vmatmul.mubr.msk.bf16.gmra.mrb[4].mxu0 %vm1260_vm0, %v5530_v60  ;;  %4550 = vmatprep.mubr.msk.bf16.mxu1 %vm1260_vm0, %v5530_v60  ;;  %v1096_v0 = vshrl.u32 %v5523_v54, 16  ;;  %v1098_v1 = vshll.u32 %v5523_v54, 16  ;;  %v548_v2 = vadd.f32 %v5365_v16, %v487_v57  ;;  %v549_v3 = vadd.f32 %v5365_v16, %v488_v58 }
  0x3b   : > { %v1103_v5 = vshll.u32 %v5532_v61, 16  ;;  %vm601_vm7 = vcmp.ge.f32.partialorder %v547_v62, 0.0  ;;  %v655_v6 = vmul.f32 0.01, %v547_v62  ;;  %v429_v21 = vunpack.c.h.bf16 %v374_v41  ;;  %4774 = vmatprep.subr.bf16.mxu0 %v5514_v43 }
  0x3c   : > { %v1100_v7 = vrot.slane %v1098_v1, 1  ;;  %vm602_vm8 = vcmp.ge.f32.partialorder %v548_v2, 0.0  ;;  %vm603_vm9 = vcmp.ge.f32.partialorder %v549_v3, 0.0  ;;  %v656_v9 = vmul.f32 0.01, %v548_v2 }
  0x3d   : > { %v1105_v10 = vrot.slane %v1103_v5, 1  ;;  %v657_v11 = vmul.f32 0.01, %v549_v3  ;;  %v709_v18 = vsel %vm601_vm7, %v547_v62, %v655_v6  ;;  %v430_v20 = vunpack.c.l.bf16 %v376_v59  ;;  %v380_v59 = vld [vmem:[%s5357_s30 + $0x6c] sm:$0xff]  }
  0x3e   : > { %v1101_v24 = vor.u32 %v1100_v7, %v1096_v0  ;;  %v710_v26 = vsel %vm602_vm8, %v548_v2, %v656_v9  ;;  %v954_v27 = vsel %vm822_vm1, 0.0, %v709_v18  ;;  %v489_v28 = vmul.f32 %v5360_v13, %v428_v63 }
  0x3f   : > { %v711_v29 = vsel %vm603_vm9, %v549_v3, %v657_v11  ;;  %v5549_v30 = vpack.c.bf16 %v710_v26, %v954_v27  ;;  %v490_v32 = vmul.f32 %v5360_v13, %v429_v21  ;;  %v491_v33 = vmul.f32 %v5360_v13, %v430_v20  ;;  %v382_v21 = vld [vmem:[%s5357_s30 + $0x74] sm:$0x1] }
  0x40   : > { %v5555_v36 = vsel %vm1034_vm6, %v1101_v24, %v1105_v10  ;;  %v956_v37 = vsel %vm881_vm2, 0.0, %v711_v29  ;;  %v550_v38 = vadd.f32 %v5365_v16, %v489_v28  ;;  %v4233_v39 = vunpack.c.l.bf16 %v4334_v23 }
  0x41   : > { %4551 = vmatmul.mubr.msk.bf16.gmra.mrb[8].mxu1 %vm1260_vm0, %v5555_v36  ;;  %4710 = vmatprep.mubr.msk.bf16.mxu0 %vm1260_vm0, %v5555_v36  ;;  %v5564_v40 = vpack.c.bf16 %v956_v37, %v956_v37  ;;  %v1108_v41 = vshrl.u32 %v5549_v30, 16  ;;  %v1110_v44 = vshll.u32 %v5549_v30, 16  ;;  %v551_v45 = vadd.f32 %v5365_v16, %v490_v32 }
  0x42   : > { %v552_v46 = vadd.f32 %v5365_v16, %v491_v33  ;;  %vm604_vm10 = vcmp.ge.f32.partialorder %v550_v38, 0.0  ;;  %v658_v47 = vmul.f32 0.01, %v550_v38  ;;  %v4234_v48 = vunpack.c.h.bf16 %v4334_v23 }
  0x43   : > { %v1112_v49 = vrot.slane %v1110_v44, 1  ;;  %v1115_v51 = vshll.u32 %v5564_v40, 16  ;;  %vm605_vm11 = vcmp.ge.f32.partialorder %v551_v45, 0.0  ;;  %v659_v52 = vmul.f32 0.01, %v551_v45 }
  0x44   : > { %vm606_vm12 = vcmp.ge.f32.partialorder %v552_v46, 0.0  ;;  %v660_v53 = vmul.f32 0.01, %v552_v46  ;;  %v712_v57 = vsel %vm604_vm10, %v550_v38, %v658_v47  ;;  %v433_v58 = vunpack.c.l.bf16 %v379_v35 }
  0x45   : > { %v1113_v62 = vor.u32 %v1112_v49, %v1108_v41  ;;  %v1117_v63 = vrot.slane %v1115_v51, 1  ;;  %v713_v0 = vsel %vm605_vm11, %v551_v45, %v659_v52  ;;  %v957_v1 = vsel %vm822_vm1, 0.0, %v712_v57 }
  0x46   : > { %v714_v2 = vsel %vm606_vm12, %v552_v46, %v660_v53  ;;  %v5574_v3 = vpack.c.bf16 %v713_v0, %v957_v1  ;;  %v492_v5 = vmul.f32 %v4233_v39, %v5360_v13  ;;  %v493_v6 = vmul.f32 %v4234_v48, %v5360_v13 }
  0x47   : > { %v5580_v7 = vsel %vm1034_vm6, %v1113_v62, %v1117_v63  ;;  %v959_v9 = vsel %vm881_vm2, 0.0, %v714_v2  ;;  %v494_v10 = vmul.f32 %v5360_v13, %v433_v58  ;;  %v434_v11 = vunpack.c.l.bf16 %v380_v59 }
  0x48   : > { %4711 = vmatmul.mubr.msk.bf16.gmra.mrb[8].mxu0 %vm1260_vm0, %v5580_v7  ;;  %4554 = vmatprep.mubr.msk.bf16.mxu1 %vm1260_vm0, %v5580_v7  ;;  %v5589_v18 = vpack.c.bf16 %v959_v9, %v959_v9  ;;  %v1120_v20 = vshrl.u32 %v5574_v3, 16  ;;  %v1122_v23 = vshll.u32 %v5574_v3, 16  ;;  %v553_v24 = vadd.f32 %v5365_v16, %v492_v5  ;;  %v4335_v9 = vld [vmem:[%s5357_s30 + $0x78] sm:$0xff]  }
  0x49   : > { %vm1719_vm13 = vcmask 1046528   ;;  %v554_v26 = vadd.f32 %v5365_v16, %v493_v6  ;;  %v555_v27 = vadd.f32 %v5365_v16, %v494_v10  ;;  %v435_v28 = vunpack.c.h.bf16 %v380_v59 }
  0x4a   : > { %v436_v29 = vunpack.c.l.bf16 %v382_v21  ;;  %v1124_v32 = vrot.slane %v1122_v23, 1  ;;  %v1127_v33 = vshll.u32 %v5589_v18, 16  ;;  %vm607_vm14 = vcmp.ge.f32.partialorder %v553_v24, 0.0 }
  0x4b   : > { %v661_v35 = vmul.f32 0.01, %v553_v24  ;;  %vm608_vm15 = vcmp.ge.f32.partialorder %v554_v26, 0.0  ;;  %vm609_vm3 = vcmp.ge.f32.partialorder %v555_v27, 0.0  ;;  %v662_v37 = vmul.f32 0.01, %v554_v26 }
  0x4c   : > { %v663_v38 = vmul.f32 0.01, %v555_v27  ;;  %v1125_v39 = vor.u32 %v1124_v32, %v1120_v20  ;;  %v1129_v41 = vrot.slane %v1127_v33, 1  ;;  %v495_v45 = vmul.f32 %v5360_v13, %v434_v11 }
  0x4d   : > { %v715_v44 = vsel %vm607_vm14, %v553_v24, %v661_v35  ;;  %v716_v46 = vsel %vm608_vm15, %v554_v26, %v662_v37  ;;  %v496_v49 = vmul.f32 %v5360_v13, %v435_v28  ;;  %v497_v57 = vmul.f32 %v5360_v13, %v436_v29  ;;  %v386_v35 = vld [vmem:[%s5357_s30 + $0x84] sm:$0xff]  }
  0x4e   : > { %v717_v47 = vsel %vm609_vm3, %v555_v27, %v663_v38  ;;  %v960_v48 = vsel %vm822_vm1, 0.0, %v715_v44  ;;  %v5602_v51 = vsel %vm1034_vm6, %v1125_v39, %v1129_v41  ;;  %v556_v59 = vadd.f32 %v5365_v16, %v495_v45 }
  0x4f   : > { %v962_v52 = vsel %vm881_vm2, 0.0, %v717_v47  ;;  %v5606_v53 = vpack.c.bf16 %v716_v46, %v960_v48  ;;  %4555 = vmatmul.mubr.msk.bf16.gmra.mrb[12].mxu1 %vm1260_vm0, %v5602_v51  ;;  %4714 = vmatprep.mubr.msk.bf16.mxu0 %vm1260_vm0, %v5602_v51  ;;  %v557_v62 = vadd.f32 %v5365_v16, %v496_v49  ;;  %v1723_v63 = vrot.slane %v5404_v55, 1  ;;  %v388_v48 = vld [vmem:[%s5357_s30 + $0x8c] sm:$0x1] }
  0x50   : > { %v5613_v58 = vpack.c.bf16 %v962_v52, %v962_v52  ;;  %v558_v2 = vadd.f32 %v5365_v16, %v497_v57  ;;  %v1724_v5 = vrot.slane %v5406_v56, 1  ;;  %vm610_vm4 = vcmp.ge.f32.partialorder %v556_v59, 0.0  ;;  %v385_v56 = vld [vmem:[%s5357_s30 + $0x80] sm:$0x1] }
  0x51   : > { %v1132_v0 = vshrl.u32 %v5606_v53, 16  ;;  %v1134_v1 = vshll.u32 %v5606_v53, 16  ;;  %vm611_vm5 = vcmp.ge.f32.partialorder %v557_v62, 0.0  ;;  %v664_v21 = vmul.f32 0.01, %v556_v59 }
  0x52   : > { %v1139_v6 = vshll.u32 %v5613_v58, 16  ;;  %vm612_vm7 = vcmp.ge.f32.partialorder %v558_v2, 0.0  ;;  %v665_v11 = vmul.f32 0.01, %v557_v62  ;;  %v666_v20 = vmul.f32 0.01, %v558_v2 }
  0x53   : > { %v1136_v10 = vrot.slane %v1134_v1, 1  ;;  %v718_v24 = vsel %vm610_vm4, %v556_v59, %v664_v21  ;;  %v5625_v26 = vsel %vm1719_vm13, %v1723_v63, %v1724_v5  ;;  %v1726_v27 = vrot.slane %v5419_v14, 1 }
  0x54   : > { %v1141_v23 = vrot.slane %v1139_v6, 1  ;;  %v719_v29 = vsel %vm611_vm5, %v557_v62, %v665_v11  ;;  %v720_v32 = vsel %vm612_vm7, %v558_v2, %v666_v20  ;;  %v963_v33 = vsel %vm822_vm1, 0.0, %v718_v24 }
  0x55   : > { %v1137_v28 = vor.u32 %v1136_v10, %v1132_v0  ;;  %v965_v37 = vsel %vm881_vm2, 0.0, %v720_v32  ;;  %v5634_v38 = vpack.c.bf16 %v719_v29, %v963_v33  ;;  %v5639_v39 = vsel %vm1719_vm13, %v1726_v27, %v1727_v25  ;;  %v5202_v33 = vld [vmem:[%s6258_s1 + $0xc8] sm:$0xff]  }
  0x56   : > { %v4237_v41 = vunpack.c.l.bf16 %v4335_v9  ;;  %v5644_v45 = vpack.c.bf16 %v965_v37, %v965_v37  ;;  %v4238_v46 = vunpack.c.h.bf16 %v4335_v9  ;;  %v439_v47 = vunpack.c.l.bf16 %v385_v56 }
  0x57   : > { %v5642_v44 = vsel %vm1034_vm6, %v1137_v28, %v1141_v23  ;;  %v1144_v15 = vshrl.u32 %v5634_v38, 16  ;;  %v1146_v25 = vshll.u32 %v5634_v38, 16  ;;  %v440_v52 = vunpack.c.l.bf16 %v386_v35 }
  0x58   : > { %4715 = vmatmul.mubr.msk.bf16.gmra.mrb[12].mxu0 %vm1260_vm0, %v5642_v44  ;;  %4558 = vmatprep.mubr.msk.bf16.mxu1 %vm1260_vm0, %v5642_v44  ;;  %v498_v49 = vmul.f32 %v4237_v41, %v5360_v13  ;;  %v1151_v57 = vshll.u32 %v5644_v45, 16  ;;  %v499_v59 = vmul.f32 %v4238_v46, %v5360_v13  ;;  %v500_v62 = vmul.f32 %v5360_v13, %v439_v47 }
  0x59   : > { %4742 = vmatprep.mubr.msk.bf16.mxu0 %vm1260_vm0, %v5625_v26  ;;  %v441_v63 = vunpack.c.h.bf16 %v386_v35  ;;  %v1148_v0 = vrot.slane %v1146_v25, 1  ;;  %v442_v2 = vunpack.c.l.bf16 %v388_v48  ;;  %v501_v5 = vmul.f32 %v5360_v13, %v440_v52 }
  0x5a   : > { %v559_v1 = vadd.f32 %v5365_v16, %v498_v49  ;;  %v1153_v6 = vrot.slane %v1151_v57, 1  ;;  %v560_v21 = vadd.f32 %v5365_v16, %v499_v59  ;;  %v561_v9 = vadd.f32 %v5365_v16, %v500_v62 }
  0x5b   : > { %v502_v10 = vmul.f32 %v5360_v13, %v441_v63  ;;  %v1149_v11 = vor.u32 %v1148_v0, %v1144_v15  ;;  %v503_v23 = vmul.f32 %v5360_v13, %v442_v2  ;;  %v562_v29 = vadd.f32 %v5365_v16, %v501_v5  ;;  %v5204_v63 = vld [vmem:[%s6258_s1 + $0xd0] sm:$0xff]  }
  0x5c   : > { %vm613_vm8 = vcmp.ge.f32.partialorder %v559_v1, 0.0  ;;  %v667_v20 = vmul.f32 0.01, %v559_v1  ;;  %vm614_vm9 = vcmp.ge.f32.partialorder %v560_v21, 0.0  ;;  %vm615_vm10 = vcmp.ge.f32.partialorder %v561_v9, 0.0  ;;  %v4336_v5 = vld [vmem:[%s5357_s30 + $0x90] sm:$0xff]  }
  0x5d   : > { %v668_v24 = vmul.f32 0.01, %v560_v21  ;;  %v669_v27 = vmul.f32 0.01, %v561_v9  ;;  %v5666_v56 = vsel %vm1034_vm6, %v1149_v11, %v1153_v6  ;;  %v563_v32 = vadd.f32 %v5365_v16, %v502_v10  ;;  %v391_v11 = vld [vmem:[%s5357_s30 + $0x98] sm:$0x1] }
  0x5e   : > { %v721_v28 = vsel %vm613_vm8, %v559_v1, %v667_v20  ;;  %4559 = vmatmul.mubr.msk.bf16.gmra.mrb[16].mxu1 %vm1260_vm0, %v5666_v56  ;;  %v564_v46 = vadd.f32 %v5365_v16, %v503_v23  ;;  %vm616_vm11 = vcmp.ge.f32.partialorder %v562_v29, 0.0  ;;  %v670_v25 = vmul.f32 0.01, %v562_v29 }
  0x5f   : > { %v722_v35 = vsel %vm614_vm9, %v560_v21, %v668_v24  ;;  %v723_v37 = vsel %vm615_vm10, %v561_v9, %v669_v27  ;;  %v966_v41 = vsel %vm822_vm1, 0.0, %v721_v28  ;;  %vm617_vm12 = vcmp.ge.f32.partialorder %v563_v32, 0.0 }
  0x60   : > { %4743 = vmatmul.mubr.msk.bf16.vlgmr.msra.gmra.mrb[0].mxu0 %vm1260_vm0, %v5639_v39  ;;  %v968_v47 = vsel %vm881_vm2, 0.0, %v723_v37  ;;  %v5682_v48 = vpack.c.bf16 %v722_v35, %v966_v41  ;;  %vm618_vm14 = vcmp.ge.f32.partialorder %v564_v46, 0.0  ;;  %v671_v49 = vmul.f32 0.01, %v563_v32  ;;  %v392_v35 = vld [vmem:[%s5357_s30 + $0x9c] sm:$0xff]  }
  0x61   : > { %4775 = vmatpush3.bf16.msra.mxu0 %v5514_v43  ;;  %v5685_v15 = vpack.c.bf16 %v968_v47, %v968_v47  ;;  %v672_v59 = vmul.f32 0.01, %v564_v46  ;;  %v1729_v62 = vrot.slane %v5442_v42, 1  ;;  %v724_v0 = vsel %vm616_vm11, %v562_v29, %v670_v25  ;;  %v394_v25 = vld [vmem:[%s5357_s30 + $0xa4] sm:$0x1] }
  0x62   : > { %v1156_v52 = vshrl.u32 %v5682_v48, 16  ;;  %v1158_v57 = vshll.u32 %v5682_v48, 16  ;;  %4776 = vmatprep.subr.bf16.mxu0 %v5202_v33  ;;  %v725_v1 = vsel %vm617_vm12, %v563_v32, %v671_v49  ;;  %v1730_v2 = vrot.slane %v5448_v17, 1 }
  0x63   : > { %v1163_v43 = vshll.u32 %v5685_v15, 16  ;;  %v726_v21 = vsel %vm618_vm14, %v564_v46, %v672_v59  ;;  %v969_v9 = vsel %vm822_vm1, 0.0, %v724_v0  ;;  %v1732_v10 = vrot.slane %v5485_v22, 1 }
  0x64   : > { %v1160_v6 = vrot.slane %v1158_v57, 1  ;;  %v971_v23 = vsel %vm881_vm2, 0.0, %v726_v21  ;;  %v5702_v24 = vpack.c.bf16 %v725_v1, %v969_v9  ;;  %v5705_v27 = vsel %vm1719_vm13, %v1729_v62, %v1730_v2 }
  0x65   : > { %v1165_v20 = vrot.slane %v1163_v43, 1  ;;  %4777 = vmatpush3.bf16.msra.mxu0 %v5202_v33  ;;  %v5707_v28 = vpack.c.bf16 %v971_v23, %v971_v23  ;;  %4746 = vmatprep.mubr.msk.bf16.mxu0 %vm1260_vm0, %v5705_v27  ;;  %v1733_v29 = vrot.slane %v5500_v31, 1  ;;  %v4241_v32 = vunpack.c.l.bf16 %v4336_v5  ;;  %v5206_v33 = vld [vmem:[%s6258_s1 + $0xd8] sm:$0xff]  }
  0x66   : > { %v1161_v17 = vor.u32 %v1160_v6, %v1156_v52  ;;  %4778 = vmatprep.subr.bf16.mxu0 %v5204_v63  ;;  %v1168_v37 = vshrl.u32 %v5702_v24, 16  ;;  %v1170_v41 = vshll.u32 %v5702_v24, 16  ;;  %v4242_v46 = vunpack.c.h.bf16 %v4336_v5 }
  0x67   : > { %v445_v47 = vunpack.c.l.bf16 %v391_v11  ;;  %v1175_v52 = vshll.u32 %v5707_v28, 16  ;;  %v5724_v31 = vsel %vm1719_vm13, %v1732_v10, %v1733_v29  ;;  %v504_v57 = vmul.f32 %v4241_v32, %v5360_v13 }
  0x68   : > { %v5720_v49 = vsel %vm1034_vm6, %v1161_v17, %v1165_v20  ;;  %v1172_v59 = vrot.slane %v1170_v41, 1  ;;  %4747 = vmatmul.mubr.msk.bf16.gmra.mrb[4].mxu0 %vm1260_vm0, %v5724_v31  ;;  %v505_v62 = vmul.f32 %v4242_v46, %v5360_v13  ;;  %v446_v0 = vunpack.c.l.bf16 %v392_v35  ;;  %v5740_v20 = vld [vmem:[%s6258_s1 + $0xe0] sm:$0xff]  }
  0x69   : > { %4562 = vmatprep.mubr.msk.bf16.mxu1 %vm1260_vm0, %v5720_v49  ;;  %v506_v43 = vmul.f32 %v5360_v13, %v445_v47  ;;  %v1177_v1 = vrot.slane %v1175_v52, 1  ;;  %v565_v2 = vadd.f32 %v5365_v16, %v504_v57  ;;  %v447_v5 = vunpack.c.h.bf16 %v392_v35  ;;  %4779 = vmatpush3.bf16.msra.mxu0 %v5204_v63 }
  0x6a   : > { %v448_v6 = vunpack.c.l.bf16 %v394_v25  ;;  %v1173_v21 = vor.u32 %v1172_v59, %v1168_v37  ;;  %v566_v9 = vadd.f32 %v5365_v16, %v505_v62  ;;  %v507_v11 = vmul.f32 %v5360_v13, %v446_v0  ;;  %4780 = vmatprep.subr.bf16.mxu0 %v5206_v33 }
  0x6b   : > { %v567_v10 = vadd.f32 %v5365_v16, %v506_v43  ;;  %vm619_vm15 = vcmp.ge.f32.partialorder %v565_v2, 0.0  ;;  %v673_v23 = vmul.f32 0.01, %v565_v2  ;;  %v508_v17 = vmul.f32 %v5360_v13, %v447_v5 }
  0x6c   : > { %v509_v29 = vmul.f32 %v5360_v13, %v448_v6  ;;  %v5745_v63 = vsel %vm1034_vm6, %v1173_v21, %v1177_v1  ;;  %vm620_vm3 = vcmp.ge.f32.partialorder %v566_v9, 0.0  ;;  %v674_v32 = vmul.f32 0.01, %v566_v9 }
  0x6d   : > { %vm621_vm4 = vcmp.ge.f32.partialorder %v567_v10, 0.0  ;;  %4563 = vmatmul.mubr.msk.bf16.gmra.mrb[20].mxu1 %vm1260_vm0, %v5745_v63  ;;  %v675_v35 = vmul.f32 0.01, %v567_v10  ;;  %v727_v37 = vsel %vm619_vm15, %v565_v2, %v673_v23  ;;  %v568_v41 = vadd.f32 %v5365_v16, %v507_v11  ;;  %4781 = vmatpush3.bf16.msra.mxu0 %v5206_v33 }
  0x6e   : > { %v569_v46 = vadd.f32 %v5365_v16, %v508_v17  ;;  %v728_v47 = vsel %vm620_vm3, %v566_v9, %v674_v32  ;;  %v972_v13 = vsel %vm822_vm1, 0.0, %v727_v37  ;;  %v570_v25 = vadd.f32 %v5365_v16, %v509_v29  ;;  %4814 = vmatprep.subr.bf16.mxu0 %v5740_v20 }
  0x6f   : > { %v1735_v52 = vrot.slane %v5523_v54, 1  ;;  %v729_v57 = vsel %vm621_vm4, %v567_v10, %v675_v35  ;;  %v5756_v59 = vpack.c.bf16 %v728_v47, %v972_v13  ;;  %vm622_vm5 = vcmp.ge.f32.partialorder %v568_v41, 0.0  ;;  %v4337_v10 = vld [vmem:[%s5357_s30 + $0xa8] sm:$0xff]  }
  0x70   : > { %vm623_vm7 = vcmp.ge.f32.partialorder %v569_v46, 0.0  ;;  %v974_v62 = vsel %vm881_vm2, 0.0, %v729_v57  ;;  %vm624_vm8 = vcmp.ge.f32.partialorder %v570_v25, 0.0  ;;  %v676_v33 = vmul.f32 0.01, %v568_v41  ;;  %v398_v57 = vld [vmem:[%s5357_s30 + $0xb4] sm:$0xff]  }
  0x71   : > { %v677_v43 = vmul.f32 0.01, %v569_v46  ;;  %v5760_v0 = vpack.c.bf16 %v974_v62, %v974_v62  ;;  %v1180_v16 = vshrl.u32 %v5756_v59, 16  ;;  %v1182_v1 = vshll.u32 %v5756_v59, 16 }
  0x72   : > { %v678_v2 = vmul.f32 0.01, %v570_v25  ;;  %v730_v5 = vsel %vm622_vm5, %v568_v41, %v676_v33  ;;  %v1736_v21 = vrot.slane %v5532_v61, 1  ;;  %v1738_v9 = vrot.slane %v5549_v30, 1  ;;  %v397_v41 = vld [vmem:[%s5357_s30 + $0xb0] sm:$0x1] }
  0x73   : > { %v731_v6 = vsel %vm623_vm7, %v569_v46, %v677_v43  ;;  %v1184_v11 = vrot.slane %v1182_v1, 1  ;;  %v1187_v23 = vshll.u32 %v5760_v0, 16  ;;  %v975_v29 = vsel %vm822_vm1, 0.0, %v730_v5  ;;  %v400_v43 = vld [vmem:[%s5357_s30 + $0xbc] sm:$0x1] }
  0x74   : > { %v732_v17 = vsel %vm624_vm8, %v570_v25, %v678_v2  ;;  %v5772_v35 = vpack.c.bf16 %v731_v6, %v975_v29  ;;  %v5775_v37 = vsel %vm1719_vm13, %v1735_v52, %v1736_v21  ;;  %v1739_v61 = vrot.slane %v5564_v40, 1  ;;  %v5797_v5 = vld [vmem:[%s5337_s16] ss:$0 sm:$0xff] }
  0x75   : > { %v977_v32 = vsel %vm881_vm2, 0.0, %v732_v17  ;;  %v1185_v46 = vor.u32 %v1184_v11, %v1180_v16  ;;  %v1189_v47 = vrot.slane %v1187_v23, 1  ;;  %4750 = vmatprep.mubr.msk.bf16.mxu0 %vm1260_vm0, %v5775_v37  ;;  %v4245_v25 = vunpack.c.l.bf16 %v4337_v10  ;;  %v5805_v29 = vld [vmem:[%s5349_s27] ss:$0 sm:$0xff] }
  0x76   : > { %v5779_v13 = vpack.c.bf16 %v977_v32, %v977_v32  ;;  %v1192_v62 = vshrl.u32 %v5772_v35, 16  ;;  %v1194_v33 = vshll.u32 %v5772_v35, 16  ;;  %v5787_v52 = vsel %vm1719_vm13, %v1738_v9, %v1739_v61 }
  0x77   : > { %v4246_v40 = vunpack.c.h.bf16 %v4337_v10  ;;  %v5791_v16 = vsel %vm1034_vm6, %v1185_v46, %v1189_v47  ;;  %4751 = vmatmul.mubr.msk.bf16.gmra.mrb[8].mxu0 %vm1260_vm0, %v5787_v52  ;;  %v451_v2 = vunpack.c.l.bf16 %v397_v41  ;;  %v510_v6 = vmul.f32 %v5797_v5, %v4245_v25 }
  0x78   : > { %v1199_v1 = vshll.u32 %v5779_v13, 16  ;;  %4566 = vmatprep.mubr.msk.bf16.mxu1 %vm1260_vm0, %v5791_v16  ;;  %v1196_v21 = vrot.slane %v1194_v33, 1  ;;  %v452_v10 = vunpack.c.l.bf16 %v398_v57  ;;  %v453_v11 = vunpack.c.h.bf16 %v398_v57 }
  0x79   : > { %v511_v9 = vmul.f32 %v5797_v5, %v4246_v40  ;;  %v512_v17 = vmul.f32 %v5797_v5, %v451_v2  ;;  %v571_v32 = vadd.f32 %v5805_v29, %v510_v6  ;;  %v454_v61 = vunpack.c.l.bf16 %v400_v43 }
  0x7a   : > { %v1201_v23 = vrot.slane %v1199_v1, 1  ;;  %v1197_v41 = vor.u32 %v1196_v21, %v1192_v62  ;;  %v513_v47 = vmul.f32 %v5797_v5, %v452_v10  ;;  %v514_v25 = vmul.f32 %v5797_v5, %v453_v11 }
  0x7b   : > { %v572_v46 = vadd.f32 %v5805_v29, %v511_v9  ;;  %v573_v33 = vadd.f32 %v5805_v29, %v512_v17  ;;  %vm625_vm9 = vcmp.ge.f32.partialorder %v571_v32, 0.0  ;;  %v679_v40 = vmul.f32 0.01, %v571_v32 }
  0x7c   : > { %v515_v57 = vmul.f32 %v5797_v5, %v454_v61  ;;  %v5814_v1 = vsel %vm1034_vm6, %v1197_v41, %v1201_v23  ;;  %v574_v43 = vadd.f32 %v5805_v29, %v513_v47  ;;  %v575_v21 = vadd.f32 %v5805_v29, %v514_v25 }
  0x7d   : > { %6268 = vst [vmem:[#allocation3_spill] sm:$0xff] %v5814_v1  ;;  %vm626_vm10 = vcmp.ge.f32.partialorder %v572_v46, 0.0  ;;  %v680_v2 = vmul.f32 0.01, %v572_v46  ;;  %4567 = vmatmul.mubr.msk.bf16.gmra.mrb[24].mxu1 %vm1260_vm0, %v5814_v1  ;;  %vm627_vm11 = vcmp.ge.f32.partialorder %v573_v33, 0.0  ;;  %v733_v6 = vsel %vm625_vm9, %v571_v32, %v679_v40 }
  0x7e   : > { %v681_v62 = vmul.f32 0.01, %v573_v33  ;;  %v978_v10 = vsel %vm822_vm1, 0.0, %v733_v6  ;;  %v576_v11 = vadd.f32 %v5805_v29, %v515_v57  ;;  %vm628_vm12 = vcmp.ge.f32.partialorder %v574_v43, 0.0 }
  0x7f   : > { %v734_v9 = vsel %vm626_vm10, %v572_v46, %v680_v2  ;;  %vm629_vm14 = vcmp.ge.f32.partialorder %v575_v21, 0.0  ;;  %v682_v61 = vmul.f32 0.01, %v574_v43  ;;  %v683_v47 = vmul.f32 0.01, %v575_v21 }
  0x80   : > { %v735_v23 = vsel %vm627_vm11, %v573_v33, %v681_v62  ;;  %v5823_v17 = vpack.c.bf16 %v734_v9, %v978_v10  ;;  %vm630_vm15 = vcmp.ge.f32.partialorder %v576_v11, 0.0  ;;  %v684_v32 = vmul.f32 0.01, %v576_v11 }
  0x81   : > { %v980_v41 = vsel %vm881_vm2, 0.0, %v735_v23  ;;  %v736_v2 = vsel %vm628_vm12, %v574_v43, %v682_v61  ;;  %v737_v57 = vsel %vm629_vm14, %v575_v21, %v683_v47  ;;  %v1741_v62 = vrot.slane %v5574_v3, 1 }
  0x82   : > { %v5827_v40 = vpack.c.bf16 %v980_v41, %v980_v41  ;;  %v1204_v46 = vshrl.u32 %v5823_v17, 16  ;;  %v1206_v25 = vshll.u32 %v5823_v17, 16  ;;  %v738_v6 = vsel %vm630_vm15, %v576_v11, %v684_v32 }
  0x83   : > { %v981_v33 = vsel %vm822_vm1, 0.0, %v736_v2  ;;  %v983_v23 = vsel %vm881_vm2, 0.0, %v738_v6  ;;  %v1742_v1 = vrot.slane %v5589_v18, 1  ;;  %v1744_v43 = vrot.slane %v5606_v53, 1 }
  0x84   : > { %v1208_v9 = vrot.slane %v1206_v25, 1  ;;  %v1211_v10 = vshll.u32 %v5827_v40, 16  ;;  %v5837_v41 = vpack.c.bf16 %v737_v57, %v981_v33  ;;  %v5839_v4 = vpack.c.bf16 %v983_v23, %v983_v23  ;;  %v4338_v23 = vld [vmem:[%s5357_s30 + $0xc0] sm:$0xff]  }
  0x85   : > { %v1745_v21 = vrot.slane %v5613_v58, 1  ;;  %v5848_v2 = vsel %vm1719_vm13, %v1741_v62, %v1742_v1  ;;  %v1747_v18 = vrot.slane %v5634_v38, 1  ;;  %v1748_v6 = vrot.slane %v5644_v45, 1 }
  0x86   : > { %v1209_v11 = vor.u32 %v1208_v9, %v1204_v46  ;;  %v1213_v61 = vrot.slane %v1211_v10, 1  ;;  %v1216_v47 = vshrl.u32 %v5837_v41, 16  ;;  %v1218_v32 = vshll.u32 %v5837_v41, 16  ;;  %4754 = vmatprep.mubr.msk.bf16.mxu0 %vm1260_vm0, %v5848_v2 }
  0x87   : > { %v1223_v25 = vshll.u32 %v5839_v4, 16  ;;  %v5851_v57 = vsel %vm1719_vm13, %v1744_v43, %v1745_v21  ;;  %v5865_v62 = vsel %vm1719_vm13, %v1747_v18, %v1748_v6  ;;  %v1750_v9 = vrot.slane %v5682_v48, 1  ;;  %v403_v21 = vld [vmem:[%s5357_s30 + $0xc8] sm:$0x1]  ;;  %s345_s30 = scalar_lea.vmem %s6262_s5, %s6276_s21 }
  0x88   : > { %v5855_v58 = vsel %vm1034_vm6, %v1209_v11, %v1213_v61  ;;  %v1220_v46 = vrot.slane %v1218_v32, 1  ;;  %4755 = vmatmul.mubr.msk.bf16.gmra.mrb[12].mxu0 %vm1260_vm0, %v5851_v57  ;;  %v1751_v10 = vrot.slane %v5685_v15, 1  ;;  %v1753_v45 = vrot.slane %v5702_v24, 1 }
  0x89   : > { %4570 = vmatprep.mubr.msk.bf16.mxu1 %vm1260_vm0, %v5855_v58  ;;  %v1225_v1 = vrot.slane %v1223_v25, 1  ;;  %4758 = vmatprep.mubr.msk.bf16.mxu0 %vm1260_vm0, %v5865_v62  ;;  %v1754_v43 = vrot.slane %v5707_v28, 1  ;;  %v4249_v61 = vunpack.c.l.bf16 %v4338_v23  ;;  %v4250_v32 = vunpack.c.h.bf16 %v4338_v23  ;;  %v5205_v23 = vld [vmem:[%s6258_s1 + $0x48] sm:$0xff]  }
  0x8a   : > { %v1221_v33 = vor.u32 %v1220_v46, %v1216_v47  ;;  %v5252_v47 = vmov 0.0|0.0   ;;  %v5882_v15 = vsel %vm1719_vm13, %v1750_v9, %v1751_v10  ;;  %v457_v25 = vunpack.c.l.bf16 %v403_v21 }
  0x8b   : > { %v5885_v18 = vsel %vm1719_vm13, %v1753_v45, %v1754_v43  ;;  %v516_v28 = vmul.f32 %v5797_v5, %v4249_v61  ;;  %v517_v46 = vmul.f32 %v5797_v5, %v4250_v32  ;;  %v1757_v9 = vrot.slane %v5760_v0, 1  ;;  %v5207_v32 = vld [vmem:[%s6258_s1 + $0x50] sm:$0xff]  }
  0x8c   : > { %v5876_v11 = vsel %vm1034_vm6, %v1221_v33, %v1225_v1  ;;  %v518_v6 = vmul.f32 %v5797_v5, %v457_v25  ;;  %v1756_v33 = vrot.slane %v5756_v59, 1  ;;  %v1759_v5 = vrot.slane %v5772_v35, 1 }
  0x8d   : > { %4571 = vmatmul.mubr.msk.bf16.gmra.mrb[28].mxu1 %vm1260_vm0, %v5876_v11  ;;  %v577_v1 = vadd.f32 %v5805_v29, %v516_v28  ;;  %v1760_v45 = vrot.slane %v5779_v13, 1  ;;  %v578_v43 = vadd.f32 %v5805_v29, %v517_v46  ;;  %v1763_v46 = vrot.slane %v5827_v40, 1 }
  0x8e   : > { %4582 = vmatprep.mubr.bf16.mxu1 %v5252_v47  ;;  %v579_v10 = vadd.f32 %v5805_v29, %v518_v6  ;;  %v5910_v0 = vsel %vm1719_vm13, %v1756_v33, %v1757_v9  ;;  %v1765_v6 = vrot.slane %v5837_v41, 1  ;;  %v1766_v33 = vrot.slane %v5839_v4, 1 }
  0x8f   : > { %v685_v21 = vmul.f32 0.01, %v577_v1  ;;  %vm631_vm3 = vcmp.ge.f32.partialorder %v577_v1, 0.0  ;;  %v5913_v13 = vsel %vm1719_vm13, %v1759_v5, %v1760_v45  ;;  %v686_v29 = vmul.f32 0.01, %v578_v43  ;;  %v5211_v5 = vld [vmem:[%s6258_s1 + $0x60] sm:$0xff]  }
  0x90   : > { %4759 = vmatmul.mubr.msk.bf16.gmra.mrb[16].mxu0 %vm1260_vm0, %v5882_v15  ;;  %v687_v61 = vmul.f32 0.01, %v579_v10  ;;  %vm633_vm4 = vcmp.ge.f32.partialorder %v579_v10, 0.0  ;;  %vm632_vm5 = vcmp.ge.f32.partialorder %v578_v43, 0.0  ;;  %v5945_v12 = vsel %vm1719_vm13, %v1765_v6, %v1766_v33  ;;  %v5218_v6 = vld [vmem:[%s6258_s1 + $0x108] sm:$0xff]  }
  0x91   : > { %4762 = vmatprep.mubr.msk.bf16.mxu0 %vm1260_vm0, %v5885_v18  ;;  %v739_v25 = vsel %vm631_vm3, %v577_v1, %v685_v21  ;;  %v740_v9 = vsel %vm632_vm5, %v578_v43, %v686_v29  ;;  %v5212_v29 = vld [vmem:[%s6258_s1 + $0xf0] sm:$0xff]  }
  0x92   : > { %v741_v28 = vsel %vm633_vm4, %v579_v10, %v687_v61  ;;  %v984_v1 = vsel %vm822_vm1, 0.0, %v739_v25  ;;  %v5210_v61 = vld [vmem:[%s6258_s1 + $0xe8] sm:$0xff]   ;;  %v6011_v25 = vrot.slane %v5252_v47, 1 }
  0x93   : > { %v986_v10 = vsel %vm881_vm2, 0.0, %v741_v28  ;;  %v5940_v40 = vpack.c.bf16 %v740_v9, %v984_v1  ;;  %v5213_v28 = vld [vmem:[%s6258_s1 + $0x68] sm:$0xff]   ;;  %v5226_v9 = vld [vmem:[%s6258_s1 + $0x98] sm:$0xff]  }
  0x94   : > { %v5942_v8 = vpack.c.bf16 %v986_v10, %v986_v10 }
  0x95   : > { %4583 = vmatmul.mubr.msk.bf16.vlgmr.msra.gmra.mrb[0].mxu1 %vm1260_vm0, %v5404_v55  ;;  %v2513_v45 = vrot.slane %v5940_v40, 1 }
  0x96   : > { %4615 = vmatpush3.bf16.msra.mxu1 %v5507_v34  ;;  %4586 = vmatprep.mubr.msk.bf16.mxu1 %vm1260_vm0, %v5419_v14  ;;  %v1762_v34 = vrot.slane %v5823_v17, 1  ;;  %v2514_v43 = vrot.slane %v5942_v8, 1 }
  0x97   : > { %4616 = vmatprep.subr.bf16.mxu1 %v5205_v23 }
  0x98   : > { %4763 = vmatmul.mubr.msk.bf16.gmra.mrb[20].mxu0 %vm1260_vm0, %v5910_v0  ;;  %v5938_v4 = vsel %vm1719_vm13, %v1762_v34, %v1763_v46  ;;  %v5961_v21 = vsel %vm1719_vm13, %v2513_v45, %v2514_v43  ;;  %v5215_v34 = vld [vmem:[%s6258_s1 + $0x70] sm:$0xff]   ;;  %v5223_v46 = vld [vmem:[%s6258_s1 + $0x80] sm:$0xff]  }
  0x99   : > { %4766 = vmatprep.mubr.msk.bf16.mxu0 %vm1260_vm0, %v5913_v13 }
  0x9a   : > { %4617 = vmatpush3.bf16.msra.mxu1 %v5205_v23  ;;  %v5209_v23 = vld [vmem:[%s6258_s1 + $0x58] sm:$0xff]  }
  0x9b   : > { %4618 = vmatprep.subr.bf16.mxu1 %v5207_v32 }
  0x9d   : > { %4587 = vmatmul.mubr.msk.bf16.gmra.mrb[4].mxu1 %vm1260_vm0, %v5442_v42 }
  0x9e   : > { %4590 = vmatprep.mubr.msk.bf16.mxu1 %vm1260_vm0, %v5485_v22  ;;  %4619 = vmatpush3.bf16.msra.mxu1 %v5207_v32  ;;  %v5216_v32 = vld [vmem:[%s6258_s1 + $0x100] sm:$0xff]  }
  0x9f   : > { %4620 = vmatprep.subr.bf16.mxu1 %v5209_v23 }
  0xa0   : > { %4767 = vmatmul.mubr.msk.bf16.gmra.mrb[24].mxu0 %vm1260_vm0, %v5938_v4 }
  0xa1   : > { %4770 = vmatprep.mubr.msk.bf16.mxu0 %vm1260_vm0, %v5945_v12 }
  0xa2   : > { %4621 = vmatpush3.bf16.msra.mxu1 %v5209_v23 }
  0xa3   : > { %4654 = vmatprep.subr.bf16.mxu1 %v5211_v5 }
  0xa5   : > { %4591 = vmatmul.mubr.msk.bf16.gmra.mrb[8].mxu1 %vm1260_vm0, %v5523_v54 }
  0xa6   : > { %4594 = vmatprep.mubr.msk.bf16.mxu1 %vm1260_vm0, %v5549_v30 }
  0xa8   : > { %4771 = vmatmul.mubr.msk.bf16.gmra.mrb[28].mxu0 %vm1260_vm0, %v5961_v21 }
  0xa9   : > { %4782 = vmatprep.mubr.msk.bf16.mxu0 %vm1260_vm0, %v5419_v14 }
  0xad   : > { %4595 = vmatmul.mubr.msk.bf16.gmra.mrb[12].mxu1 %vm1260_vm0, %v5574_v3 }
  0xae   : > { %4598 = vmatprep.mubr.msk.bf16.mxu1 %vm1260_vm0, %v5606_v53 }
  0xb0   : > { %4783 = vmatmul.mubr.msk.bf16.vlgmr.msra.gmra.mrb[0].mxu0 %vm1260_vm0, %v5442_v42 }
  0xb1   : > { %4815 = vmatpush3.bf16.msra.mxu0 %v5740_v20  ;;  %4786 = vmatprep.mubr.msk.bf16.mxu0 %vm1260_vm0, %v5485_v22  ;;  %v5214_v20 = vld [vmem:[%s6258_s1 + $0xf8] sm:$0xff]  }
  0xb2   : > { %4816 = vmatprep.subr.bf16.mxu0 %v5210_v61 }
  0xb5   : > { %4599 = vmatmul.mubr.msk.bf16.gmra.mrb[16].mxu1 %vm1260_vm0, %v5634_v38  ;;  %4817 = vmatpush3.bf16.msra.mxu0 %v5210_v61 }
  0xb6   : > { %4602 = vmatprep.mubr.msk.bf16.mxu1 %vm1260_vm0, %v5682_v48  ;;  %4818 = vmatprep.subr.bf16.mxu0 %v5212_v29 }
  0xb8   : > { %4787 = vmatmul.mubr.msk.bf16.gmra.mrb[4].mxu0 %vm1260_vm0, %v5523_v54 }
  0xb9   : > { %4790 = vmatprep.mubr.msk.bf16.mxu0 %vm1260_vm0, %v5549_v30  ;;  %4819 = vmatpush3.bf16.msra.mxu0 %v5212_v29 }
  0xba   : > { %4820 = vmatprep.subr.bf16.mxu0 %v5214_v20 }
  0xbd   : > { %4603 = vmatmul.mubr.msk.bf16.gmra.mrb[20].mxu1 %vm1260_vm0, %v5702_v24  ;;  %4821 = vmatpush3.bf16.msra.mxu0 %v5214_v20 }
  0xbe   : > { %4606 = vmatprep.mubr.msk.bf16.mxu1 %vm1260_vm0, %v5756_v59  ;;  %4854 = vmatprep.subr.bf16.mxu0 %v5216_v32 }
  0xc0   : > { %4791 = vmatmul.mubr.msk.bf16.gmra.mrb[8].mxu0 %vm1260_vm0, %v5574_v3 }
  0xc1   : > { %4794 = vmatprep.mubr.msk.bf16.mxu0 %vm1260_vm0, %v5606_v53 }
  0xc5   : > { %4607 = vmatmul.mubr.msk.bf16.gmra.mrb[24].mxu1 %vm1260_vm0, %v5772_v35 }
  0xc6   : > { %4610 = vmatprep.mubr.msk.bf16.mxu1 %vm1260_vm0, %v5823_v17 }
  0xc8   : > { %4795 = vmatmul.mubr.msk.bf16.gmra.mrb[12].mxu0 %vm1260_vm0, %v5634_v38 }
  0xc9   : > { %4798 = vmatprep.mubr.msk.bf16.mxu0 %vm1260_vm0, %v5682_v48 }
  0xcd   : > { %4611 = vmatmul.mubr.msk.bf16.gmra.mrb[28].mxu1 %vm1260_vm0, %v5837_v41 }
  0xce   : > { %4622 = vmatprep.mubr.msk.bf16.mxu1 %vm1260_vm0, %v6011_v25 }
  0xd0   : > { %4799 = vmatmul.mubr.msk.bf16.gmra.mrb[16].mxu0 %vm1260_vm0, %v5702_v24 }
  0xd1   : > { %4802 = vmatprep.mubr.msk.bf16.mxu0 %vm1260_vm0, %v5756_v59 }
  0xd5   : > { %4623 = vmatmul.mubr.msk.bf16.vlgmr.msra.gmra.mrb[0].mxu1 %vm1260_vm0, %v5625_v26  ;;  %v5217_v26 = vld [vmem:[%s6258_s1 + $0x78] sm:$0xff]  }
  0xd6   : > { %4655 = vmatpush3.bf16.msra.mxu1 %v5211_v5  ;;  %4626 = vmatprep.mubr.msk.bf16.mxu1 %vm1260_vm0, %v5639_v39 }
  0xd7   : > { %4656 = vmatprep.subr.bf16.mxu1 %v5213_v28 }
  0xd8   : > { %4803 = vmatmul.mubr.msk.bf16.gmra.mrb[20].mxu0 %vm1260_vm0, %v5772_v35 }
  0xd9   : > { %4806 = vmatprep.mubr.msk.bf16.mxu0 %vm1260_vm0, %v5823_v17 }
  0xda   : > { %4657 = vmatpush3.bf16.msra.mxu1 %v5213_v28 }
  0xdb   : > { %4658 = vmatprep.subr.bf16.mxu1 %v5215_v34 }
  0xdd   : > { %4627 = vmatmul.mubr.msk.bf16.gmra.mrb[4].mxu1 %vm1260_vm0, %v5705_v27 }
  0xde   : > { %4630 = vmatprep.mubr.msk.bf16.mxu1 %vm1260_vm0, %v5724_v31  ;;  %4659 = vmatpush3.bf16.msra.mxu1 %v5215_v34 }
  0xdf   : > { %4660 = vmatprep.subr.bf16.mxu1 %v5217_v26 }
  0xe0   : > { %4807 = vmatmul.mubr.msk.bf16.gmra.mrb[24].mxu0 %vm1260_vm0, %v5837_v41 }
  0xe1   : > { %4810 = vmatprep.mubr.msk.bf16.mxu0 %vm1260_vm0, %v5940_v40 }
  0xe2   : > { %4661 = vmatpush3.bf16.msra.mxu1 %v5217_v26 }
  0xe3   : > { %4894 = vmatprep.subr.bf16.mxu1 %v5223_v46 }
  0xe5   : > { %4631 = vmatmul.mubr.msk.bf16.gmra.mrb[8].mxu1 %vm1260_vm0, %v5775_v37 }
  0xe6   : > { %4634 = vmatprep.mubr.msk.bf16.mxu1 %vm1260_vm0, %v5787_v52 }
  0xe8   : > { %4811 = vmatmul.mubr.bf16.gmra.mrb[28].mxu0 %v5252_v47 }
  0xe9   : > { %4822 = vmatprep.mubr.msk.bf16.mxu0 %vm1260_vm0, %v5457_v50  ;;  %v5219_v50 = vld [vmem:[%s6258_s1 + $0x110] sm:$0xff]  }
  0xed   : > { %4635 = vmatmul.mubr.msk.bf16.gmra.mrb[12].mxu1 %vm1260_vm0, %v5848_v2 }
  0xee   : > { %4638 = vmatprep.mubr.msk.bf16.mxu1 %vm1260_vm0, %v5851_v57 }
  0xf0   : > { %4823 = vmatmul.mubr.msk.bf16.vlgmr.msra.gmra.mrb[0].mxu0 %vm1260_vm0, %v5483_v19  ;;  %v5220_v19 = vld [vmem:[%s6258_s1 + $0x118] sm:$0xff]  }
  0xf1   : > { %4855 = vmatpush3.bf16.msra.mxu0 %v5216_v32  ;;  %4826 = vmatprep.mubr.msk.bf16.mxu0 %vm1260_vm0, %v5530_v60  ;;  %v2273_v60 = vshll.u32 %v5940_v40, 16 }
  0xf2   : > { %4856 = vmatprep.subr.bf16.mxu0 %v5218_v6 }
  0xf5   : > { %4639 = vmatmul.mubr.msk.bf16.gmra.mrb[16].mxu1 %vm1260_vm0, %v5865_v62  ;;  %4857 = vmatpush3.bf16.msra.mxu0 %v5218_v6 }
  0xf6   : > { %4642 = vmatprep.mubr.msk.bf16.mxu1 %vm1260_vm0, %v5882_v15  ;;  %4858 = vmatprep.subr.bf16.mxu0 %v5219_v50 }
  0xf8   : > { %4827 = vmatmul.mubr.msk.bf16.gmra.mrb[4].mxu0 %vm1260_vm0, %v5555_v36  ;;  %v5224_v36 = vld [vmem:[%s6258_s1 + $0x88] sm:$0xff]  }
  0xf9   : > { %4830 = vmatprep.mubr.msk.bf16.mxu0 %vm1260_vm0, %v5580_v7  ;;  %4859 = vmatpush3.bf16.msra.mxu0 %v5219_v50  ;;  %v2275_v7 = vrot.slane %v2273_v60, 1 }
  0xfa   : > { %4860 = vmatprep.subr.bf16.mxu0 %v5220_v19 }
  0xfd   : > { %4643 = vmatmul.mubr.msk.bf16.gmra.mrb[20].mxu1 %vm1260_vm0, %v5885_v18  ;;  %4861 = vmatpush3.bf16.msra.mxu0 %v5220_v19 }
  0xfe   : > { %4646 = vmatprep.mubr.msk.bf16.mxu1 %vm1260_vm0, %v5910_v0 }
 0x100   : > { %4831 = vmatmul.mubr.msk.bf16.gmra.mrb[8].mxu0 %vm1260_vm0, %v5602_v51  ;;  %v2278_v51 = vshll.u32 %v5942_v8, 16 }
 0x101   : > { %4834 = vmatprep.mubr.msk.bf16.mxu0 %vm1260_vm0, %v5642_v44  ;;  %v6269_v44 = vld [vmem:[#allocation3_spill] sm:$0xff] }
 0x102   : > { %v2280_v47 = vrot.slane %v2278_v51, 1 }
 0x105   : > { %4647 = vmatmul.mubr.msk.bf16.gmra.mrb[24].mxu1 %vm1260_vm0, %v5913_v13 }
 0x106   : > { %4650 = vmatprep.mubr.msk.bf16.mxu1 %vm1260_vm0, %v5938_v4 }
 0x108   : > { %4835 = vmatmul.mubr.msk.bf16.gmra.mrb[12].mxu0 %vm1260_vm0, %v5666_v56 }
 0x109   : > { %4838 = vmatprep.mubr.msk.bf16.mxu0 %vm1260_vm0, %v5720_v49 }
 0x10d   : > { %4651 = vmatmul.mubr.msk.bf16.gmra.mrb[28].mxu1 %vm1260_vm0, %v5945_v12 }
 0x10e   : > { %4662 = vmatprep.mubr.msk.bf16.mxu1 %vm1260_vm0, %v5404_v55  ;;  %v2271_v55 = vshrl.u32 %v5940_v40, 16 }
 0x110   : > { %4839 = vmatmul.mubr.msk.bf16.gmra.mrb[16].mxu0 %vm1260_vm0, %v5745_v63 }
 0x111   : > { %4842 = vmatprep.mubr.msk.bf16.mxu0 %vm1260_vm0, %v5791_v16 }
 0x115   : > { %4663 = vmatmul.mubr.msk.bf16.vlgmr.msra.gmra.mrb[0].mxu1 %vm1260_vm0, %v5419_v14  ;;  %v2276_v14 = vor.u32 %v2275_v7, %v2271_v55 }
 0x116   : > { %4898 = vmatpush3.bf16.msra.mxu1 %v5223_v46  ;;  %4666 = vmatprep.mubr.msk.bf16.mxu1 %vm1260_vm0, %v5442_v42  ;;  %v5225_v42 = vld [vmem:[%s6258_s1 + $0x90] sm:$0xff]  }
 0x117   : > { %4895 = vmatprep.subr.bf16.mxu1 %v5224_v36  ;;  %v2281_v33 = vsel %vm1034_vm6, %v2276_v14, %v2280_v47 }
 0x118   : > { %4843 = vmatmul.mubr.msk.bf16.gmra.mrb[20].mxu0 %vm1260_vm0, %v6269_v44 }
 0x119   : > { %4846 = vmatprep.mubr.msk.bf16.mxu0 %vm1260_vm0, %v5855_v58 }
 0x11a   : > { %4899 = vmatpush3.bf16.msra.mxu1 %v5224_v36 }
 0x11b   : > { %4896 = vmatprep.subr.bf16.mxu1 %v5225_v42 }
 0x11d   : > { %4667 = vmatmul.mubr.msk.bf16.gmra.mrb[4].mxu1 %vm1260_vm0, %v5485_v22  ;;  %v6270_v22 = vld [vmem:[#allocation2_spill] sm:$0xff] }
 0x11e   : > { %4670 = vmatprep.mubr.msk.bf16.mxu1 %vm1260_vm0, %v5523_v54  ;;  %4900 = vmatpush3.bf16.msra.mxu1 %v5225_v42 }
 0x11f   : > { %4897 = vmatprep.subr.bf16.mxu1 %v5226_v9 }
 0x120   : > { %4847 = vmatmul.mubr.msk.bf16.gmra.mrb[24].mxu0 %vm1260_vm0, %v5876_v11 }
 0x121   : > { %4850 = vmatprep.mubr.msk.bf16.mxu0 %vm1260_vm0, %v2281_v33 }
 0x122   : > { %4901 = vmatpush3.bf16.msra.mxu1 %v5226_v9 }
 0x125   : > { %4671 = vmatmul.mubr.msk.bf16.gmra.mrb[8].mxu1 %vm1260_vm0, %v5549_v30 }
 0x126   : > { %4674 = vmatprep.mubr.msk.bf16.mxu1 %vm1260_vm0, %v5574_v3 }
 0x128   : > { %4851 = vmatmul.mubr.msk.bf16.gmra.mrb[28].mxu0 %vm1260_vm0, %v6270_v22 }
 0x129   : > { %4862 = vmatprep.mubr.msk.bf16.mxu0 %vm1260_vm0, %v5639_v39 }
 0x12d   : > { %4675 = vmatmul.mubr.msk.bf16.gmra.mrb[12].mxu1 %vm1260_vm0, %v5606_v53 }
 0x12e   : > { %4678 = vmatprep.mubr.msk.bf16.mxu1 %vm1260_vm0, %v5634_v38 }
 0x130   : > { %4863 = vmatmul.mubr.msk.bf16.vlgmr.msra.gmra.mrb[0].mxu0 %vm1260_vm0, %v5705_v27 }
 0x131   : > { %4866 = vmatprep.mubr.msk.bf16.mxu0 %vm1260_vm0, %v5724_v31 }
 0x135   : > { %4679 = vmatmul.mubr.msk.bf16.gmra.mrb[16].mxu1 %vm1260_vm0, %v5682_v48 }
 0x136   : > { %4682 = vmatprep.mubr.msk.bf16.mxu1 %vm1260_vm0, %v5702_v24 }
 0x138   : > { %4867 = vmatmul.mubr.msk.bf16.gmra.mrb[4].mxu0 %vm1260_vm0, %v5775_v37 }
 0x139   : > { %4870 = vmatprep.mubr.msk.bf16.mxu0 %vm1260_vm0, %v5787_v52 }
 0x13d   : > { %4683 = vmatmul.mubr.msk.bf16.gmra.mrb[20].mxu1 %vm1260_vm0, %v5756_v59 }
 0x13e   : > { %4686 = vmatprep.mubr.msk.bf16.mxu1 %vm1260_vm0, %v5772_v35 }
 0x140   : > { %4871 = vmatmul.mubr.msk.bf16.gmra.mrb[8].mxu0 %vm1260_vm0, %v5848_v2 }
 0x141   : > { %4874 = vmatprep.mubr.msk.bf16.mxu0 %vm1260_vm0, %v5851_v57 }
 0x145   : > { %4687 = vmatmul.mubr.msk.bf16.gmra.mrb[24].mxu1 %vm1260_vm0, %v5823_v17 }
 0x146   : > { %4690 = vmatprep.mubr.msk.bf16.mxu1 %vm1260_vm0, %v5837_v41 }
 0x148   : > { %4875 = vmatmul.mubr.msk.bf16.gmra.mrb[12].mxu0 %vm1260_vm0, %v5865_v62 }
 0x149   : > { %4878 = vmatprep.mubr.msk.bf16.mxu0 %vm1260_vm0, %v5882_v15 }
 0x14d   : > { %4691 = vmatmul.mubr.msk.bf16.gmra.mrb[28].mxu1 %vm1260_vm0, %v5940_v40 }
 0x14e   : > { %4718 = vmatprep.mubr.msk.bf16.mxu1 %vm1260_vm0, %v5666_v56 }
 0x150   : > { %4879 = vmatmul.mubr.msk.bf16.gmra.mrb[16].mxu0 %vm1260_vm0, %v5885_v18 }
 0x151   : > { %4882 = vmatprep.mubr.msk.bf16.mxu0 %vm1260_vm0, %v5910_v0 }
 0x155   : > { %4719 = vmatmul.mubr.msk.bf16.vlgmr.msra.gmra.mrb[16].mxu1 %vm1260_vm0, %v5720_v49 }
 0x156   : > { %4722 = vmatprep.mubr.msk.bf16.mxu1 %vm1260_vm0, %v5745_v63 }
 0x158   : > { %4883 = vmatmul.mubr.msk.bf16.gmra.mrb[20].mxu0 %vm1260_vm0, %v5913_v13 }
 0x159   : > { %4886 = vmatprep.mubr.msk.bf16.mxu0 %vm1260_vm0, %v5938_v4 }
 0x15d   : > { %4723 = vmatmul.mubr.msk.bf16.gmra.mrb[20].mxu1 %vm1260_vm0, %v5791_v16 }
 0x15e   : > { %4726 = vmatprep.mubr.msk.bf16.mxu1 %vm1260_vm0, %v6269_v44 }
 0x160   : > { %4887 = vmatmul.mubr.msk.bf16.gmra.mrb[24].mxu0 %vm1260_vm0, %v5945_v12 }
 0x161   : > { %4890 = vmatprep.mubr.msk.bf16.mxu0 %vm1260_vm0, %v5961_v21 }
 0x165   : > { %4727 = vmatmul.mubr.msk.bf16.gmra.mrb[24].mxu1 %vm1260_vm0, %v5855_v58 }
 0x166   : > { %4730 = vmatprep.mubr.msk.bf16.mxu1 %vm1260_vm0, %v5876_v11 }
 0x168   : > { %4891 = vmatmul.mubr.msk.bf16.gmra.mrb[28].mxu0 %vm1260_vm0, %v6011_v25 }
 0x16d   : > { %4731 = vmatmul.mubr.msk.bf16.gmra.mrb[28].mxu1 %vm1260_vm0, %v2281_v33 }
 0x1e8   : > { %v4664_v54 = vpop.f32.mrb[0].mxu1 }
 0x1e9   : > { %v2112_v30 = vpop.f32.mrb[1].mxu1 }
 0x1ea   : > { %v4665_v3 = vpop.f32.mrb[2].mxu1 }
 0x1eb   : > { %v2115_v53 = vpop.f32.mrb[3].mxu1 }
 0x1f0   : > { %v4668_v38 = vpop.f32.mrb[4].mxu1 }
 0x1f1   : > { %v2128_v39 = vpop.f32.mrb[5].mxu1 }
 0x1f2   : > { %v4669_v56 = vpop.f32.mrb[6].mxu1 }
 0x1f3   : > { %v2131_v48 = vpop.f32.mrb[7].mxu1 }
 0x1f8   : > { %v4672_v24 = vpop.f32.mrb[8].mxu1 }
 0x1f9   : > { %v2144_v27 = vpop.f32.mrb[9].mxu1 }
 0x1fa   : > { %v4673_v49 = vpop.f32.mrb[10].mxu1 }
 0x1fb   : > { %v2147_v31 = vpop.f32.mrb[11].mxu1 }
 0x200   : > { %v6206_v63 = vpop.f32.mrb[12].mxu1 }
 0x201   : > { %v6208_v59 = vpop.f32.mrb[13].mxu1 }
 0x202   : > { %v6210_v35 = vpop.f32.mrb[14].mxu1 }
 0x203   : > { %v6212_v37 = vpop.f32.mrb[15].mxu1  ;;  %v4864_v52 = vpop.f32.mrb[0].mxu0 }
 0x204   : > { %v4902_v16 = vadd.f32 %v4864_v52, %v4664_v54  ;;  %v3289_v17 = vpop.f32.mrb[1].mxu0 }
 0x205   : > { %v4903_v41 = vadd.f32 %v3289_v17, %v2112_v30  ;;  %v4865_v2 = vpop.f32.mrb[2].mxu0 }
 0x206   : > { %v4904_v57 = vadd.f32 %v4865_v2, %v4665_v3  ;;  %v3292_v58 = vpop.f32.mrb[3].mxu0  ;;  %v3648_v1 = vmul.f32 %v4902_v16, %v4902_v16 }
 0x207   : > { %v4905_v62 = vadd.f32 %v3292_v58, %v2115_v53  ;;  %v3646_v15 = vmul.f32 %v4903_v41, %v4903_v41 }
 0x208   : > { %v4259_v11 = vpack.c.bf16 %v4904_v57, %v4902_v16  ;;  %v3649_v12 = vmul.f32 %v4904_v57, %v4904_v57 }
 0x209   : > { %v4254_v18 = vpack.c.bf16 %v4905_v62, %v4903_v41  ;;  %v3608_v0 = vadd.f32 %v4905_v62, %v4903_v41  ;;  %v3647_v13 = vmul.f32 %v4905_v62, %v4905_v62 }
 0x20a   : > { %4339 = vst [vmem:[%s6218_s18 + $0x8] sm:$0xff] %v4259_v11  }
 0x20b   : > { %4255 = vst [vmem:[%s6218_s18] sm:$0xff] %v4254_v18   ;;  %v3609_v10 = vadd.f32 %v4902_v16, %v3608_v0  ;;  %v3678_v23 = vadd.f32 %v3647_v13, %v3646_v15  ;;  %v4868_v4 = vpop.f32.mrb[4].mxu0 }
 0x20c   : > { %v4906_v40 = vadd.f32 %v4868_v4, %v4668_v38  ;;  %v3305_v8 = vpop.f32.mrb[5].mxu0 }
 0x20d   : > { %v3679_v5 = vadd.f32 %v3678_v23, %v3648_v1  ;;  %v4907_v45 = vadd.f32 %v3305_v8, %v2128_v39  ;;  %v3610_v43 = vadd.f32 %v4904_v57, %v3609_v10  ;;  %v4869_v21 = vpop.f32.mrb[6].mxu0 }
 0x20e   : > { %v4908_v61 = vadd.f32 %v4869_v21, %v4669_v56  ;;  %v3308_v29 = vpop.f32.mrb[7].mxu0  ;;  %v3652_v19 = vmul.f32 %v4906_v40, %v4906_v40 }
 0x20f   : > { %v3611_v20 = vadd.f32 %v4907_v45, %v3610_v43  ;;  %v3650_v32 = vmul.f32 %v4907_v45, %v4907_v45  ;;  %v3680_v25 = vadd.f32 %v3679_v5, %v3649_v12  ;;  %v4909_v28 = vadd.f32 %v3308_v29, %v2131_v48 }
 0x210   : > { %v4269_v34 = vpack.c.bf16 %v4908_v61, %v4906_v40  ;;  %v3653_v44 = vmul.f32 %v4908_v61, %v4908_v61 }
 0x211   : > { %v3681_v26 = vadd.f32 %v3680_v25, %v3650_v32  ;;  %v4264_v46 = vpack.c.bf16 %v4909_v28, %v4907_v45  ;;  %v3612_v6 = vadd.f32 %v4909_v28, %v3611_v20  ;;  %v3651_v50 = vmul.f32 %v4909_v28, %v4909_v28 }
 0x212   : > { %4341 = vst [vmem:[%s6218_s18 + $0x18] sm:$0xff] %v4269_v34  }
 0x213   : > { %4340 = vst [vmem:[%s6218_s18 + $0x10] sm:$0xff] %v4264_v46   ;;  %v3613_v60 = vadd.f32 %v4906_v40, %v3612_v6  ;;  %v3682_v36 = vadd.f32 %v3681_v26, %v3651_v50  ;;  %v4872_v55 = vpop.f32.mrb[8].mxu0 }
 0x214   : > { %v4910_v7 = vadd.f32 %v4872_v55, %v4672_v24  ;;  %v3321_v51 = vpop.f32.mrb[9].mxu0 }
 0x215   : > { %v3683_v14 = vadd.f32 %v3682_v36, %v3652_v19  ;;  %v4911_v47 = vadd.f32 %v3321_v51, %v2144_v27  ;;  %v3614_v42 = vadd.f32 %v4908_v61, %v3613_v60  ;;  %v4873_v33 = vpop.f32.mrb[10].mxu0 }
 0x216   : > { %v4912_v9 = vadd.f32 %v4873_v33, %v4673_v49  ;;  %v3324_v22 = vpop.f32.mrb[11].mxu0  ;;  %v3656_v24 = vmul.f32 %v4910_v7, %v4910_v7 }
 0x217   : > { %v3615_v54 = vadd.f32 %v4911_v47, %v3614_v42  ;;  %v3654_v30 = vmul.f32 %v4911_v47, %v4911_v47  ;;  %v3684_v3 = vadd.f32 %v3683_v14, %v3653_v44  ;;  %v4913_v53 = vadd.f32 %v3324_v22, %v2147_v31 }
 0x218   : > { %v4279_v38 = vpack.c.bf16 %v4912_v9, %v4910_v7  ;;  %v3657_v49 = vmul.f32 %v4912_v9, %v4912_v9 }
 0x219   : > { %v3685_v39 = vadd.f32 %v3684_v3, %v3654_v30  ;;  %v4274_v56 = vpack.c.bf16 %v4913_v53, %v4911_v47  ;;  %v3616_v48 = vadd.f32 %v4913_v53, %v3615_v54  ;;  %v3655_v52 = vmul.f32 %v4913_v53, %v4913_v53 }
 0x21a   : > { %4343 = vst [vmem:[%s6218_s18 + $0x28] sm:$0xff] %v4279_v38  }
 0x21b   : > { %4342 = vst [vmem:[%s6218_s18 + $0x20] sm:$0xff] %v4274_v56   ;;  %v3617_v16 = vadd.f32 %v4910_v7, %v3616_v48  ;;  %v3686_v17 = vadd.f32 %v3685_v39, %v3655_v52  ;;  %v4876_v27 = vpop.f32.mrb[12].mxu0 }
 0x21c   : > { %v4914_v41 = vadd.f32 %v4876_v27, %v6206_v63  ;;  %v3337_v2 = vpop.f32.mrb[13].mxu0 }
 0x21d   : > { %v3687_v57 = vadd.f32 %v3686_v17, %v3656_v24  ;;  %v4915_v58 = vadd.f32 %v3337_v2, %v6208_v59  ;;  %v3618_v31 = vadd.f32 %v4912_v9, %v3617_v16  ;;  %v4877_v62 = vpop.f32.mrb[14].mxu0 }
 0x21e   : > { %v4916_v11 = vadd.f32 %v4877_v62, %v6210_v35  ;;  %v3340_v15 = vpop.f32.mrb[15].mxu0  ;;  %v3660_v8 = vmul.f32 %v4914_v41, %v4914_v41 }
 0x21f   : > { %v3619_v18 = vadd.f32 %v4915_v58, %v3618_v31  ;;  %v3658_v0 = vmul.f32 %v4915_v58, %v4915_v58  ;;  %v3688_v13 = vadd.f32 %v3687_v57, %v3657_v49  ;;  %v4917_v1 = vadd.f32 %v3340_v15, %v6212_v37 }
 0x220   : > { %v4289_v10 = vpack.c.bf16 %v4916_v11, %v4914_v41  ;;  %v3661_v43 = vmul.f32 %v4916_v11, %v4916_v11 }
 0x221   : > { %v3689_v23 = vadd.f32 %v3688_v13, %v3658_v0  ;;  %v4284_v63 = vpack.c.bf16 %v4917_v1, %v4915_v58  ;;  %v3620_v4 = vadd.f32 %v4917_v1, %v3619_v18  ;;  %v3659_v40 = vmul.f32 %v4917_v1, %v4917_v1 }
 0x222   : > { %4345 = vst [vmem:[%s6218_s18 + $0x38] sm:$0xff] %v4289_v10  }
 0x223   : > { %4344 = vst [vmem:[%s6218_s18 + $0x30] sm:$0xff] %v4284_v63   ;;  %v3621_v59 = vadd.f32 %v4914_v41, %v3620_v4  ;;  %v3690_v12 = vadd.f32 %v3689_v23, %v3659_v40  ;;  %v4880_v5 = vpop.f32.mrb[16].mxu0 }
 0x224   : > { %v3353_v45 = vpop.f32.mrb[17].mxu0 }
 0x225   : > { %v3691_v35 = vadd.f32 %v3690_v12, %v3660_v8  ;;  %v3622_v21 = vadd.f32 %v4916_v11, %v3621_v59  ;;  %v4881_v61 = vpop.f32.mrb[18].mxu0 }
 0x226   : > { %v3356_v29 = vpop.f32.mrb[19].mxu0 }
 0x227   : > { %v3692_v32 = vadd.f32 %v3691_v35, %v3661_v43 }
 0x228   : > { %v4720_v20 = vpop.f32.mrb[16].mxu1 }
 0x229   : > { %v2416_v37 = vpop.f32.mrb[17].mxu1  ;;  %v4918_v25 = vadd.f32 %v4880_v5, %v4720_v20 }
 0x22a   : > { %v4721_v28 = vpop.f32.mrb[18].mxu1  ;;  %v4919_v34 = vadd.f32 %v3353_v45, %v2416_v37 }
 0x22b   : > { %v2419_v26 = vpop.f32.mrb[19].mxu1  ;;  %v4920_v46 = vadd.f32 %v4881_v61, %v4721_v28  ;;  %v4884_v60 = vpop.f32.mrb[20].mxu0  ;;  %v3664_v33 = vmul.f32 %v4918_v25, %v4918_v25 }
 0x22c   : > { %v3623_v6 = vadd.f32 %v4919_v34, %v3622_v21  ;;  %v3662_v50 = vmul.f32 %v4919_v34, %v4919_v34  ;;  %v4921_v19 = vadd.f32 %v3356_v29, %v2419_v26  ;;  %v3369_v55 = vpop.f32.mrb[21].mxu0 }
 0x22d   : > { %v4299_v36 = vpack.c.bf16 %v4920_v46, %v4918_v25  ;;  %v4885_v47 = vpop.f32.mrb[22].mxu0  ;;  %v3665_v53 = vmul.f32 %v4920_v46, %v4920_v46 }
 0x22e   : > { %v3693_v7 = vadd.f32 %v3692_v32, %v3662_v50  ;;  %v4294_v51 = vpack.c.bf16 %v4921_v19, %v4919_v34  ;;  %v3624_v44 = vadd.f32 %v4921_v19, %v3623_v6  ;;  %v3663_v14 = vmul.f32 %v4921_v19, %v4921_v19  ;;  %v3372_v42 = vpop.f32.mrb[23].mxu0 }
 0x22f   : > { %4347 = vst [vmem:[%s6218_s18 + $0x48] sm:$0xff] %v4299_v36  }
 0x230   : > { %4346 = vst [vmem:[%s6218_s18 + $0x40] sm:$0xff] %v4294_v51   ;;  %v3625_v9 = vadd.f32 %v4918_v25, %v3624_v44  ;;  %v3694_v22 = vadd.f32 %v3693_v7, %v3663_v14  ;;  %v4724_v54 = vpop.f32.mrb[20].mxu1 }
 0x231   : > { %v2432_v30 = vpop.f32.mrb[21].mxu1  ;;  %v4922_v3 = vadd.f32 %v4884_v60, %v4724_v54 }
 0x232   : > { %v3695_v38 = vadd.f32 %v3694_v22, %v3664_v33  ;;  %v4725_v39 = vpop.f32.mrb[22].mxu1  ;;  %v4923_v56 = vadd.f32 %v3369_v55, %v2432_v30  ;;  %v3626_v48 = vadd.f32 %v4920_v46, %v3625_v9 }
 0x233   : > { %v2435_v52 = vpop.f32.mrb[23].mxu1  ;;  %v4924_v24 = vadd.f32 %v4885_v47, %v4725_v39  ;;  %v4888_v2 = vpop.f32.mrb[24].mxu0  ;;  %v3668_v0 = vmul.f32 %v4922_v3, %v4922_v3 }
 0x234   : > { %v3627_v16 = vadd.f32 %v4923_v56, %v3626_v48  ;;  %v3666_v17 = vmul.f32 %v4923_v56, %v4923_v56  ;;  %v3696_v27 = vadd.f32 %v3695_v38, %v3665_v53  ;;  %v4925_v41 = vadd.f32 %v3372_v42, %v2435_v52  ;;  %v3385_v57 = vpop.f32.mrb[25].mxu0 }
 0x235   : > { %v4309_v49 = vpack.c.bf16 %v4924_v24, %v4922_v3  ;;  %v4889_v15 = vpop.f32.mrb[26].mxu0  ;;  %v3669_v4 = vmul.f32 %v4924_v24, %v4924_v24 }
 0x236   : > { %v3697_v58 = vadd.f32 %v3696_v27, %v3666_v17  ;;  %v4304_v31 = vpack.c.bf16 %v4925_v41, %v4923_v56  ;;  %v3628_v62 = vadd.f32 %v4925_v41, %v3627_v16  ;;  %v3667_v11 = vmul.f32 %v4925_v41, %v4925_v41  ;;  %v3388_v18 = vpop.f32.mrb[27].mxu0 }
 0x237   : > { %4349 = vst [vmem:[%s6218_s18 + $0x58] sm:$0xff] %v4309_v49  }
 0x238   : > { %4348 = vst [vmem:[%s6218_s18 + $0x50] sm:$0xff] %v4304_v31   ;;  %v3629_v13 = vadd.f32 %v4922_v3, %v3628_v62  ;;  %v3698_v1 = vadd.f32 %v3697_v58, %v3667_v11  ;;  %v4728_v10 = vpop.f32.mrb[24].mxu1 }
 0x239   : > { %v2448_v23 = vpop.f32.mrb[25].mxu1  ;;  %v4926_v63 = vadd.f32 %v4888_v2, %v4728_v10 }
 0x23a   : > { %v3699_v40 = vadd.f32 %v3698_v1, %v3668_v0  ;;  %v4729_v8 = vpop.f32.mrb[26].mxu1  ;;  %v4927_v59 = vadd.f32 %v3385_v57, %v2448_v23  ;;  %v3630_v12 = vadd.f32 %v4924_v24, %v3629_v13 }
 0x23b   : > { %v2451_v5 = vpop.f32.mrb[27].mxu1  ;;  %v4928_v45 = vadd.f32 %v4889_v15, %v4729_v8  ;;  %v4892_v29 = vpop.f32.mrb[28].mxu0  ;;  %v3672_v6 = vmul.f32 %v4926_v63, %v4926_v63 }
 0x23c   : > { %v3631_v43 = vadd.f32 %v4927_v59, %v3630_v12  ;;  %v3670_v35 = vmul.f32 %v4927_v59, %v4927_v59  ;;  %v3700_v21 = vadd.f32 %v3699_v40, %v3669_v4  ;;  %v4929_v61 = vadd.f32 %v3388_v18, %v2451_v5  ;;  %v3401_v32 = vpop.f32.mrb[29].mxu0 }
 0x23d   : > { %v4319_v20 = vpack.c.bf16 %v4928_v45, %v4926_v63  ;;  %v4893_v26 = vpop.f32.mrb[30].mxu0  ;;  %v3673_v7 = vmul.f32 %v4928_v45, %v4928_v45 }
 0x23e   : > { %v3701_v37 = vadd.f32 %v3700_v21, %v3670_v35  ;;  %v4314_v25 = vpack.c.bf16 %v4929_v61, %v4927_v59  ;;  %v3632_v28 = vadd.f32 %v4929_v61, %v3631_v43  ;;  %v3671_v34 = vmul.f32 %v4929_v61, %v4929_v61  ;;  %v3404_v46 = vpop.f32.mrb[31].mxu0 }
 0x23f   : > { %4351 = vst [vmem:[%s6218_s18 + $0x68] sm:$0xff] %v4319_v20  }
 0x240   : > { %4350 = vst [vmem:[%s6218_s18 + $0x60] sm:$0xff] %v4314_v25   ;;  %v3633_v50 = vadd.f32 %v4926_v63, %v3632_v28  ;;  %v3702_v19 = vadd.f32 %v3701_v37, %v3671_v34  ;;  %v4732_v60 = vpop.f32.mrb[28].mxu1 }
 0x241   : > { %v2464_v36 = vpop.f32.mrb[29].mxu1  ;;  %v4930_v55 = vadd.f32 %v4892_v29, %v4732_v60 }
 0x242   : > { %v3703_v51 = vadd.f32 %v3702_v19, %v3672_v6  ;;  %v4733_v44 = vpop.f32.mrb[30].mxu1  ;;  %v4931_v14 = vadd.f32 %v3401_v32, %v2464_v36  ;;  %v3634_v47 = vadd.f32 %v4928_v45, %v3633_v50 }
 0x243   : > { %v2467_v42 = vpop.f32.mrb[31].mxu1  ;;  %v4932_v33 = vadd.f32 %v4893_v26, %v4733_v44  ;;  %v3676_v48 = vmul.f32 %v4930_v55, %v4930_v55 }
 0x244   : > { %v3635_v9 = vadd.f32 %v4931_v14, %v3634_v47  ;;  %v3674_v22 = vmul.f32 %v4931_v14, %v4931_v14  ;;  %v3704_v54 = vadd.f32 %v3703_v51, %v3673_v7  ;;  %v4933_v30 = vadd.f32 %v3404_v46, %v2467_v42 }
 0x245   : > { %v4329_v3 = vpack.c.bf16 %v4932_v33, %v4930_v55  ;;  %v3677_v16 = vmul.f32 %v4932_v33, %v4932_v33 }
 0x246   : > { %v3705_v53 = vadd.f32 %v3704_v54, %v3674_v22  ;;  %v4324_v38 = vpack.c.bf16 %v4933_v30, %v4931_v14  ;;  %v3636_v39 = vadd.f32 %v4933_v30, %v3635_v9  ;;  %v3675_v56 = vmul.f32 %v4933_v30, %v4933_v30 }
 0x247   : > { %4353 = vst [vmem:[%s6218_s18 + $0x78] sm:$0xff] %v4329_v3  }
 0x248   : > { %4352 = vst [vmem:[%s6218_s18 + $0x70] sm:$0xff] %v4324_v38   ;;  %v3637_v52 = vadd.f32 %v4930_v55, %v3636_v39  ;;  %v3706_v24 = vadd.f32 %v3705_v53, %v3675_v56 }
 0x24a   : > { %v3638_v17 = vadd.f32 %v4932_v33, %v3637_v52  ;;  %v3707_v27 = vadd.f32 %v3706_v24, %v3676_v48 }
 0x24c   : > { %v3639_v41 = vrot.slane %v3638_v17, 4  ;;  %v3708_v2 = vadd.f32 %v3707_v27, %v3677_v16 }
 0x24e   : > { %v3640_v49 = vadd.f32 %v3639_v41, %v3638_v17  ;;  %v3709_v57 = vrot.slane %v3708_v2, 4 }
 0x250   : > { %v3641_v58 = vrot.slane %v3640_v49, 2  ;;  %v3710_v31 = vadd.f32 %v3709_v57, %v3708_v2 }
 0x252   : > { %v3642_v62 = vadd.f32 %v3641_v58, %v3640_v49  ;;  %v3711_v11 = vrot.slane %v3710_v31, 2 }
 0x254   : > { %v3643_v15 = vrot.slane %v3642_v62, 1  ;;  %v3712_v18 = vadd.f32 %v3711_v11, %v3710_v31 }
 0x256   : > { %v3644_v0 = vadd.f32 %v3643_v15, %v3642_v62  ;;  %v3713_v13 = vrot.slane %v3712_v18, 1 }
 0x258   : > { %3645 = vst [vmem:[%s345_s30] sm:$0x1] %v3644_v0  ;;  %v3714_v1 = vadd.f32 %v3713_v13, %v3712_v18 }
 0x25a   : > { %3715 = vst [vmem:[%s351_s25] sm:$0x1] %v3714_v1 }
 0x25b PF: > { %s17_s23 = sadd.s32 1, %s5249_s23   ;;  %s6271_s21 = smov %s5245_s22 }
 0x25c   : > { %p14_p5 = scmp.ge.s32.totalorder %s17_s23, 4   ;;  %s6272_s22 = smov %s6274_s24 }
 0x25e   :  { %16 = sbr.rel (!%p14_p5) target bundleno = 2 (0x2), region = 104 }

// kernel: unet_conv_block_3d.5
= control target key start
LH: loop header
LB: loop body
LE: loop exit
PB: predicated region body
PF: predicated region fallthrough
CT: control target
= control target key end

     0   :  { %s775_s12 = smov 0   ;;  %s777_s13 = smov 0   ;;  %s940_s0 = inlined_call_operand.vmem [shape: bf16[2,256,128], index: 0, kind: input, shape index: {}]   ;;  %s941_s1 = inlined_call_operand.vmem [shape: f32[2,1,128], index: 1, kind: input, shape index: {}]   ;;  %s942_s2 = inlined_call_operand.vmem [shape: f32[2,1,128], index: 2, kind: input, shape index: {}]   ;;  %s943_s3 = inlined_call_operand.vmem [shape: f32[2,256,128], index: 3, kind: output, shape index: {}]  }
   0x1   :  { %s779_s14 = smov 0  }
   0x2 LB: > { %s25_s15 = sadd.s32 1, %s749_s13  ;;  %p617_p0 = scmp.ge.s32.totalorder %s753_s14, 1  ;;  %s753_s14 = sphi %s779_s14, %s13_s14   ;;  %s749_s13 = sphi %s777_s13, %s945_s13   ;;  %s745_s12 = sphi %s775_s12, %s944_s12  }
   0x3   : > { %p27_p1 = scmp.ge.s32.totalorder %s25_s15, 2  ;;  %p174_p2 = scmp.lt.s32.totalorder %s753_s14, 3 }
   0x5   : > { %s947_s15 = smov (%p27_p1, %s25_s15), 0  ;;  %p175_p3 = pnand %p617_p0, %p174_p2 }
   0x6   : > { %p213_p4 = scmp.lt.s32.totalorder (!%p175_p3), %s745_s12, 1 }
   0x7   : > { %178 = sbr.rel (%p175_p3) target bundleno = 72 (0x48), region = 32 }
   0xe   : > { %s949_s12 = smov (!%p213_p4, %s745_s12), 1 }
   0xf   : > { %s626_s16 = sshll.u32 %s949_s12, 7  ;;  %s224_s19 = scalar_lea.vmem %s941_s1, %s949_s12 }
  0x10   : > { %s803_s22 = scalar_lea.vmem %s940_s0, %s626_s16  ;;  %s227_s25 = scalar_lea.vmem %s942_s2, %s949_s12  ;;  %v810_v1 = vld [vmem:[%s224_s19] ss:$0 sm:$0xff] }
  0x11   : > { %v629_v0 = vld [vmem:[%s803_s22] sm:$0xff]   ;;  %v692_v2 = vld [vmem:[%s803_s22 + $0x8] sm:$0xff]   ;;  %v693_v7 = vld [vmem:[%s803_s22 + $0x10] sm:$0xff]   ;;  %s627_s26 = sshll.u32 %s949_s12, 8 }
  0x12   : > { %v630_v3 = vunpack.c.l.bf16 %v629_v0  ;;  %v631_v4 = vunpack.c.h.bf16 %v629_v0  ;;  %v634_v5 = vunpack.c.l.bf16 %v692_v2  ;;  %v635_v6 = vunpack.c.h.bf16 %v692_v2  ;;  %v694_v8 = vld [vmem:[%s803_s22 + $0x18] sm:$0xff]   ;;  %v815_v9 = vld [vmem:[%s227_s25] ss:$0 sm:$0xff]  ;;  %s837_s29 = scalar_lea.vmem %s943_s3, %s627_s26  ;;  %v696_v41 = vld [vmem:[%s803_s22 + $0x28] sm:$0xff]  }
  0x13   : > { %v638_v10 = vunpack.c.l.bf16 %v693_v7  ;;  %v639_v11 = vunpack.c.h.bf16 %v693_v7  ;;  %v642_v12 = vunpack.c.l.bf16 %v694_v8  ;;  %v643_v13 = vunpack.c.h.bf16 %v694_v8  ;;  %v695_v37 = vld [vmem:[%s803_s22 + $0x20] sm:$0xff]   ;;  %v697_v42 = vld [vmem:[%s803_s22 + $0x30] sm:$0xff]   ;;  %v698_v49 = vld [vmem:[%s803_s22 + $0x38] sm:$0xff]  }
  0x14   : > { %v309_v14 = vmul.f32 %v630_v3, %v810_v1  ;;  %v310_v15 = vmul.f32 %v631_v4, %v810_v1  ;;  %v311_v16 = vmul.f32 %v634_v5, %v810_v1  ;;  %v312_v17 = vmul.f32 %v635_v6, %v810_v1  ;;  %v699_v7 = vld [vmem:[%s803_s22 + $0x40] sm:$0xff]  }
  0x15   : > { %v313_v18 = vmul.f32 %v638_v10, %v810_v1  ;;  %v314_v19 = vmul.f32 %v639_v11, %v810_v1  ;;  %v315_v20 = vmul.f32 %v642_v12, %v810_v1  ;;  %v316_v21 = vmul.f32 %v643_v13, %v810_v1 }
  0x16   : > { %v348_v22 = vadd.f32 %v815_v9, %v309_v14  ;;  %v349_v23 = vadd.f32 %v815_v9, %v310_v15  ;;  %v350_v24 = vadd.f32 %v815_v9, %v311_v16  ;;  %v351_v25 = vadd.f32 %v815_v9, %v312_v17 }
  0x17   : > { %v352_v26 = vadd.f32 %v815_v9, %v313_v18  ;;  %v353_v27 = vadd.f32 %v815_v9, %v314_v19  ;;  %v354_v28 = vadd.f32 %v815_v9, %v315_v20  ;;  %v355_v29 = vadd.f32 %v815_v9, %v316_v21  ;;  %v700_v20 = vld [vmem:[%s803_s22 + $0x48] sm:$0xff]  }
  0x18   : > { %vm380_vm0 = vcmp.ge.f32.partialorder %v348_v22, 0.0  ;;  %v412_v30 = vmul.f32 0.01, %v348_v22  ;;  %vm381_vm1 = vcmp.ge.f32.partialorder %v349_v23, 0.0  ;;  %v413_v31 = vmul.f32 0.01, %v349_v23 }
  0x19   : > { %vm382_vm2 = vcmp.ge.f32.partialorder %v350_v24, 0.0  ;;  %v414_v32 = vmul.f32 0.01, %v350_v24  ;;  %vm383_vm3 = vcmp.ge.f32.partialorder %v351_v25, 0.0  ;;  %v415_v33 = vmul.f32 0.01, %v351_v25 }
  0x1a   : > { %v444_v34 = vsel %vm380_vm0, %v348_v22, %v412_v30  ;;  %v445_v35 = vsel %vm381_vm1, %v349_v23, %v413_v31  ;;  %vm384_vm4 = vcmp.ge.f32.partialorder %v352_v26, 0.0  ;;  %v416_v36 = vmul.f32 0.01, %v352_v26 }
  0x1b   : > { %476 = vst [vmem:[%s837_s29] sm:$0xff] %v444_v34  ;;  %477 = vst [vmem:[%s837_s29 + $0x8] sm:$0xff] %v445_v35  ;;  %v446_v38 = vsel %vm382_vm2, %v350_v24, %v414_v32  ;;  %v447_v39 = vsel %vm383_vm3, %v351_v25, %v415_v33  ;;  %vm385_vm5 = vcmp.ge.f32.partialorder %v353_v27, 0.0  ;;  %v417_v40 = vmul.f32 0.01, %v353_v27  ;;  %v701_v25 = vld [vmem:[%s803_s22 + $0x50] sm:$0xff]  }
  0x1c   : > { %478 = vst [vmem:[%s837_s29 + $0x10] sm:$0xff] %v446_v38  ;;  %479 = vst [vmem:[%s837_s29 + $0x18] sm:$0xff] %v447_v39  ;;  %v448_v43 = vsel %vm384_vm4, %v352_v26, %v416_v36  ;;  %vm386_vm6 = vcmp.ge.f32.partialorder %v354_v28, 0.0  ;;  %v418_v44 = vmul.f32 0.01, %v354_v28  ;;  %vm387_vm7 = vcmp.ge.f32.partialorder %v355_v29, 0.0 }
  0x1d   : > { %480 = vst [vmem:[%s837_s29 + $0x20] sm:$0xff] %v448_v43  ;;  %v449_v45 = vsel %vm385_vm5, %v353_v27, %v417_v40  ;;  %v419_v46 = vmul.f32 0.01, %v355_v29  ;;  %v646_v47 = vunpack.c.l.bf16 %v695_v37  ;;  %v647_v48 = vunpack.c.h.bf16 %v695_v37  ;;  %v702_v43 = vld [vmem:[%s803_s22 + $0x58] sm:$0xff]  }
  0x1e   : > { %481 = vst [vmem:[%s837_s29 + $0x28] sm:$0xff] %v449_v45  ;;  %v450_v50 = vsel %vm386_vm6, %v354_v28, %v418_v44  ;;  %v650_v51 = vunpack.c.l.bf16 %v696_v41  ;;  %v651_v52 = vunpack.c.h.bf16 %v696_v41  ;;  %v654_v53 = vunpack.c.l.bf16 %v697_v42 }
  0x1f   : > { %482 = vst [vmem:[%s837_s29 + $0x30] sm:$0xff] %v450_v50  ;;  %v451_v54 = vsel %vm387_vm7, %v355_v29, %v419_v46  ;;  %v317_v55 = vmul.f32 %v646_v47, %v810_v1  ;;  %v318_v56 = vmul.f32 %v647_v48, %v810_v1  ;;  %v655_v57 = vunpack.c.h.bf16 %v697_v42 }
  0x20   : > { %483 = vst [vmem:[%s837_s29 + $0x38] sm:$0xff] %v451_v54  ;;  %v319_v58 = vmul.f32 %v650_v51, %v810_v1  ;;  %v320_v59 = vmul.f32 %v651_v52, %v810_v1  ;;  %v321_v60 = vmul.f32 %v654_v53, %v810_v1  ;;  %v658_v61 = vunpack.c.l.bf16 %v698_v49  ;;  %v703_v54 = vld [vmem:[%s803_s22 + $0x60] sm:$0xff]  }
  0x21   : > { %v356_v62 = vadd.f32 %v815_v9, %v317_v55  ;;  %v357_v63 = vadd.f32 %v815_v9, %v318_v56  ;;  %v322_v0 = vmul.f32 %v655_v57, %v810_v1  ;;  %v659_v2 = vunpack.c.h.bf16 %v698_v49 }
  0x22   : > { %v358_v3 = vadd.f32 %v815_v9, %v319_v58  ;;  %v359_v4 = vadd.f32 %v815_v9, %v320_v59  ;;  %v360_v5 = vadd.f32 %v815_v9, %v321_v60  ;;  %v323_v6 = vmul.f32 %v658_v61, %v810_v1 }
  0x23   : > { %vm388_vm8 = vcmp.ge.f32.partialorder %v356_v62, 0.0  ;;  %v420_v8 = vmul.f32 0.01, %v356_v62  ;;  %vm389_vm9 = vcmp.ge.f32.partialorder %v357_v63, 0.0  ;;  %v421_v10 = vmul.f32 0.01, %v357_v63 }
  0x24   : > { %vm390_vm10 = vcmp.ge.f32.partialorder %v358_v3, 0.0  ;;  %v422_v11 = vmul.f32 0.01, %v358_v3  ;;  %vm391_vm11 = vcmp.ge.f32.partialorder %v359_v4, 0.0  ;;  %v423_v12 = vmul.f32 0.01, %v359_v4 }
  0x25   : > { %v452_v13 = vsel %vm388_vm8, %v356_v62, %v420_v8  ;;  %v453_v14 = vsel %vm389_vm9, %v357_v63, %v421_v10  ;;  %vm392_vm12 = vcmp.ge.f32.partialorder %v360_v5, 0.0  ;;  %v424_v15 = vmul.f32 0.01, %v360_v5 }
  0x26   : > { %484 = vst [vmem:[%s837_s29 + $0x40] sm:$0xff] %v452_v13  ;;  %485 = vst [vmem:[%s837_s29 + $0x48] sm:$0xff] %v453_v14  ;;  %v454_v16 = vsel %vm390_vm10, %v358_v3, %v422_v11  ;;  %v455_v17 = vsel %vm391_vm11, %v359_v4, %v423_v12  ;;  %v361_v18 = vadd.f32 %v815_v9, %v322_v0  ;;  %v662_v23 = vunpack.c.l.bf16 %v699_v7  ;;  %v704_v0 = vld [vmem:[%s803_s22 + $0x68] sm:$0xff]  }
  0x27   : > { %v362_v19 = vadd.f32 %v815_v9, %v323_v6  ;;  %486 = vst [vmem:[%s837_s29 + $0x50] sm:$0xff] %v454_v16  ;;  %487 = vst [vmem:[%s837_s29 + $0x58] sm:$0xff] %v455_v17  ;;  %v456_v21 = vsel %vm392_vm12, %v360_v5, %v424_v15  ;;  %v324_v22 = vmul.f32 %v659_v2, %v810_v1  ;;  %v663_v24 = vunpack.c.h.bf16 %v699_v7  ;;  %v705_v2 = vld [vmem:[%s803_s22 + $0x70] sm:$0xff]  }
  0x28   : > { %488 = vst [vmem:[%s837_s29 + $0x60] sm:$0xff] %v456_v21  ;;  %vm393_vm13 = vcmp.ge.f32.partialorder %v361_v18, 0.0  ;;  %v425_v26 = vmul.f32 0.01, %v361_v18  ;;  %v325_v29 = vmul.f32 %v662_v23, %v810_v1  ;;  %v666_v31 = vunpack.c.l.bf16 %v700_v20  ;;  %v706_v21 = vld [vmem:[%s803_s22 + $0x78] sm:$0xff]  }
  0x29   : > { %vm394_vm14 = vcmp.ge.f32.partialorder %v362_v19, 0.0  ;;  %v426_v27 = vmul.f32 0.01, %v362_v19  ;;  %v363_v28 = vadd.f32 %v815_v9, %v324_v22  ;;  %v326_v30 = vmul.f32 %v663_v24, %v810_v1 }
  0x2a   : > { %v457_v32 = vsel %vm393_vm13, %v361_v18, %v425_v26  ;;  %v667_v34 = vunpack.c.h.bf16 %v700_v20  ;;  %v670_v35 = vunpack.c.l.bf16 %v701_v25  ;;  %v364_v37 = vadd.f32 %v815_v9, %v325_v29 }
  0x2b   : > { %v458_v33 = vsel %vm394_vm14, %v362_v19, %v426_v27  ;;  %489 = vst [vmem:[%s837_s29 + $0x68] sm:$0xff] %v457_v32  ;;  %vm395_vm15 = vcmp.ge.f32.partialorder %v363_v28, 0.0  ;;  %v427_v36 = vmul.f32 0.01, %v363_v28  ;;  %v365_v38 = vadd.f32 %v815_v9, %v326_v30 }
  0x2c   : > { %490 = vst [vmem:[%s837_s29 + $0x70] sm:$0xff] %v458_v33  ;;  %v327_v39 = vmul.f32 %v666_v31, %v810_v1  ;;  %v328_v40 = vmul.f32 %v667_v34, %v810_v1  ;;  %v329_v41 = vmul.f32 %v670_v35, %v810_v1  ;;  %v671_v42 = vunpack.c.h.bf16 %v701_v25 }
  0x2d   : > { %v459_v44 = vsel %vm395_vm15, %v363_v28, %v427_v36  ;;  %vm396_vm0 = vcmp.ge.f32.partialorder %v364_v37, 0.0  ;;  %v428_v45 = vmul.f32 0.01, %v364_v37  ;;  %vm397_vm1 = vcmp.ge.f32.partialorder %v365_v38, 0.0 }
  0x2e   : > { %491 = vst [vmem:[%s837_s29 + $0x78] sm:$0xff] %v459_v44  ;;  %v429_v46 = vmul.f32 0.01, %v365_v38  ;;  %v366_v47 = vadd.f32 %v815_v9, %v327_v39  ;;  %v367_v48 = vadd.f32 %v815_v9, %v328_v40  ;;  %v368_v49 = vadd.f32 %v815_v9, %v329_v41 }
  0x2f   : > { %v460_v50 = vsel %vm396_vm0, %v364_v37, %v428_v45  ;;  %v330_v51 = vmul.f32 %v671_v42, %v810_v1  ;;  %v674_v52 = vunpack.c.l.bf16 %v702_v43  ;;  %v675_v53 = vunpack.c.h.bf16 %v702_v43 }
  0x30   : > { %492 = vst [vmem:[%s837_s29 + $0x80] sm:$0xff] %v460_v50  ;;  %v461_v55 = vsel %vm397_vm1, %v365_v38, %v429_v46  ;;  %vm398_vm2 = vcmp.ge.f32.partialorder %v366_v47, 0.0  ;;  %v430_v56 = vmul.f32 0.01, %v366_v47  ;;  %vm399_vm3 = vcmp.ge.f32.partialorder %v367_v48, 0.0 }
  0x31   : > { %493 = vst [vmem:[%s837_s29 + $0x88] sm:$0xff] %v461_v55  ;;  %v431_v57 = vmul.f32 0.01, %v367_v48  ;;  %vm400_vm4 = vcmp.ge.f32.partialorder %v368_v49, 0.0  ;;  %v432_v58 = vmul.f32 0.01, %v368_v49  ;;  %v369_v59 = vadd.f32 %v815_v9, %v330_v51 }
  0x32   : > { %v462_v60 = vsel %vm398_vm2, %v366_v47, %v430_v56  ;;  %v331_v61 = vmul.f32 %v674_v52, %v810_v1  ;;  %v332_v62 = vmul.f32 %v675_v53, %v810_v1  ;;  %v678_v63 = vunpack.c.l.bf16 %v703_v54 }
  0x33   : > { %494 = vst [vmem:[%s837_s29 + $0x90] sm:$0xff] %v462_v60  ;;  %v463_v3 = vsel %vm399_vm3, %v367_v48, %v431_v57  ;;  %v464_v4 = vsel %vm400_vm4, %v368_v49, %v432_v58  ;;  %vm401_vm5 = vcmp.ge.f32.partialorder %v369_v59, 0.0  ;;  %v433_v5 = vmul.f32 0.01, %v369_v59 }
  0x34   : > { %495 = vst [vmem:[%s837_s29 + $0x98] sm:$0xff] %v463_v3  ;;  %496 = vst [vmem:[%s837_s29 + $0xa0] sm:$0xff] %v464_v4  ;;  %v370_v6 = vadd.f32 %v815_v9, %v331_v61  ;;  %v371_v7 = vadd.f32 %v815_v9, %v332_v62  ;;  %v333_v8 = vmul.f32 %v678_v63, %v810_v1  ;;  %v679_v10 = vunpack.c.h.bf16 %v703_v54 }
  0x35   : > { %v465_v11 = vsel %vm401_vm5, %v369_v59, %v433_v5  ;;  %v682_v12 = vunpack.c.l.bf16 %v704_v0  ;;  %v683_v13 = vunpack.c.h.bf16 %v704_v0  ;;  %v686_v14 = vunpack.c.l.bf16 %v705_v2 }
  0x36   : > { %497 = vst [vmem:[%s837_s29 + $0xa8] sm:$0xff] %v465_v11  ;;  %vm402_vm6 = vcmp.ge.f32.partialorder %v370_v6, 0.0  ;;  %v434_v15 = vmul.f32 0.01, %v370_v6  ;;  %vm403_vm7 = vcmp.ge.f32.partialorder %v371_v7, 0.0  ;;  %v372_v17 = vadd.f32 %v815_v9, %v333_v8 }
  0x37   : > { %v435_v16 = vmul.f32 0.01, %v371_v7  ;;  %v334_v18 = vmul.f32 %v679_v10, %v810_v1  ;;  %v335_v19 = vmul.f32 %v682_v12, %v810_v1  ;;  %v336_v20 = vmul.f32 %v683_v13, %v810_v1 }
  0x38   : > { %v466_v22 = vsel %vm402_vm6, %v370_v6, %v434_v15  ;;  %v337_v24 = vmul.f32 %v686_v14, %v810_v1  ;;  %v687_v25 = vunpack.c.h.bf16 %v705_v2  ;;  %vm404_vm8 = vcmp.ge.f32.partialorder %v372_v17, 0.0 }
  0x39   : > { %v467_v23 = vsel %vm403_vm7, %v371_v7, %v435_v16  ;;  %498 = vst [vmem:[%s837_s29 + $0xb0] sm:$0xff] %v466_v22  ;;  %v436_v26 = vmul.f32 0.01, %v372_v17  ;;  %v373_v27 = vadd.f32 %v815_v9, %v334_v18  ;;  %v374_v28 = vadd.f32 %v815_v9, %v335_v19 }
  0x3a   : > { %499 = vst [vmem:[%s837_s29 + $0xb8] sm:$0xff] %v467_v23  ;;  %v375_v29 = vadd.f32 %v815_v9, %v336_v20  ;;  %v376_v30 = vadd.f32 %v815_v9, %v337_v24  ;;  %v338_v31 = vmul.f32 %v687_v25, %v810_v1  ;;  %v690_v32 = vunpack.c.l.bf16 %v706_v21 }
  0x3b   : > { %v468_v33 = vsel %vm404_vm8, %v372_v17, %v436_v26  ;;  %vm405_vm9 = vcmp.ge.f32.partialorder %v373_v27, 0.0  ;;  %v437_v34 = vmul.f32 0.01, %v373_v27  ;;  %vm406_vm10 = vcmp.ge.f32.partialorder %v374_v28, 0.0 }
  0x3c   : > { %500 = vst [vmem:[%s837_s29 + $0xc0] sm:$0xff] %v468_v33  ;;  %v438_v35 = vmul.f32 0.01, %v374_v28  ;;  %vm407_vm11 = vcmp.ge.f32.partialorder %v375_v29, 0.0  ;;  %v439_v36 = vmul.f32 0.01, %v375_v29  ;;  %v377_v39 = vadd.f32 %v815_v9, %v338_v31 }
  0x3d   : > { %vm408_vm12 = vcmp.ge.f32.partialorder %v376_v30, 0.0  ;;  %v469_v37 = vsel %vm405_vm9, %v373_v27, %v437_v34  ;;  %v440_v38 = vmul.f32 0.01, %v376_v30  ;;  %v339_v40 = vmul.f32 %v690_v32, %v810_v1 }
  0x3e   : > { %501 = vst [vmem:[%s837_s29 + $0xc8] sm:$0xff] %v469_v37  ;;  %v470_v41 = vsel %vm406_vm10, %v374_v28, %v438_v35  ;;  %v471_v42 = vsel %vm407_vm11, %v375_v29, %v439_v36  ;;  %v691_v43 = vunpack.c.h.bf16 %v706_v21  ;;  %vm409_vm13 = vcmp.ge.f32.partialorder %v377_v39, 0.0 }
  0x3f   : > { %502 = vst [vmem:[%s837_s29 + $0xd0] sm:$0xff] %v470_v41  ;;  %503 = vst [vmem:[%s837_s29 + $0xd8] sm:$0xff] %v471_v42  ;;  %v472_v44 = vsel %vm408_vm12, %v376_v30, %v440_v38  ;;  %v441_v45 = vmul.f32 0.01, %v377_v39  ;;  %v378_v46 = vadd.f32 %v815_v9, %v339_v40 }
  0x40   : > { %504 = vst [vmem:[%s837_s29 + $0xe0] sm:$0xff] %v472_v44  ;;  %v340_v47 = vmul.f32 %v691_v43, %v810_v1 }
  0x41   : > { %v473_v48 = vsel %vm409_vm13, %v377_v39, %v441_v45  ;;  %vm410_vm14 = vcmp.ge.f32.partialorder %v378_v46, 0.0  ;;  %v442_v49 = vmul.f32 0.01, %v378_v46 }
  0x42   : > { %505 = vst [vmem:[%s837_s29 + $0xe8] sm:$0xff] %v473_v48  ;;  %v379_v50 = vadd.f32 %v815_v9, %v340_v47 }
  0x43   : > { %v474_v51 = vsel %vm410_vm14, %v378_v46, %v442_v49 }
  0x44   : > { %506 = vst [vmem:[%s837_s29 + $0xf0] sm:$0xff] %v474_v51  ;;  %vm411_vm15 = vcmp.ge.f32.partialorder %v379_v50, 0.0  ;;  %v443_v52 = vmul.f32 0.01, %v379_v50 }
  0x46   : > { %v475_v53 = vsel %vm411_vm15, %v379_v50, %v443_v52 }
  0x47   : > { %507 = vst [vmem:[%s837_s29 + $0xf8] sm:$0xff] %v475_v53 }
  0x48 PF: > { %s13_s14 = sadd.s32 1, %s753_s14   ;;  %s944_s12 = smov %s749_s13 }
  0x49   : > { %p10_p5 = scmp.ge.s32.totalorder %s13_s14, 4   ;;  %s945_s13 = smov %s947_s15 }
  0x4b   :  { %12 = sbr.rel (!%p10_p5) target bundleno = 2 (0x2), region = 68 }

</bundles_post_ra>
